<compile_context>
chip_gen: v7x
topology: tpu7x:2x2x1
jax: 0.10.0
libtpu: 0.0.40
codegen_flags: <defaults>
</compile_context>

<pallas_src>
import math
from functools import partial

import jax
import jax.numpy as jnp
from jax import lax
from jax.experimental import pallas as pl
from jax.experimental.pallas import tpu as pltpu

_INV_SQRT2 = 0.7071067811865476

# Keep the two (re, im) f32 accumulator tiles within half the 256 KiB vreg file:
#   2 arrays * 4 B * (Bb * tco * tm) <= 128 KiB  ->  Bb * tco * tm <= 16384.
_VREG_ACC_ELEMS = 16384


def _round_up(v, m):
    return ((v + m - 1) // m) * m


def _vmem_budgets():
    """Generation-dependent VMEM sizing (v5e/v6e: 128 MiB, v7x: 64 MiB)."""
    cap = None
    try:
        info = pltpu.get_tpu_info()
        for attr in ("vmem_capacity_bytes", "vmem_bytes", "vmem_size_bytes"):
            cap = getattr(info, attr, None)
            if cap:
                break
    except Exception:
        cap = None
    if not cap:
        cap = 64 * 1024 * 1024          # conservative default (v7x-sized)
    cap = int(cap)
    budget = (3 * cap) // 8             # double-buffered working-set target
    limit = (3 * cap) // 4              # scoped VMEM cap handed to Mosaic
    return budget, limit


_VMEM_BUDGET, _VMEM_LIMIT = _vmem_budgets()


def _largest_aligned_divisor(total, cap):
    """Largest multiple of 128 dividing `total` (itself a multiple of 128), <= cap."""
    cap = max(128, cap)
    q = total // 128
    best, d = 1, 1
    while d * d <= q:
        if q % d == 0:
            for c in (d, q // d):
                if 128 * c <= cap and c > best:
                    best = c
        d += 1
    return 128 * best


def _cout_tile_options(cout):
    # Full Cout is always a legal block; sub-tiles are kept multiples of 16 so
    # bf16 weight blocks stay aligned to the native (16, 128) tile.
    opts = {cout}
    d = 16
    while d < cout:
        if cout % d == 0:
            opts.add(d)
        d += 16
    return sorted(opts)


def _spectral_plan(B, Cin, Cout, Mtot, budget):
    """Pick (batch block Bb, Cout tile tco, mode tile tm, padded mode count Mp)."""
    Mp = _round_up(Mtot, 128)
    Bb = 4 if B % 4 == 0 else (2 if B % 2 == 0 else 1)
    opts = _cout_tile_options(Cout)

    def per_lane_bytes(bb, tco):
        # double-buffered bytes per lane of tm:
        #   weights (bf16, re+im) + x (f32, re+im) + out (f32, re+im)
        return 8 * Cin * tco + 16 * bb * Cin + 16 * bb * tco

    def pick_tco(bb):
        feas = [t for t in opts
                if bb * t * 128 <= _VREG_ACC_ELEMS
                and per_lane_bytes(bb, t) * 128 <= budget]
        return max(feas) if feas else None

    tco = pick_tco(Bb)
    while tco is None and Bb > 1:
        Bb = Bb // 2
        if B % Bb:
            Bb = 1
        tco = pick_tco(Bb)
    if tco is None:
        tco = min(opts)                 # last-resort fallback (tiny tm below)

    cap_vreg = max(128, (_VREG_ACC_ELEMS // (Bb * tco)) // 128 * 128)
    cap_vmem = max(128, budget // per_lane_bytes(Bb, tco))
    tm = _largest_aligned_divisor(Mp, min(cap_vreg, cap_vmem, Mp))
    return Bb, tco, tm, Mp


def _conv_plan(Cin, Cout, P, budget):
    """Spatial lane tile (multiple of 128, divisor of padded P)."""
    Pp = _round_up(P, 128)
    per_lane = 8 * (Cin + 2 * Cout)     # dbuf * f32 * (x + fourier + out)
    cap = min(max(budget // per_lane, 128), 8192)
    tp = _largest_aligned_divisor(Pp, cap)
    return tp, Pp


# --------------------------------------------------------------------------
# Pallas kernel 1: complex spectral multiply on one (mode-tile, cout-tile,
# batch-block) cell.
#   out[b, o, m] = sum_i x[b, i, m] * w[i, o, m]   (complex, split re/im)
# Weights are bf16 in VMEM, widened once per Cin step and reused across the
# Bb batches of the block.  Plain 4-mult complex product; f32 accumulation.
# Block shapes: xr/xi (Bb, Cin, TM); wr/wi (Cin, TCO, TM); out (Bb, TCO, TM).
# --------------------------------------------------------------------------
def _spectral_mul_kernel(xr_ref, xi_ref, wr_ref, wi_ref, or_ref, oi_ref, *, bb):
    cin, tco, tm = wr_ref.shape

    def body(i, accs):
        # Weight vregs loaded (and widened) once per Cin step, reused over Bb.
        wr = wr_ref[i].astype(jnp.float32)          # (TCO, TM)
        wi = wi_ref[i].astype(jnp.float32)
        out = []
        for b in range(bb):
            xr = xr_ref[b, pl.ds(i, 1), :]          # (1, TM)
            xi = xi_ref[b, pl.ds(i, 1), :]
            ar, ai = accs[2 * b], accs[2 * b + 1]
            out.append(ar + (wr * xr - wi * xi))
            out.append(ai + (wr * xi + wi * xr))
        return tuple(out)

    zero = jnp.zeros((tco, tm), jnp.float32)
    accs = lax.fori_loop(0, cin, body, tuple(zero for _ in range(2 * bb)),
                         unroll=True if cin <= 16 else 8)
    for b in range(bb):
        or_ref[b] = accs[2 * b]
        oi_ref[b] = accs[2 * b + 1]


def spectral_conv3d(x, wr_p, wi_p, modes1, modes2, modes3):
    """SpectralConv3d forward.

    x:          (B, Cin, X, Y, Z) float32.
    wr_p/wi_p:  (Cin, Cout, Mp) bf16 real/imag parts, 4 corners packed
                lane-dense along the flattened-mode axis (128-aligned).
    """
    B, Cin, X, Y, Z = x.shape
    Cin_w, Cout, Mp_w = wr_p.shape
    assert Cin_w == Cin
    assert 2 * modes1 <= X and 2 * modes2 <= Y and modes3 <= Z // 2 + 1, \
        "Fourier modes exceed the spectrum (corner slices would overlap)"

    M = modes1 * modes2 * modes3
    Mtot = 4 * M
    Bb, tco, tm, Mp = _spectral_plan(B, Cin, Cout, Mtot, _VMEM_BUDGET)
    assert Mp == Mp_w, "packed spectral weights are padded inconsistently"

    # TODO(synk): 3D real FFT has no Pallas equivalent; rfftn/irfftn stay in XLA.
    x_ft = jnp.fft.rfftn(x, axes=(-3, -2, -1))                # (B,Cin,X,Y,Zr) c64

    lo1, hi1 = slice(0, modes1), slice(X - modes1, X)
    lo2, hi2 = slice(0, modes2), slice(Y - modes2, Y)
    sl3 = slice(0, modes3)
    corner_ix = ((lo1, lo2), (hi1, lo2), (lo1, hi2), (hi1, hi2))

    # Lane-dense packing: 4 corners concatenated along the flattened-mode axis.
    xc = jnp.concatenate(
        [x_ft[:, :, s1, s2, sl3].reshape(B, Cin, M) for s1, s2 in corner_ix],
        axis=-1)                                              # (B, Cin, 4*M) c64
    xr = jnp.real(xc).astype(jnp.float32)
    xi = jnp.imag(xc).astype(jnp.float32)
    if Mp > Mtot:                                             # 128-alignment only
        pad = ((0, 0), (0, 0), (0, Mp - Mtot))
        xr = jnp.pad(xr, pad)
        xi = jnp.pad(xi, pad)

    n_weight_tiles = (Mp // tm) * (Cout // tco)
    if n_weight_tiles >= 2:
        # Megacore shards the weight-tile axes (disjoint weight slices per core);
        # batch stays innermost so weight tiles are reused (DMA skipped) across it.
        grid = (Mp // tm, Cout // tco, B // Bb)
        sem = ("parallel", "parallel", "arbitrary")
        x_map = lambda mt, co, b: (b, 0, mt)
        w_map = lambda mt, co, b: (0, co, mt)
        o_map = lambda mt, co, b: (b, co, mt)
    else:
        # Single weight tile: let megacore split batch instead (weights are
        # fetched only once per core regardless).
        grid = (B // Bb, Mp // tm, Cout // tco)
        sem = ("parallel", "arbitrary", "arbitrary")
        x_map = lambda b, mt, co: (b, 0, mt)
        w_map = lambda b, mt, co: (0, co, mt)
        o_map = lambda b, mt, co: (b, co, mt)

    out_r, out_i = pl.pallas_call(
        partial(_spectral_mul_kernel, bb=Bb),
        out_shape=(jax.ShapeDtypeStruct((B, Cout, Mp), jnp.float32),
                   jax.ShapeDtypeStruct((B, Cout, Mp), jnp.float32)),
        grid=grid,
        in_specs=[
            pl.BlockSpec((Bb, Cin, tm), x_map),
            pl.BlockSpec((Bb, Cin, tm), x_map),
            pl.BlockSpec((Cin, tco, tm), w_map),
            pl.BlockSpec((Cin, tco, tm), w_map),
        ],
        out_specs=(
            pl.BlockSpec((Bb, tco, tm), o_map),
            pl.BlockSpec((Bb, tco, tm), o_map),
        ),
        compiler_params=pltpu.CompilerParams(
            dimension_semantics=sem, vmem_limit_bytes=_VMEM_LIMIT),
    )(xr, xi, wr_p, wi_p)

    out_c = lax.complex(out_r[:, :, :Mtot], out_i[:, :, :Mtot]).reshape(
        B, Cout, 4, modes1, modes2, modes3)

    # Assemble the sparse-corner output spectrum with concatenations instead of
    # zeros + four dynamic-update-slices (saves a full-spectrum HBM pass).
    Zr = Z // 2 + 1
    zy = jnp.zeros((B, Cout, modes1, Y - 2 * modes2, modes3), jnp.complex64)
    row_lo = jnp.concatenate([out_c[:, :, 0], zy, out_c[:, :, 2]], axis=3)
    row_hi = jnp.concatenate([out_c[:, :, 1], zy, out_c[:, :, 3]], axis=3)
    zx = jnp.zeros((B, Cout, X - 2 * modes1, Y, modes3), jnp.complex64)
    out_ft = jnp.concatenate([row_lo, zx, row_hi], axis=2)    # (B,Cout,X,Y,m3)
    out_ft = jnp.pad(out_ft, ((0, 0), (0, 0), (0, 0), (0, 0), (0, Zr - modes3)))

    return jnp.fft.irfftn(out_ft, s=(X, Y, Z), axes=(-3, -2, -1)).astype(jnp.float32)


# --------------------------------------------------------------------------
# Pallas kernel 2: fused 1x1x1 Conv3d (channel contraction) + add with the
# spectral-conv output + exact (erf) GELU, tiled over the spatial axis.
#   out[o, p] = gelu( fourier[o, p] + sum_i w[o, i] * x[i, p] + bias[o] )
# Large channel counts use the MXU; tiny channel counts use SMEM scalars with
# scalar*vector FMAs on the VPU (no lane broadcasts, no near-idle MXU).
# --------------------------------------------------------------------------
def _conv_add_gelu_mxu_kernel(x_ref, f_ref, w_ref, b_ref, o_ref):
    conv = jnp.dot(w_ref[...], x_ref[...], preferred_element_type=jnp.float32)
    z = f_ref[...] + conv + b_ref[...]
    o_ref[...] = 0.5 * z * (1.0 + lax.erf(z * _INV_SQRT2))    # exact (erf) GELU


def _conv_add_gelu_small_kernel(x_ref, f_ref, w_ref, b_ref, o_ref):
    cout, cin = w_ref.shape                                   # w/b live in SMEM
    for o in range(cout):
        z = f_ref[pl.ds(o, 1), :] + b_ref[o]                  # (1, TP)
        for i in range(cin):
            z = z + w_ref[o, i] * x_ref[pl.ds(i, 1), :]       # scalar * vector FMA
        o_ref[pl.ds(o, 1), :] = 0.5 * z * (1.0 + lax.erf(z * _INV_SQRT2))


def conv1x1_add_gelu(x, fourier_out, w, b):
    B, Cin, X, Y, Z = x.shape
    Cout = w.shape[0]
    P = X * Y * Z
    tp, Pp = _conv_plan(Cin, Cout, P, _VMEM_BUDGET)

    x_f = x.reshape(B, Cin, P)
    f_f = fourier_out.reshape(B, Cout, P)
    if Pp > P:                       # only 128-alignment padding (usually a no-op)
        x_f = jnp.pad(x_f, ((0, 0), (0, 0), (0, Pp - P)))
        f_f = jnp.pad(f_f, ((0, 0), (0, 0), (0, Pp - P)))

    use_mxu = min(Cin, Cout) >= 16
    if use_mxu:
        kernel = _conv_add_gelu_mxu_kernel
        w_in, b_in = w, b.reshape(Cout, 1)
        w_spec = pl.BlockSpec((Cout, Cin), lambda bb_, pt: (0, 0))
        b_spec = pl.BlockSpec((Cout, 1), lambda bb_, pt: (0, 0))
    else:
        kernel = _conv_add_gelu_small_kernel
        w_in, b_in = w, b
        w_spec = pl.BlockSpec(memory_space=pltpu.MemorySpace.SMEM)
        b_spec = pl.BlockSpec(memory_space=pltpu.MemorySpace.SMEM)

    out = pl.pallas_call(
        kernel,
        out_shape=jax.ShapeDtypeStruct((B, Cout, Pp), jnp.float32),
        grid=(B, Pp // tp),
        in_specs=[
            pl.BlockSpec((None, Cin, tp), lambda bb_, pt: (bb_, 0, pt)),
            pl.BlockSpec((None, Cout, tp), lambda bb_, pt: (bb_, 0, pt)),
            w_spec,
            b_spec,
        ],
        out_specs=pl.BlockSpec((None, Cout, tp), lambda bb_, pt: (bb_, 0, pt)),
        input_output_aliases={1: 0},     # write GELU output over the fourier buffer
        compiler_params=pltpu.CompilerParams(
            dimension_semantics=("parallel", "parallel"),
            vmem_limit_bytes=_VMEM_LIMIT),
    )(x_f, f_f, w_in, b_in)

    if Pp > P:
        out = out[:, :, :P]
    return out.reshape(B, Cout, X, Y, Z)


# --------------------------------------------------------------------------
# Full FourierBasicBlock3D forward.
# (The nn.Sequential shortcut is never used in the reference forward pass.)
# --------------------------------------------------------------------------
def fourier_basic_block_3d(x, params, modes):
    m1, m2, m3 = modes
    f1 = spectral_conv3d(x, params["f1_wr"], params["f1_wi"], m1, m2, m3)
    out = conv1x1_add_gelu(x, f1, params["c1_w"], params["c1_b"])
    f2 = spectral_conv3d(out, params["f2_wr"], params["f2_wi"], m1, m2, m3)
    out = conv1x1_add_gelu(out, f2, params["c2_w"], params["c2_b"])
    return out


# --------------------------------------------------------------------------
# Parameter init (matches the PyTorch module's initializers) + weight packing.
# --------------------------------------------------------------------------
def _pack_spectral_weight(w4, cin, cout, m1, m2, m3):
    """(4, Cin, Cout, m1, m2, m3) -> (Cin, Cout, Mp) bf16: the 4 corner weights
    concatenated lane-dense along the flattened-mode axis, padded to a multiple
    of 128.  bf16 storage halves the dominant HBM stream; widened in-kernel."""
    M = m1 * m2 * m3
    mtot = 4 * M
    mp = _round_up(mtot, 128)
    w = jnp.concatenate([w4[c].reshape(cin, cout, M) for c in range(4)], axis=-1)
    if mp > mtot:
        w = jnp.pad(w, ((0, 0), (0, 0), (0, mp - mtot)))
    return w.astype(jnp.bfloat16)


def init_params(key, in_planes, planes, m1, m2, m3):
    ks = jax.random.split(key, 8)
    s1 = 1.0 / (in_planes * planes)
    s2 = 1.0 / (planes * planes)
    # SpectralConv3d: scale * rand(Cin, Cout, m1, m2, m3) complex, 4 corner weights.
    f1_wr = s1 * jax.random.uniform(ks[0], (4, in_planes, planes, m1, m2, m3), jnp.float32)
    f1_wi = s1 * jax.random.uniform(ks[1], (4, in_planes, planes, m1, m2, m3), jnp.float32)
    f2_wr = s2 * jax.random.uniform(ks[2], (4, planes, planes, m1, m2, m3), jnp.float32)
    f2_wi = s2 * jax.random.uniform(ks[3], (4, planes, planes, m1, m2, m3), jnp.float32)
    # Conv3d kernel_size=1: PyTorch default uniform(-1/sqrt(fan_in), 1/sqrt(fan_in)).
    b1 = 1.0 / math.sqrt(in_planes)
    c1_w = jax.random.uniform(ks[4], (planes, in_planes), jnp.float32, -b1, b1)
    c1_b = jax.random.uniform(ks[5], (planes,), jnp.float32, -b1, b1)
    b2 = 1.0 / math.sqrt(planes)
    c2_w = jax.random.uniform(ks[6], (planes, planes), jnp.float32, -b2, b2)
    c2_b = jax.random.uniform(ks[7], (planes,), jnp.float32, -b2, b2)
    return dict(
        f1_wr=_pack_spectral_weight(f1_wr, in_planes, planes, m1, m2, m3),
        f1_wi=_pack_spectral_weight(f1_wi, in_planes, planes, m1, m2, m3),
        f2_wr=_pack_spectral_weight(f2_wr, planes, planes, m1, m2, m3),
        f2_wi=_pack_spectral_weight(f2_wi, planes, planes, m1, m2, m3),
        c1_w=c1_w, c1_b=c1_b, c2_w=c2_w, c2_b=c2_b)


# --------------------------------------------------------------------------
# Pure-JAX reference (mirrors the PyTorch module) for correctness checking.
# Uses the same (bf16-quantized) packed spectral weights as the kernels.
# --------------------------------------------------------------------------
def _ref_spectral(x, wr_p, wi_p, m1, m2, m3):
    B, Cin, X, Y, Z = x.shape
    Cout = wr_p.shape[1]
    M = m1 * m2 * m3
    w = (wr_p.astype(jnp.float32) + 1j * wi_p.astype(jnp.float32))[:, :, :4 * M]
    w = w.reshape(Cin, Cout, 4, m1, m2, m3)
    x_ft = jnp.fft.rfftn(x, axes=(-3, -2, -1))
    Zr = Z // 2 + 1
    out_ft = jnp.zeros((B, Cout, X, Y, Zr), jnp.complex64)
    corner_ix = ((slice(0, m1), slice(0, m2)), (slice(X - m1, X), slice(0, m2)),
                 (slice(0, m1), slice(Y - m2, Y)), (slice(X - m1, X), slice(Y - m2, Y)))
    for c, (s1, s2) in enumerate(corner_ix):
        out_ft = out_ft.at[:, :, s1, s2, :m3].set(
            jnp.einsum("bixyz,ioxyz->boxyz", x_ft[:, :, s1, s2, :m3], w[:, :, c]))
    return jnp.fft.irfftn(out_ft, s=(X, Y, Z), axes=(-3, -2, -1)).astype(jnp.float32)


def _ref_block(x, params, modes):
    m1, m2, m3 = modes

    def conv(y, w, b):
        return jnp.einsum("oi,bipqr->bopqr", w, y) + b[None, :, None, None, None]

    def gelu(z):
        return 0.5 * z * (1.0 + lax.erf(z * _INV_SQRT2))

    h = gelu(_ref_spectral(x, params["f1_wr"], params["f1_wi"], m1, m2, m3)
             + conv(x, params["c1_w"], params["c1_b"]))
    return gelu(_ref_spectral(h, params["f2_wr"], params["f2_wi"], m1, m2, m3)
                + conv(h, params["c2_w"], params["c2_b"]))


if __name__ == "__main__":
    B, in_planes, planes = 2, 4, 8
    X = Y = Z = 8
    m1 = m2 = m3 = 4          # must satisfy m3 <= Z//2 + 1

    key = jax.random.PRNGKey(0)
    kx, kp = jax.random.split(key)
    x = jax.random.normal(kx, (B, in_planes, X, Y, Z), jnp.float32)
    params = init_params(kp, in_planes, planes, m1, m2, m3)

    fwd = jax.jit(partial(fourier_basic_block_3d, modes=(m1, m2, m3)))
    out = fwd(x, params)
    jax.block_until_ready(out)

    assert out.shape == (B, planes, X, Y, Z), out.shape
    assert out.dtype == jnp.float32
    ref = jax.jit(partial(_ref_block, modes=(m1, m2, m3)))(x, params)
    err = float(jnp.max(jnp.abs(out - ref)))
    assert err < 1e-3, f"max abs err vs reference = {err}"
    print("KERNEL_OK")
</pallas_src>

<mosaic_0001>
module attributes {stable_mosaic.version = 11 : i64} {
  func.func @_spectral_mul_kernel(%arg0: i32, %arg1: i32, %arg2: i32, %arg3: memref<2x4x256xf32, #tpu.memory_space<vmem>>, %arg4: memref<2x4x256xf32, #tpu.memory_space<vmem>>, %arg5: memref<4x8x256xbf16, #tpu.memory_space<vmem>>, %arg6: memref<4x8x256xbf16, #tpu.memory_space<vmem>>, %arg7: memref<2x8x256xf32, #tpu.memory_space<vmem>>, %arg8: memref<2x8x256xf32, #tpu.memory_space<vmem>>) attributes {dimension_semantics = [#tpu.dimension_semantics<parallel>, #tpu.dimension_semantics<arbitrary>, #tpu.dimension_semantics<arbitrary>], iteration_bounds = array<i64: 1, 1, 1>, scalar_prefetch = 0 : i64, scratch_operands = 0 : i64, tpu.core_type = #tpu.core_type<tc>, window_params = [{transform_indices = @transform_0, window_bounds = array<i64: 2, 4, 256>}, {transform_indices = @transform_1, window_bounds = array<i64: 2, 4, 256>}, {transform_indices = @transform_2, window_bounds = array<i64: 4, 8, 256>}, {transform_indices = @transform_3, window_bounds = array<i64: 4, 8, 256>}, {transform_indices = @transform_4, window_bounds = array<i64: 2, 8, 256>}, {transform_indices = @transform_5, window_bounds = array<i64: 2, 8, 256>}]} {
    %cst = arith.constant 0.000000e+00 : f32
    %0 = vector.broadcast %cst : f32 to vector<8x256xf32>
    %c0_i32 = arith.constant 0 : i32
    %1 = arith.index_cast %c0_i32 : i32 to index
    %c0 = arith.constant 0 : index
    %c0_0 = arith.constant 0 : index
    %2 = vector.load %arg5[%1, %c0, %c0_0] : memref<4x8x256xbf16, #tpu.memory_space<vmem>>, vector<1x8x256xbf16>
    %3 = vector.shape_cast %2 : vector<1x8x256xbf16> to vector<8x256xbf16>
    %4 = arith.extf %3 : vector<8x256xbf16> to vector<8x256xf32>
    %5 = arith.index_cast %c0_i32 : i32 to index
    %c0_1 = arith.constant 0 : index
    %c0_2 = arith.constant 0 : index
    %6 = vector.load %arg6[%5, %c0_1, %c0_2] : memref<4x8x256xbf16, #tpu.memory_space<vmem>>, vector<1x8x256xbf16>
    %7 = vector.shape_cast %6 : vector<1x8x256xbf16> to vector<8x256xbf16>
    %8 = arith.extf %7 : vector<8x256xbf16> to vector<8x256xf32>
    %c0_3 = arith.constant 0 : index
    %9 = arith.index_cast %c0_i32 : i32 to index
    %c0_4 = arith.constant 0 : index
    %10 = vector.load %arg3[%c0_3, %9, %c0_4] : memref<2x4x256xf32, #tpu.memory_space<vmem>>, vector<1x1x256xf32>
    %11 = vector.shape_cast %10 : vector<1x1x256xf32> to vector<1x256xf32>
    %c0_5 = arith.constant 0 : index
    %12 = arith.index_cast %c0_i32 : i32 to index
    %c0_6 = arith.constant 0 : index
    %13 = vector.load %arg4[%c0_5, %12, %c0_6] : memref<2x4x256xf32, #tpu.memory_space<vmem>>, vector<1x1x256xf32>
    %14 = vector.shape_cast %13 : vector<1x1x256xf32> to vector<1x256xf32>
    %15 = vector.broadcast %11 : vector<1x256xf32> to vector<8x256xf32>
    %16 = arith.mulf %4, %15 : vector<8x256xf32>
    %17 = vector.broadcast %14 : vector<1x256xf32> to vector<8x256xf32>
    %18 = arith.mulf %8, %17 : vector<8x256xf32>
    %19 = arith.subf %16, %18 : vector<8x256xf32>
    %20 = arith.addf %0, %19 : vector<8x256xf32>
    %21 = vector.broadcast %14 : vector<1x256xf32> to vector<8x256xf32>
    %22 = arith.mulf %4, %21 : vector<8x256xf32>
    %23 = vector.broadcast %11 : vector<1x256xf32> to vector<8x256xf32>
    %24 = arith.mulf %8, %23 : vector<8x256xf32>
    %25 = arith.addf %22, %24 : vector<8x256xf32>
    %26 = arith.addf %0, %25 : vector<8x256xf32>
    %c1 = arith.constant 1 : index
    %27 = arith.index_cast %c0_i32 : i32 to index
    %c0_7 = arith.constant 0 : index
    %28 = vector.load %arg3[%c1, %27, %c0_7] : memref<2x4x256xf32, #tpu.memory_space<vmem>>, vector<1x1x256xf32>
    %29 = vector.shape_cast %28 : vector<1x1x256xf32> to vector<1x256xf32>
    %c1_8 = arith.constant 1 : index
    %30 = arith.index_cast %c0_i32 : i32 to index
    %c0_9 = arith.constant 0 : index
    %31 = vector.load %arg4[%c1_8, %30, %c0_9] : memref<2x4x256xf32, #tpu.memory_space<vmem>>, vector<1x1x256xf32>
    %32 = vector.shape_cast %31 : vector<1x1x256xf32> to vector<1x256xf32>
    %33 = vector.broadcast %29 : vector<1x256xf32> to vector<8x256xf32>
    %34 = arith.mulf %4, %33 : vector<8x256xf32>
    %35 = vector.broadcast %32 : vector<1x256xf32> to vector<8x256xf32>
    %36 = arith.mulf %8, %35 : vector<8x256xf32>
    %37 = arith.subf %34, %36 : vector<8x256xf32>
    %38 = arith.addf %0, %37 : vector<8x256xf32>
    %39 = vector.broadcast %32 : vector<1x256xf32> to vector<8x256xf32>
    %40 = arith.mulf %4, %39 : vector<8x256xf32>
    %41 = vector.broadcast %29 : vector<1x256xf32> to vector<8x256xf32>
    %42 = arith.mulf %8, %41 : vector<8x256xf32>
    %43 = arith.addf %40, %42 : vector<8x256xf32>
    %44 = arith.addf %0, %43 : vector<8x256xf32>
    %c1_i32 = arith.constant 1 : i32
    %45 = arith.index_cast %c1_i32 : i32 to index
    %c0_10 = arith.constant 0 : index
    %c0_11 = arith.constant 0 : index
    %46 = vector.load %arg5[%45, %c0_10, %c0_11] : memref<4x8x256xbf16, #tpu.memory_space<vmem>>, vector<1x8x256xbf16>
    %47 = vector.shape_cast %46 : vector<1x8x256xbf16> to vector<8x256xbf16>
    %48 = arith.extf %47 : vector<8x256xbf16> to vector<8x256xf32>
    %49 = arith.index_cast %c1_i32 : i32 to index
    %c0_12 = arith.constant 0 : index
    %c0_13 = arith.constant 0 : index
    %50 = vector.load %arg6[%49, %c0_12, %c0_13] : memref<4x8x256xbf16, #tpu.memory_space<vmem>>, vector<1x8x256xbf16>
    %51 = vector.shape_cast %50 : vector<1x8x256xbf16> to vector<8x256xbf16>
    %52 = arith.extf %51 : vector<8x256xbf16> to vector<8x256xf32>
    %c0_14 = arith.constant 0 : index
    %53 = arith.index_cast %c1_i32 : i32 to index
    %c0_15 = arith.constant 0 : index
    %54 = vector.load %arg3[%c0_14, %53, %c0_15] : memref<2x4x256xf32, #tpu.memory_space<vmem>>, vector<1x1x256xf32>
    %55 = vector.shape_cast %54 : vector<1x1x256xf32> to vector<1x256xf32>
    %c0_16 = arith.constant 0 : index
    %56 = arith.index_cast %c1_i32 : i32 to index
    %c0_17 = arith.constant 0 : index
    %57 = vector.load %arg4[%c0_16, %56, %c0_17] : memref<2x4x256xf32, #tpu.memory_space<vmem>>, vector<1x1x256xf32>
    %58 = vector.shape_cast %57 : vector<1x1x256xf32> to vector<1x256xf32>
    %59 = vector.broadcast %55 : vector<1x256xf32> to vector<8x256xf32>
    %60 = arith.mulf %48, %59 : vector<8x256xf32>
    %61 = vector.broadcast %58 : vector<1x256xf32> to vector<8x256xf32>
    %62 = arith.mulf %52, %61 : vector<8x256xf32>
    %63 = arith.subf %60, %62 : vector<8x256xf32>
    %64 = arith.addf %20, %63 : vector<8x256xf32>
    %65 = vector.broadcast %58 : vector<1x256xf32> to vector<8x256xf32>
    %66 = arith.mulf %48, %65 : vector<8x256xf32>
    %67 = vector.broadcast %55 : vector<1x256xf32> to vector<8x256xf32>
    %68 = arith.mulf %52, %67 : vector<8x256xf32>
    %69 = arith.addf %66, %68 : vector<8x256xf32>
    %70 = arith.addf %26, %69 : vector<8x256xf32>
    %c1_18 = arith.constant 1 : index
    %71 = arith.index_cast %c1_i32 : i32 to index
    %c0_19 = arith.constant 0 : index
    %72 = vector.load %arg3[%c1_18, %71, %c0_19] : memref<2x4x256xf32, #tpu.memory_space<vmem>>, vector<1x1x256xf32>
    %73 = vector.shape_cast %72 : vector<1x1x256xf32> to vector<1x256xf32>
    %c1_20 = arith.constant 1 : index
    %74 = arith.index_cast %c1_i32 : i32 to index
    %c0_21 = arith.constant 0 : index
    %75 = vector.load %arg4[%c1_20, %74, %c0_21] : memref<2x4x256xf32, #tpu.memory_space<vmem>>, vector<1x1x256xf32>
    %76 = vector.shape_cast %75 : vector<1x1x256xf32> to vector<1x256xf32>
    %77 = vector.broadcast %73 : vector<1x256xf32> to vector<8x256xf32>
    %78 = arith.mulf %48, %77 : vector<8x256xf32>
    %79 = vector.broadcast %76 : vector<1x256xf32> to vector<8x256xf32>
    %80 = arith.mulf %52, %79 : vector<8x256xf32>
    %81 = arith.subf %78, %80 : vector<8x256xf32>
    %82 = arith.addf %38, %81 : vector<8x256xf32>
    %83 = vector.broadcast %76 : vector<1x256xf32> to vector<8x256xf32>
    %84 = arith.mulf %48, %83 : vector<8x256xf32>
    %85 = vector.broadcast %73 : vector<1x256xf32> to vector<8x256xf32>
    %86 = arith.mulf %52, %85 : vector<8x256xf32>
    %87 = arith.addf %84, %86 : vector<8x256xf32>
    %88 = arith.addf %44, %87 : vector<8x256xf32>
    %c2_i32 = arith.constant 2 : i32
    %89 = arith.index_cast %c2_i32 : i32 to index
    %c0_22 = arith.constant 0 : index
    %c0_23 = arith.constant 0 : index
    %90 = vector.load %arg5[%89, %c0_22, %c0_23] : memref<4x8x256xbf16, #tpu.memory_space<vmem>>, vector<1x8x256xbf16>
    %91 = vector.shape_cast %90 : vector<1x8x256xbf16> to vector<8x256xbf16>
    %92 = arith.extf %91 : vector<8x256xbf16> to vector<8x256xf32>
    %93 = arith.index_cast %c2_i32 : i32 to index
    %c0_24 = arith.constant 0 : index
    %c0_25 = arith.constant 0 : index
    %94 = vector.load %arg6[%93, %c0_24, %c0_25] : memref<4x8x256xbf16, #tpu.memory_space<vmem>>, vector<1x8x256xbf16>
    %95 = vector.shape_cast %94 : vector<1x8x256xbf16> to vector<8x256xbf16>
    %96 = arith.extf %95 : vector<8x256xbf16> to vector<8x256xf32>
    %c0_26 = arith.constant 0 : index
    %97 = arith.index_cast %c2_i32 : i32 to index
    %c0_27 = arith.constant 0 : index
    %98 = vector.load %arg3[%c0_26, %97, %c0_27] : memref<2x4x256xf32, #tpu.memory_space<vmem>>, vector<1x1x256xf32>
    %99 = vector.shape_cast %98 : vector<1x1x256xf32> to vector<1x256xf32>
    %c0_28 = arith.constant 0 : index
    %100 = arith.index_cast %c2_i32 : i32 to index
    %c0_29 = arith.constant 0 : index
    %101 = vector.load %arg4[%c0_28, %100, %c0_29] : memref<2x4x256xf32, #tpu.memory_space<vmem>>, vector<1x1x256xf32>
    %102 = vector.shape_cast %101 : vector<1x1x256xf32> to vector<1x256xf32>
    %103 = vector.broadcast %99 : vector<1x256xf32> to vector<8x256xf32>
    %104 = arith.mulf %92, %103 : vector<8x256xf32>
    %105 = vector.broadcast %102 : vector<1x256xf32> to vector<8x256xf32>
    %106 = arith.mulf %96, %105 : vector<8x256xf32>
    %107 = arith.subf %104, %106 : vector<8x256xf32>
    %108 = arith.addf %64, %107 : vector<8x256xf32>
    %109 = vector.broadcast %102 : vector<1x256xf32> to vector<8x256xf32>
    %110 = arith.mulf %92, %109 : vector<8x256xf32>
    %111 = vector.broadcast %99 : vector<1x256xf32> to vector<8x256xf32>
    %112 = arith.mulf %96, %111 : vector<8x256xf32>
    %113 = arith.addf %110, %112 : vector<8x256xf32>
    %114 = arith.addf %70, %113 : vector<8x256xf32>
    %c1_30 = arith.constant 1 : index
    %115 = arith.index_cast %c2_i32 : i32 to index
    %c0_31 = arith.constant 0 : index
    %116 = vector.load %arg3[%c1_30, %115, %c0_31] : memref<2x4x256xf32, #tpu.memory_space<vmem>>, vector<1x1x256xf32>
    %117 = vector.shape_cast %116 : vector<1x1x256xf32> to vector<1x256xf32>
    %c1_32 = arith.constant 1 : index
    %118 = arith.index_cast %c2_i32 : i32 to index
    %c0_33 = arith.constant 0 : index
    %119 = vector.load %arg4[%c1_32, %118, %c0_33] : memref<2x4x256xf32, #tpu.memory_space<vmem>>, vector<1x1x256xf32>
    %120 = vector.shape_cast %119 : vector<1x1x256xf32> to vector<1x256xf32>
    %121 = vector.broadcast %117 : vector<1x256xf32> to vector<8x256xf32>
    %122 = arith.mulf %92, %121 : vector<8x256xf32>
    %123 = vector.broadcast %120 : vector<1x256xf32> to vector<8x256xf32>
    %124 = arith.mulf %96, %123 : vector<8x256xf32>
    %125 = arith.subf %122, %124 : vector<8x256xf32>
    %126 = arith.addf %82, %125 : vector<8x256xf32>
    %127 = vector.broadcast %120 : vector<1x256xf32> to vector<8x256xf32>
    %128 = arith.mulf %92, %127 : vector<8x256xf32>
    %129 = vector.broadcast %117 : vector<1x256xf32> to vector<8x256xf32>
    %130 = arith.mulf %96, %129 : vector<8x256xf32>
    %131 = arith.addf %128, %130 : vector<8x256xf32>
    %132 = arith.addf %88, %131 : vector<8x256xf32>
    %c3_i32 = arith.constant 3 : i32
    %133 = arith.index_cast %c3_i32 : i32 to index
    %c0_34 = arith.constant 0 : index
    %c0_35 = arith.constant 0 : index
    %134 = vector.load %arg5[%133, %c0_34, %c0_35] : memref<4x8x256xbf16, #tpu.memory_space<vmem>>, vector<1x8x256xbf16>
    %135 = vector.shape_cast %134 : vector<1x8x256xbf16> to vector<8x256xbf16>
    %136 = arith.extf %135 : vector<8x256xbf16> to vector<8x256xf32>
    %137 = arith.index_cast %c3_i32 : i32 to index
    %c0_36 = arith.constant 0 : index
    %c0_37 = arith.constant 0 : index
    %138 = vector.load %arg6[%137, %c0_36, %c0_37] : memref<4x8x256xbf16, #tpu.memory_space<vmem>>, vector<1x8x256xbf16>
    %139 = vector.shape_cast %138 : vector<1x8x256xbf16> to vector<8x256xbf16>
    %140 = arith.extf %139 : vector<8x256xbf16> to vector<8x256xf32>
    %c0_38 = arith.constant 0 : index
    %141 = arith.index_cast %c3_i32 : i32 to index
    %c0_39 = arith.constant 0 : index
    %142 = vector.load %arg3[%c0_38, %141, %c0_39] : memref<2x4x256xf32, #tpu.memory_space<vmem>>, vector<1x1x256xf32>
    %143 = vector.shape_cast %142 : vector<1x1x256xf32> to vector<1x256xf32>
    %c0_40 = arith.constant 0 : index
    %144 = arith.index_cast %c3_i32 : i32 to index
    %c0_41 = arith.constant 0 : index
    %145 = vector.load %arg4[%c0_40, %144, %c0_41] : memref<2x4x256xf32, #tpu.memory_space<vmem>>, vector<1x1x256xf32>
    %146 = vector.shape_cast %145 : vector<1x1x256xf32> to vector<1x256xf32>
    %147 = vector.broadcast %143 : vector<1x256xf32> to vector<8x256xf32>
    %148 = arith.mulf %136, %147 : vector<8x256xf32>
    %149 = vector.broadcast %146 : vector<1x256xf32> to vector<8x256xf32>
    %150 = arith.mulf %140, %149 : vector<8x256xf32>
    %151 = arith.subf %148, %150 : vector<8x256xf32>
    %152 = arith.addf %108, %151 : vector<8x256xf32>
    %153 = vector.broadcast %146 : vector<1x256xf32> to vector<8x256xf32>
    %154 = arith.mulf %136, %153 : vector<8x256xf32>
    %155 = vector.broadcast %143 : vector<1x256xf32> to vector<8x256xf32>
    %156 = arith.mulf %140, %155 : vector<8x256xf32>
    %157 = arith.addf %154, %156 : vector<8x256xf32>
    %158 = arith.addf %114, %157 : vector<8x256xf32>
    %c1_42 = arith.constant 1 : index
    %159 = arith.index_cast %c3_i32 : i32 to index
    %c0_43 = arith.constant 0 : index
    %160 = vector.load %arg3[%c1_42, %159, %c0_43] : memref<2x4x256xf32, #tpu.memory_space<vmem>>, vector<1x1x256xf32>
    %161 = vector.shape_cast %160 : vector<1x1x256xf32> to vector<1x256xf32>
    %c1_44 = arith.constant 1 : index
    %162 = arith.index_cast %c3_i32 : i32 to index
    %c0_45 = arith.constant 0 : index
    %163 = vector.load %arg4[%c1_44, %162, %c0_45] : memref<2x4x256xf32, #tpu.memory_space<vmem>>, vector<1x1x256xf32>
    %164 = vector.shape_cast %163 : vector<1x1x256xf32> to vector<1x256xf32>
    %165 = vector.broadcast %161 : vector<1x256xf32> to vector<8x256xf32>
    %166 = arith.mulf %136, %165 : vector<8x256xf32>
    %167 = vector.broadcast %164 : vector<1x256xf32> to vector<8x256xf32>
    %168 = arith.mulf %140, %167 : vector<8x256xf32>
    %169 = arith.subf %166, %168 : vector<8x256xf32>
    %170 = arith.addf %126, %169 : vector<8x256xf32>
    %171 = vector.broadcast %164 : vector<1x256xf32> to vector<8x256xf32>
    %172 = arith.mulf %136, %171 : vector<8x256xf32>
    %173 = vector.broadcast %161 : vector<1x256xf32> to vector<8x256xf32>
    %174 = arith.mulf %140, %173 : vector<8x256xf32>
    %175 = arith.addf %172, %174 : vector<8x256xf32>
    %176 = arith.addf %132, %175 : vector<8x256xf32>
    %c4_i32 = arith.constant 4 : i32
    %c0_46 = arith.constant 0 : index
    %c0_47 = arith.constant 0 : index
    %c0_48 = arith.constant 0 : index
    %177 = vector.load %arg7[%c0_46, %c0_47, %c0_48] : memref<2x8x256xf32, #tpu.memory_space<vmem>>, vector<1x8x256xf32>
    %178 = vector.shape_cast %177 : vector<1x8x256xf32> to vector<8x256xf32>
    %179 = vector.shape_cast %152 : vector<8x256xf32> to vector<1x8x256xf32>
    tpu.vector_store %arg7[%c0_46, %c0_47, %c0_48], %179 {strides = array<i32>} : memref<2x8x256xf32, #tpu.memory_space<vmem>>, vector<1x8x256xf32>,
    %c0_49 = arith.constant 0 : index
    %c0_50 = arith.constant 0 : index
    %c0_51 = arith.constant 0 : index
    %180 = vector.load %arg8[%c0_49, %c0_50, %c0_51] : memref<2x8x256xf32, #tpu.memory_space<vmem>>, vector<1x8x256xf32>
    %181 = vector.shape_cast %180 : vector<1x8x256xf32> to vector<8x256xf32>
    %182 = vector.shape_cast %158 : vector<8x256xf32> to vector<1x8x256xf32>
    tpu.vector_store %arg8[%c0_49, %c0_50, %c0_51], %182 {strides = array<i32>} : memref<2x8x256xf32, #tpu.memory_space<vmem>>, vector<1x8x256xf32>,
    %c1_52 = arith.constant 1 : index
    %c0_53 = arith.constant 0 : index
    %c0_54 = arith.constant 0 : index
    %183 = vector.load %arg7[%c1_52, %c0_53, %c0_54] : memref<2x8x256xf32, #tpu.memory_space<vmem>>, vector<1x8x256xf32>
    %184 = vector.shape_cast %183 : vector<1x8x256xf32> to vector<8x256xf32>
    %185 = vector.shape_cast %170 : vector<8x256xf32> to vector<1x8x256xf32>
    tpu.vector_store %arg7[%c1_52, %c0_53, %c0_54], %185 {strides = array<i32>} : memref<2x8x256xf32, #tpu.memory_space<vmem>>, vector<1x8x256xf32>,
    %c1_55 = arith.constant 1 : index
    %c0_56 = arith.constant 0 : index
    %c0_57 = arith.constant 0 : index
    %186 = vector.load %arg8[%c1_55, %c0_56, %c0_57] : memref<2x8x256xf32, #tpu.memory_space<vmem>>, vector<1x8x256xf32>
    %187 = vector.shape_cast %186 : vector<1x8x256xf32> to vector<8x256xf32>
    %188 = vector.shape_cast %176 : vector<8x256xf32> to vector<1x8x256xf32>
    tpu.vector_store %arg8[%c1_55, %c0_56, %c0_57], %188 {strides = array<i32>} : memref<2x8x256xf32, #tpu.memory_space<vmem>>, vector<1x8x256xf32>,
    return
  }
  func.func @transform_0(%arg0: i32, %arg1: i32, %arg2: i32) -> (i32, i32, i32) {
    %c0_i32 = arith.constant 0 : i32
    %c0_i32_0 = arith.constant 0 : i32
    return %arg0, %c0_i32, %arg1 : i32, i32, i32
  }
  func.func @transform_1(%arg0: i32, %arg1: i32, %arg2: i32) -> (i32, i32, i32) {
    %c0_i32 = arith.constant 0 : i32
    %c0_i32_0 = arith.constant 0 : i32
    return %arg0, %c0_i32, %arg1 : i32, i32, i32
  }
  func.func @transform_2(%arg0: i32, %arg1: i32, %arg2: i32) -> (i32, i32, i32) {
    %c0_i32 = arith.constant 0 : i32
    %c0_i32_0 = arith.constant 0 : i32
    return %c0_i32, %arg2, %arg1 : i32, i32, i32
  }
  func.func @transform_3(%arg0: i32, %arg1: i32, %arg2: i32) -> (i32, i32, i32) {
    %c0_i32 = arith.constant 0 : i32
    %c0_i32_0 = arith.constant 0 : i32
    return %c0_i32, %arg2, %arg1 : i32, i32, i32
  }
  func.func @transform_4(%arg0: i32, %arg1: i32, %arg2: i32) -> (i32, i32, i32) {
    %c0_i32 = arith.constant 0 : i32
    return %arg0, %arg2, %arg1 : i32, i32, i32
  }
  func.func @transform_5(%arg0: i32, %arg1: i32, %arg2: i32) -> (i32, i32, i32) {
    %c0_i32 = arith.constant 0 : i32
    return %arg0, %arg2, %arg1 : i32, i32, i32
  }
}

module attributes {stable_mosaic.version = 11 : i64} {
  func.func @_conv_add_gelu_small_kernel(%arg0: i32, %arg1: i32, %arg2: memref<1x4x512xf32, #tpu.memory_space<vmem>>, %arg3: memref<1x8x512xf32, #tpu.memory_space<vmem>>, %arg4: memref<8x4xf32, #tpu.memory_space<smem>>, %arg5: memref<8xf32, #tpu.memory_space<smem>>, %arg6: memref<1x8x512xf32, #tpu.memory_space<vmem>>) attributes {dimension_semantics = [#tpu.dimension_semantics<parallel>, #tpu.dimension_semantics<parallel>], iteration_bounds = array<i64: 2, 1>, scalar_prefetch = 0 : i64, scratch_operands = 0 : i64, tpu.core_type = #tpu.core_type<tc>, window_params = [{transform_indices = @transform_0, window_bounds = array<i64: 1, 4, 512>}, {transform_indices = @transform_1, window_bounds = array<i64: 1, 8, 512>}, {transform_indices = @transform_2, window_bounds = array<i64: 8, 4>}, {transform_indices = @transform_3, window_bounds = array<i64: 8>}, {transform_indices = @transform_4, window_bounds = array<i64: 1, 8, 512>}]} {
    %c0 = arith.constant 0 : index
    %c0_0 = arith.constant 0 : index
    %c0_1 = arith.constant 0 : index
    %0 = vector.load %arg3[%c0, %c0_0, %c0_1] : memref<1x8x512xf32, #tpu.memory_space<vmem>>, vector<1x1x512xf32>
    %1 = vector.shape_cast %0 : vector<1x1x512xf32> to vector<1x512xf32>
    %c0_2 = arith.constant 0 : index
    %2 = memref.load %arg5[%c0_2] : memref<8xf32, #tpu.memory_space<smem>>
    %3 = vector.broadcast %2 : f32 to vector<1x512xf32>
    %4 = arith.addf %1, %3 : vector<1x512xf32>
    %c0_3 = arith.constant 0 : index
    %c0_4 = arith.constant 0 : index
    %5 = memref.load %arg4[%c0_3, %c0_4] : memref<8x4xf32, #tpu.memory_space<smem>>
    %c0_5 = arith.constant 0 : index
    %c0_6 = arith.constant 0 : index
    %c0_7 = arith.constant 0 : index
    %6 = vector.load %arg2[%c0_5, %c0_6, %c0_7] : memref<1x4x512xf32, #tpu.memory_space<vmem>>, vector<1x1x512xf32>
    %7 = vector.shape_cast %6 : vector<1x1x512xf32> to vector<1x512xf32>
    %8 = vector.broadcast %5 : f32 to vector<1x512xf32>
    %9 = arith.mulf %8, %7 : vector<1x512xf32>
    %10 = arith.addf %4, %9 : vector<1x512xf32>
    %c0_8 = arith.constant 0 : index
    %c1 = arith.constant 1 : index
    %11 = memref.load %arg4[%c0_8, %c1] : memref<8x4xf32, #tpu.memory_space<smem>>
    %c0_9 = arith.constant 0 : index
    %c1_10 = arith.constant 1 : index
    %c0_11 = arith.constant 0 : index
    %12 = vector.load %arg2[%c0_9, %c1_10, %c0_11] : memref<1x4x512xf32, #tpu.memory_space<vmem>>, vector<1x1x512xf32>
    %13 = vector.shape_cast %12 : vector<1x1x512xf32> to vector<1x512xf32>
    %14 = vector.broadcast %11 : f32 to vector<1x512xf32>
    %15 = arith.mulf %14, %13 : vector<1x512xf32>
    %16 = arith.addf %10, %15 : vector<1x512xf32>
    %c0_12 = arith.constant 0 : index
    %c2 = arith.constant 2 : index
    %17 = memref.load %arg4[%c0_12, %c2] : memref<8x4xf32, #tpu.memory_space<smem>>
    %c0_13 = arith.constant 0 : index
    %c2_14 = arith.constant 2 : index
    %c0_15 = arith.constant 0 : index
    %18 = vector.load %arg2[%c0_13, %c2_14, %c0_15] : memref<1x4x512xf32, #tpu.memory_space<vmem>>, vector<1x1x512xf32>
    %19 = vector.shape_cast %18 : vector<1x1x512xf32> to vector<1x512xf32>
    %20 = vector.broadcast %17 : f32 to vector<1x512xf32>
    %21 = arith.mulf %20, %19 : vector<1x512xf32>
    %22 = arith.addf %16, %21 : vector<1x512xf32>
    %c0_16 = arith.constant 0 : index
    %c3 = arith.constant 3 : index
    %23 = memref.load %arg4[%c0_16, %c3] : memref<8x4xf32, #tpu.memory_space<smem>>
    %c0_17 = arith.constant 0 : index
    %c3_18 = arith.constant 3 : index
    %c0_19 = arith.constant 0 : index
    %24 = vector.load %arg2[%c0_17, %c3_18, %c0_19] : memref<1x4x512xf32, #tpu.memory_space<vmem>>, vector<1x1x512xf32>
    %25 = vector.shape_cast %24 : vector<1x1x512xf32> to vector<1x512xf32>
    %26 = vector.broadcast %23 : f32 to vector<1x512xf32>
    %27 = arith.mulf %26, %25 : vector<1x512xf32>
    %28 = arith.addf %22, %27 : vector<1x512xf32>
    %cst = arith.constant 5.000000e-01 : f32
    %29 = vector.broadcast %cst : f32 to vector<1x512xf32>
    %30 = arith.mulf %29, %28 : vector<1x512xf32>
    %cst_20 = arith.constant 0.707106769 : f32
    %31 = vector.broadcast %cst_20 : f32 to vector<1x512xf32>
    %32 = arith.mulf %28, %31 : vector<1x512xf32>
    %33 = math.erf %32 : vector<1x512xf32>
    %cst_21 = arith.constant 1.000000e+00 : f32
    %34 = vector.broadcast %cst_21 : f32 to vector<1x512xf32>
    %35 = arith.addf %34, %33 : vector<1x512xf32>
    %36 = arith.mulf %30, %35 : vector<1x512xf32>
    %c0_22 = arith.constant 0 : index
    %c0_23 = arith.constant 0 : index
    %c0_24 = arith.constant 0 : index
    %37 = vector.load %arg6[%c0_22, %c0_23, %c0_24] : memref<1x8x512xf32, #tpu.memory_space<vmem>>, vector<1x1x512xf32>
    %38 = vector.shape_cast %37 : vector<1x1x512xf32> to vector<1x512xf32>
    %39 = vector.shape_cast %36 : vector<1x512xf32> to vector<1x1x512xf32>
    tpu.vector_store %arg6[%c0_22, %c0_23, %c0_24], %39 {strides = array<i32>} : memref<1x8x512xf32, #tpu.memory_space<vmem>>, vector<1x1x512xf32>,
    %c0_25 = arith.constant 0 : index
    %c1_26 = arith.constant 1 : index
    %c0_27 = arith.constant 0 : index
    %40 = vector.load %arg3[%c0_25, %c1_26, %c0_27] : memref<1x8x512xf32, #tpu.memory_space<vmem>>, vector<1x1x512xf32>
    %41 = vector.shape_cast %40 : vector<1x1x512xf32> to vector<1x512xf32>
    %c1_28 = arith.constant 1 : index
    %42 = memref.load %arg5[%c1_28] : memref<8xf32, #tpu.memory_space<smem>>
    %43 = vector.broadcast %42 : f32 to vector<1x512xf32>
    %44 = arith.addf %41, %43 : vector<1x512xf32>
    %c1_29 = arith.constant 1 : index
    %c0_30 = arith.constant 0 : index
    %45 = memref.load %arg4[%c1_29, %c0_30] : memref<8x4xf32, #tpu.memory_space<smem>>
    %c0_31 = arith.constant 0 : index
    %c0_32 = arith.constant 0 : index
    %c0_33 = arith.constant 0 : index
    %46 = vector.load %arg2[%c0_31, %c0_32, %c0_33] : memref<1x4x512xf32, #tpu.memory_space<vmem>>, vector<1x1x512xf32>
    %47 = vector.shape_cast %46 : vector<1x1x512xf32> to vector<1x512xf32>
    %48 = vector.broadcast %45 : f32 to vector<1x512xf32>
    %49 = arith.mulf %48, %47 : vector<1x512xf32>
    %50 = arith.addf %44, %49 : vector<1x512xf32>
    %c1_34 = arith.constant 1 : index
    %c1_35 = arith.constant 1 : index
    %51 = memref.load %arg4[%c1_34, %c1_35] : memref<8x4xf32, #tpu.memory_space<smem>>
    %c0_36 = arith.constant 0 : index
    %c1_37 = arith.constant 1 : index
    %c0_38 = arith.constant 0 : index
    %52 = vector.load %arg2[%c0_36, %c1_37, %c0_38] : memref<1x4x512xf32, #tpu.memory_space<vmem>>, vector<1x1x512xf32>
    %53 = vector.shape_cast %52 : vector<1x1x512xf32> to vector<1x512xf32>
    %54 = vector.broadcast %51 : f32 to vector<1x512xf32>
    %55 = arith.mulf %54, %53 : vector<1x512xf32>
    %56 = arith.addf %50, %55 : vector<1x512xf32>
    %c1_39 = arith.constant 1 : index
    %c2_40 = arith.constant 2 : index
    %57 = memref.load %arg4[%c1_39, %c2_40] : memref<8x4xf32, #tpu.memory_space<smem>>
    %c0_41 = arith.constant 0 : index
    %c2_42 = arith.constant 2 : index
    %c0_43 = arith.constant 0 : index
    %58 = vector.load %arg2[%c0_41, %c2_42, %c0_43] : memref<1x4x512xf32, #tpu.memory_space<vmem>>, vector<1x1x512xf32>
    %59 = vector.shape_cast %58 : vector<1x1x512xf32> to vector<1x512xf32>
    %60 = vector.broadcast %57 : f32 to vector<1x512xf32>
    %61 = arith.mulf %60, %59 : vector<1x512xf32>
    %62 = arith.addf %56, %61 : vector<1x512xf32>
    %c1_44 = arith.constant 1 : index
    %c3_45 = arith.constant 3 : index
    %63 = memref.load %arg4[%c1_44, %c3_45] : memref<8x4xf32, #tpu.memory_space<smem>>
    %c0_46 = arith.constant 0 : index
    %c3_47 = arith.constant 3 : index
    %c0_48 = arith.constant 0 : index
    %64 = vector.load %arg2[%c0_46, %c3_47, %c0_48] : memref<1x4x512xf32, #tpu.memory_space<vmem>>, vector<1x1x512xf32>
    %65 = vector.shape_cast %64 : vector<1x1x512xf32> to vector<1x512xf32>
    %66 = vector.broadcast %63 : f32 to vector<1x512xf32>
    %67 = arith.mulf %66, %65 : vector<1x512xf32>
    %68 = arith.addf %62, %67 : vector<1x512xf32>
    %cst_49 = arith.constant 5.000000e-01 : f32
    %69 = vector.broadcast %cst_49 : f32 to vector<1x512xf32>
    %70 = arith.mulf %69, %68 : vector<1x512xf32>
    %cst_50 = arith.constant 0.707106769 : f32
    %71 = vector.broadcast %cst_50 : f32 to vector<1x512xf32>
    %72 = arith.mulf %68, %71 : vector<1x512xf32>
    %73 = math.erf %72 : vector<1x512xf32>
    %cst_51 = arith.constant 1.000000e+00 : f32
    %74 = vector.broadcast %cst_51 : f32 to vector<1x512xf32>
    %75 = arith.addf %74, %73 : vector<1x512xf32>
    %76 = arith.mulf %70, %75 : vector<1x512xf32>
    %c0_52 = arith.constant 0 : index
    %c1_53 = arith.constant 1 : index
    %c0_54 = arith.constant 0 : index
    %77 = vector.load %arg6[%c0_52, %c1_53, %c0_54] : memref<1x8x512xf32, #tpu.memory_space<vmem>>, vector<1x1x512xf32>
    %78 = vector.shape_cast %77 : vector<1x1x512xf32> to vector<1x512xf32>
    %79 = vector.shape_cast %76 : vector<1x512xf32> to vector<1x1x512xf32>
    tpu.vector_store %arg6[%c0_52, %c1_53, %c0_54], %79 {strides = array<i32>} : memref<1x8x512xf32, #tpu.memory_space<vmem>>, vector<1x1x512xf32>,
    %c0_55 = arith.constant 0 : index
    %c2_56 = arith.constant 2 : index
    %c0_57 = arith.constant 0 : index
    %80 = vector.load %arg3[%c0_55, %c2_56, %c0_57] : memref<1x8x512xf32, #tpu.memory_space<vmem>>, vector<1x1x512xf32>
    %81 = vector.shape_cast %80 : vector<1x1x512xf32> to vector<1x512xf32>
    %c2_58 = arith.constant 2 : index
    %82 = memref.load %arg5[%c2_58] : memref<8xf32, #tpu.memory_space<smem>>
    %83 = vector.broadcast %82 : f32 to vector<1x512xf32>
    %84 = arith.addf %81, %83 : vector<1x512xf32>
    %c2_59 = arith.constant 2 : index
    %c0_60 = arith.constant 0 : index
    %85 = memref.load %arg4[%c2_59, %c0_60] : memref<8x4xf32, #tpu.memory_space<smem>>
    %c0_61 = arith.constant 0 : index
    %c0_62 = arith.constant 0 : index
    %c0_63 = arith.constant 0 : index
    %86 = vector.load %arg2[%c0_61, %c0_62, %c0_63] : memref<1x4x512xf32, #tpu.memory_space<vmem>>, vector<1x1x512xf32>
    %87 = vector.shape_cast %86 : vector<1x1x512xf32> to vector<1x512xf32>
    %88 = vector.broadcast %85 : f32 to vector<1x512xf32>
    %89 = arith.mulf %88, %87 : vector<1x512xf32>
    %90 = arith.addf %84, %89 : vector<1x512xf32>
    %c2_64 = arith.constant 2 : index
    %c1_65 = arith.constant 1 : index
    %91 = memref.load %arg4[%c2_64, %c1_65] : memref<8x4xf32, #tpu.memory_space<smem>>
    %c0_66 = arith.constant 0 : index
    %c1_67 = arith.constant 1 : index
    %c0_68 = arith.constant 0 : index
    %92 = vector.load %arg2[%c0_66, %c1_67, %c0_68] : memref<1x4x512xf32, #tpu.memory_space<vmem>>, vector<1x1x512xf32>
    %93 = vector.shape_cast %92 : vector<1x1x512xf32> to vector<1x512xf32>
    %94 = vector.broadcast %91 : f32 to vector<1x512xf32>
    %95 = arith.mulf %94, %93 : vector<1x512xf32>
    %96 = arith.addf %90, %95 : vector<1x512xf32>
    %c2_69 = arith.constant 2 : index
    %c2_70 = arith.constant 2 : index
    %97 = memref.load %arg4[%c2_69, %c2_70] : memref<8x4xf32, #tpu.memory_space<smem>>
    %c0_71 = arith.constant 0 : index
    %c2_72 = arith.constant 2 : index
    %c0_73 = arith.constant 0 : index
    %98 = vector.load %arg2[%c0_71, %c2_72, %c0_73] : memref<1x4x512xf32, #tpu.memory_space<vmem>>, vector<1x1x512xf32>
    %99 = vector.shape_cast %98 : vector<1x1x512xf32> to vector<1x512xf32>
    %100 = vector.broadcast %97 : f32 to vector<1x512xf32>
    %101 = arith.mulf %100, %99 : vector<1x512xf32>
    %102 = arith.addf %96, %101 : vector<1x512xf32>
    %c2_74 = arith.constant 2 : index
    %c3_75 = arith.constant 3 : index
    %103 = memref.load %arg4[%c2_74, %c3_75] : memref<8x4xf32, #tpu.memory_space<smem>>
    %c0_76 = arith.constant 0 : index
    %c3_77 = arith.constant 3 : index
    %c0_78 = arith.constant 0 : index
    %104 = vector.load %arg2[%c0_76, %c3_77, %c0_78] : memref<1x4x512xf32, #tpu.memory_space<vmem>>, vector<1x1x512xf32>
    %105 = vector.shape_cast %104 : vector<1x1x512xf32> to vector<1x512xf32>
    %106 = vector.broadcast %103 : f32 to vector<1x512xf32>
    %107 = arith.mulf %106, %105 : vector<1x512xf32>
    %108 = arith.addf %102, %107 : vector<1x512xf32>
    %cst_79 = arith.constant 5.000000e-01 : f32
    %109 = vector.broadcast %cst_79 : f32 to vector<1x512xf32>
    %110 = arith.mulf %109, %108 : vector<1x512xf32>
    %cst_80 = arith.constant 0.707106769 : f32
    %111 = vector.broadcast %cst_80 : f32 to vector<1x512xf32>
    %112 = arith.mulf %108, %111 : vector<1x512xf32>
    %113 = math.erf %112 : vector<1x512xf32>
    %cst_81 = arith.constant 1.000000e+00 : f32
    %114 = vector.broadcast %cst_81 : f32 to vector<1x512xf32>
    %115 = arith.addf %114, %113 : vector<1x512xf32>
    %116 = arith.mulf %110, %115 : vector<1x512xf32>
    %c0_82 = arith.constant 0 : index
    %c2_83 = arith.constant 2 : index
    %c0_84 = arith.constant 0 : index
    %117 = vector.load %arg6[%c0_82, %c2_83, %c0_84] : memref<1x8x512xf32, #tpu.memory_space<vmem>>, vector<1x1x512xf32>
    %118 = vector.shape_cast %117 : vector<1x1x512xf32> to vector<1x512xf32>
    %119 = vector.shape_cast %116 : vector<1x512xf32> to vector<1x1x512xf32>
    tpu.vector_store %arg6[%c0_82, %c2_83, %c0_84], %119 {strides = array<i32>} : memref<1x8x512xf32, #tpu.memory_space<vmem>>, vector<1x1x512xf32>,
    %c0_85 = arith.constant 0 : index
    %c3_86 = arith.constant 3 : index
    %c0_87 = arith.constant 0 : index
    %120 = vector.load %arg3[%c0_85, %c3_86, %c0_87] : memref<1x8x512xf32, #tpu.memory_space<vmem>>, vector<1x1x512xf32>
    %121 = vector.shape_cast %120 : vector<1x1x512xf32> to vector<1x512xf32>
    %c3_88 = arith.constant 3 : index
    %122 = memref.load %arg5[%c3_88] : memref<8xf32, #tpu.memory_space<smem>>
    %123 = vector.broadcast %122 : f32 to vector<1x512xf32>
    %124 = arith.addf %121, %123 : vector<1x512xf32>
    %c3_89 = arith.constant 3 : index
    %c0_90 = arith.constant 0 : index
    %125 = memref.load %arg4[%c3_89, %c0_90] : memref<8x4xf32, #tpu.memory_space<smem>>
    %c0_91 = arith.constant 0 : index
    %c0_92 = arith.constant 0 : index
    %c0_93 = arith.constant 0 : index
    %126 = vector.load %arg2[%c0_91, %c0_92, %c0_93] : memref<1x4x512xf32, #tpu.memory_space<vmem>>, vector<1x1x512xf32>
    %127 = vector.shape_cast %126 : vector<1x1x512xf32> to vector<1x512xf32>
    %128 = vector.broadcast %125 : f32 to vector<1x512xf32>
    %129 = arith.mulf %128, %127 : vector<1x512xf32>
    %130 = arith.addf %124, %129 : vector<1x512xf32>
    %c3_94 = arith.constant 3 : index
    %c1_95 = arith.constant 1 : index
    %131 = memref.load %arg4[%c3_94, %c1_95] : memref<8x4xf32, #tpu.memory_space<smem>>
    %c0_96 = arith.constant 0 : index
    %c1_97 = arith.constant 1 : index
    %c0_98 = arith.constant 0 : index
    %132 = vector.load %arg2[%c0_96, %c1_97, %c0_98] : memref<1x4x512xf32, #tpu.memory_space<vmem>>, vector<1x1x512xf32>
    %133 = vector.shape_cast %132 : vector<1x1x512xf32> to vector<1x512xf32>
    %134 = vector.broadcast %131 : f32 to vector<1x512xf32>
    %135 = arith.mulf %134, %133 : vector<1x512xf32>
    %136 = arith.addf %130, %135 : vector<1x512xf32>
    %c3_99 = arith.constant 3 : index
    %c2_100 = arith.constant 2 : index
    %137 = memref.load %arg4[%c3_99, %c2_100] : memref<8x4xf32, #tpu.memory_space<smem>>
    %c0_101 = arith.constant 0 : index
    %c2_102 = arith.constant 2 : index
    %c0_103 = arith.constant 0 : index
    %138 = vector.load %arg2[%c0_101, %c2_102, %c0_103] : memref<1x4x512xf32, #tpu.memory_space<vmem>>, vector<1x1x512xf32>
    %139 = vector.shape_cast %138 : vector<1x1x512xf32> to vector<1x512xf32>
    %140 = vector.broadcast %137 : f32 to vector<1x512xf32>
    %141 = arith.mulf %140, %139 : vector<1x512xf32>
    %142 = arith.addf %136, %141 : vector<1x512xf32>
    %c3_104 = arith.constant 3 : index
    %c3_105 = arith.constant 3 : index
    %143 = memref.load %arg4[%c3_104, %c3_105] : memref<8x4xf32, #tpu.memory_space<smem>>
    %c0_106 = arith.constant 0 : index
    %c3_107 = arith.constant 3 : index
    %c0_108 = arith.constant 0 : index
    %144 = vector.load %arg2[%c0_106, %c3_107, %c0_108] : memref<1x4x512xf32, #tpu.memory_space<vmem>>, vector<1x1x512xf32>
    %145 = vector.shape_cast %144 : vector<1x1x512xf32> to vector<1x512xf32>
    %146 = vector.broadcast %143 : f32 to vector<1x512xf32>
    %147 = arith.mulf %146, %145 : vector<1x512xf32>
    %148 = arith.addf %142, %147 : vector<1x512xf32>
    %cst_109 = arith.constant 5.000000e-01 : f32
    %149 = vector.broadcast %cst_109 : f32 to vector<1x512xf32>
    %150 = arith.mulf %149, %148 : vector<1x512xf32>
    %cst_110 = arith.constant 0.707106769 : f32
    %151 = vector.broadcast %cst_110 : f32 to vector<1x512xf32>
    %152 = arith.mulf %148, %151 : vector<1x512xf32>
    %153 = math.erf %152 : vector<1x512xf32>
    %cst_111 = arith.constant 1.000000e+00 : f32
    %154 = vector.broadcast %cst_111 : f32 to vector<1x512xf32>
    %155 = arith.addf %154, %153 : vector<1x512xf32>
    %156 = arith.mulf %150, %155 : vector<1x512xf32>
    %c0_112 = arith.constant 0 : index
    %c3_113 = arith.constant 3 : index
    %c0_114 = arith.constant 0 : index
    %157 = vector.load %arg6[%c0_112, %c3_113, %c0_114] : memref<1x8x512xf32, #tpu.memory_space<vmem>>, vector<1x1x512xf32>
    %158 = vector.shape_cast %157 : vector<1x1x512xf32> to vector<1x512xf32>
    %159 = vector.shape_cast %156 : vector<1x512xf32> to vector<1x1x512xf32>
    tpu.vector_store %arg6[%c0_112, %c3_113, %c0_114], %159 {strides = array<i32>} : memref<1x8x512xf32, #tpu.memory_space<vmem>>, vector<1x1x512xf32>,
    %c0_115 = arith.constant 0 : index
    %c4 = arith.constant 4 : index
    %c0_116 = arith.constant 0 : index
    %160 = vector.load %arg3[%c0_115, %c4, %c0_116] : memref<1x8x512xf32, #tpu.memory_space<vmem>>, vector<1x1x512xf32>
    %161 = vector.shape_cast %160 : vector<1x1x512xf32> to vector<1x512xf32>
    %c4_117 = arith.constant 4 : index
    %162 = memref.load %arg5[%c4_117] : memref<8xf32, #tpu.memory_space<smem>>
    %163 = vector.broadcast %162 : f32 to vector<1x512xf32>
    %164 = arith.addf %161, %163 : vector<1x512xf32>
    %c4_118 = arith.constant 4 : index
    %c0_119 = arith.constant 0 : index
    %165 = memref.load %arg4[%c4_118, %c0_119] : memref<8x4xf32, #tpu.memory_space<smem>>
    %c0_120 = arith.constant 0 : index
    %c0_121 = arith.constant 0 : index
    %c0_122 = arith.constant 0 : index
    %166 = vector.load %arg2[%c0_120, %c0_121, %c0_122] : memref<1x4x512xf32, #tpu.memory_space<vmem>>, vector<1x1x512xf32>
    %167 = vector.shape_cast %166 : vector<1x1x512xf32> to vector<1x512xf32>
    %168 = vector.broadcast %165 : f32 to vector<1x512xf32>
    %169 = arith.mulf %168, %167 : vector<1x512xf32>
    %170 = arith.addf %164, %169 : vector<1x512xf32>
    %c4_123 = arith.constant 4 : index
    %c1_124 = arith.constant 1 : index
    %171 = memref.load %arg4[%c4_123, %c1_124] : memref<8x4xf32, #tpu.memory_space<smem>>
    %c0_125 = arith.constant 0 : index
    %c1_126 = arith.constant 1 : index
    %c0_127 = arith.constant 0 : index
    %172 = vector.load %arg2[%c0_125, %c1_126, %c0_127] : memref<1x4x512xf32, #tpu.memory_space<vmem>>, vector<1x1x512xf32>
    %173 = vector.shape_cast %172 : vector<1x1x512xf32> to vector<1x512xf32>
    %174 = vector.broadcast %171 : f32 to vector<1x512xf32>
    %175 = arith.mulf %174, %173 : vector<1x512xf32>
    %176 = arith.addf %170, %175 : vector<1x512xf32>
    %c4_128 = arith.constant 4 : index
    %c2_129 = arith.constant 2 : index
    %177 = memref.load %arg4[%c4_128, %c2_129] : memref<8x4xf32, #tpu.memory_space<smem>>
    %c0_130 = arith.constant 0 : index
    %c2_131 = arith.constant 2 : index
    %c0_132 = arith.constant 0 : index
    %178 = vector.load %arg2[%c0_130, %c2_131, %c0_132] : memref<1x4x512xf32, #tpu.memory_space<vmem>>, vector<1x1x512xf32>
    %179 = vector.shape_cast %178 : vector<1x1x512xf32> to vector<1x512xf32>
    %180 = vector.broadcast %177 : f32 to vector<1x512xf32>
    %181 = arith.mulf %180, %179 : vector<1x512xf32>
    %182 = arith.addf %176, %181 : vector<1x512xf32>
    %c4_133 = arith.constant 4 : index
    %c3_134 = arith.constant 3 : index
    %183 = memref.load %arg4[%c4_133, %c3_134] : memref<8x4xf32, #tpu.memory_space<smem>>
    %c0_135 = arith.constant 0 : index
    %c3_136 = arith.constant 3 : index
    %c0_137 = arith.constant 0 : index
    %184 = vector.load %arg2[%c0_135, %c3_136, %c0_137] : memref<1x4x512xf32, #tpu.memory_space<vmem>>, vector<1x1x512xf32>
    %185 = vector.shape_cast %184 : vector<1x1x512xf32> to vector<1x512xf32>
    %186 = vector.broadcast %183 : f32 to vector<1x512xf32>
    %187 = arith.mulf %186, %185 : vector<1x512xf32>
    %188 = arith.addf %182, %187 : vector<1x512xf32>
    %cst_138 = arith.constant 5.000000e-01 : f32
    %189 = vector.broadcast %cst_138 : f32 to vector<1x512xf32>
    %190 = arith.mulf %189, %188 : vector<1x512xf32>
    %cst_139 = arith.constant 0.707106769 : f32
    %191 = vector.broadcast %cst_139 : f32 to vector<1x512xf32>
    %192 = arith.mulf %188, %191 : vector<1x512xf32>
    %193 = math.erf %192 : vector<1x512xf32>
    %cst_140 = arith.constant 1.000000e+00 : f32
    %194 = vector.broadcast %cst_140 : f32 to vector<1x512xf32>
    %195 = arith.addf %194, %193 : vector<1x512xf32>
    %196 = arith.mulf %190, %195 : vector<1x512xf32>
    %c0_141 = arith.constant 0 : index
    %c4_142 = arith.constant 4 : index
    %c0_143 = arith.constant 0 : index
    %197 = vector.load %arg6[%c0_141, %c4_142, %c0_143] : memref<1x8x512xf32, #tpu.memory_space<vmem>>, vector<1x1x512xf32>
    %198 = vector.shape_cast %197 : vector<1x1x512xf32> to vector<1x512xf32>
    %199 = vector.shape_cast %196 : vector<1x512xf32> to vector<1x1x512xf32>
    tpu.vector_store %arg6[%c0_141, %c4_142, %c0_143], %199 {strides = array<i32>} : memref<1x8x512xf32, #tpu.memory_space<vmem>>, vector<1x1x512xf32>,
    %c0_144 = arith.constant 0 : index
    %c5 = arith.constant 5 : index
    %c0_145 = arith.constant 0 : index
    %200 = vector.load %arg3[%c0_144, %c5, %c0_145] : memref<1x8x512xf32, #tpu.memory_space<vmem>>, vector<1x1x512xf32>
    %201 = vector.shape_cast %200 : vector<1x1x512xf32> to vector<1x512xf32>
    %c5_146 = arith.constant 5 : index
    %202 = memref.load %arg5[%c5_146] : memref<8xf32, #tpu.memory_space<smem>>
    %203 = vector.broadcast %202 : f32 to vector<1x512xf32>
    %204 = arith.addf %201, %203 : vector<1x512xf32>
    %c5_147 = arith.constant 5 : index
    %c0_148 = arith.constant 0 : index
    %205 = memref.load %arg4[%c5_147, %c0_148] : memref<8x4xf32, #tpu.memory_space<smem>>
    %c0_149 = arith.constant 0 : index
    %c0_150 = arith.constant 0 : index
    %c0_151 = arith.constant 0 : index
    %206 = vector.load %arg2[%c0_149, %c0_150, %c0_151] : memref<1x4x512xf32, #tpu.memory_space<vmem>>, vector<1x1x512xf32>
    %207 = vector.shape_cast %206 : vector<1x1x512xf32> to vector<1x512xf32>
    %208 = vector.broadcast %205 : f32 to vector<1x512xf32>
    %209 = arith.mulf %208, %207 : vector<1x512xf32>
    %210 = arith.addf %204, %209 : vector<1x512xf32>
    %c5_152 = arith.constant 5 : index
    %c1_153 = arith.constant 1 : index
    %211 = memref.load %arg4[%c5_152, %c1_153] : memref<8x4xf32, #tpu.memory_space<smem>>
    %c0_154 = arith.constant 0 : index
    %c1_155 = arith.constant 1 : index
    %c0_156 = arith.constant 0 : index
    %212 = vector.load %arg2[%c0_154, %c1_155, %c0_156] : memref<1x4x512xf32, #tpu.memory_space<vmem>>, vector<1x1x512xf32>
    %213 = vector.shape_cast %212 : vector<1x1x512xf32> to vector<1x512xf32>
    %214 = vector.broadcast %211 : f32 to vector<1x512xf32>
    %215 = arith.mulf %214, %213 : vector<1x512xf32>
    %216 = arith.addf %210, %215 : vector<1x512xf32>
    %c5_157 = arith.constant 5 : index
    %c2_158 = arith.constant 2 : index
    %217 = memref.load %arg4[%c5_157, %c2_158] : memref<8x4xf32, #tpu.memory_space<smem>>
    %c0_159 = arith.constant 0 : index
    %c2_160 = arith.constant 2 : index
    %c0_161 = arith.constant 0 : index
    %218 = vector.load %arg2[%c0_159, %c2_160, %c0_161] : memref<1x4x512xf32, #tpu.memory_space<vmem>>, vector<1x1x512xf32>
    %219 = vector.shape_cast %218 : vector<1x1x512xf32> to vector<1x512xf32>
    %220 = vector.broadcast %217 : f32 to vector<1x512xf32>
    %221 = arith.mulf %220, %219 : vector<1x512xf32>
    %222 = arith.addf %216, %221 : vector<1x512xf32>
    %c5_162 = arith.constant 5 : index
    %c3_163 = arith.constant 3 : index
    %223 = memref.load %arg4[%c5_162, %c3_163] : memref<8x4xf32, #tpu.memory_space<smem>>
    %c0_164 = arith.constant 0 : index
    %c3_165 = arith.constant 3 : index
    %c0_166 = arith.constant 0 : index
    %224 = vector.load %arg2[%c0_164, %c3_165, %c0_166] : memref<1x4x512xf32, #tpu.memory_space<vmem>>, vector<1x1x512xf32>
    %225 = vector.shape_cast %224 : vector<1x1x512xf32> to vector<1x512xf32>
    %226 = vector.broadcast %223 : f32 to vector<1x512xf32>
    %227 = arith.mulf %226, %225 : vector<1x512xf32>
    %228 = arith.addf %222, %227 : vector<1x512xf32>
    %cst_167 = arith.constant 5.000000e-01 : f32
    %229 = vector.broadcast %cst_167 : f32 to vector<1x512xf32>
    %230 = arith.mulf %229, %228 : vector<1x512xf32>
    %cst_168 = arith.constant 0.707106769 : f32
    %231 = vector.broadcast %cst_168 : f32 to vector<1x512xf32>
    %232 = arith.mulf %228, %231 : vector<1x512xf32>
    %233 = math.erf %232 : vector<1x512xf32>
    %cst_169 = arith.constant 1.000000e+00 : f32
    %234 = vector.broadcast %cst_169 : f32 to vector<1x512xf32>
    %235 = arith.addf %234, %233 : vector<1x512xf32>
    %236 = arith.mulf %230, %235 : vector<1x512xf32>
    %c0_170 = arith.constant 0 : index
    %c5_171 = arith.constant 5 : index
    %c0_172 = arith.constant 0 : index
    %237 = vector.load %arg6[%c0_170, %c5_171, %c0_172] : memref<1x8x512xf32, #tpu.memory_space<vmem>>, vector<1x1x512xf32>
    %238 = vector.shape_cast %237 : vector<1x1x512xf32> to vector<1x512xf32>
    %239 = vector.shape_cast %236 : vector<1x512xf32> to vector<1x1x512xf32>
    tpu.vector_store %arg6[%c0_170, %c5_171, %c0_172], %239 {strides = array<i32>} : memref<1x8x512xf32, #tpu.memory_space<vmem>>, vector<1x1x512xf32>,
    %c0_173 = arith.constant 0 : index
    %c6 = arith.constant 6 : index
    %c0_174 = arith.constant 0 : index
    %240 = vector.load %arg3[%c0_173, %c6, %c0_174] : memref<1x8x512xf32, #tpu.memory_space<vmem>>, vector<1x1x512xf32>
    %241 = vector.shape_cast %240 : vector<1x1x512xf32> to vector<1x512xf32>
    %c6_175 = arith.constant 6 : index
    %242 = memref.load %arg5[%c6_175] : memref<8xf32, #tpu.memory_space<smem>>
    %243 = vector.broadcast %242 : f32 to vector<1x512xf32>
    %244 = arith.addf %241, %243 : vector<1x512xf32>
    %c6_176 = arith.constant 6 : index
    %c0_177 = arith.constant 0 : index
    %245 = memref.load %arg4[%c6_176, %c0_177] : memref<8x4xf32, #tpu.memory_space<smem>>
    %c0_178 = arith.constant 0 : index
    %c0_179 = arith.constant 0 : index
    %c0_180 = arith.constant 0 : index
    %246 = vector.load %arg2[%c0_178, %c0_179, %c0_180] : memref<1x4x512xf32, #tpu.memory_space<vmem>>, vector<1x1x512xf32>
    %247 = vector.shape_cast %246 : vector<1x1x512xf32> to vector<1x512xf32>
    %248 = vector.broadcast %245 : f32 to vector<1x512xf32>
    %249 = arith.mulf %248, %247 : vector<1x512xf32>
    %250 = arith.addf %244, %249 : vector<1x512xf32>
    %c6_181 = arith.constant 6 : index
    %c1_182 = arith.constant 1 : index
    %251 = memref.load %arg4[%c6_181, %c1_182] : memref<8x4xf32, #tpu.memory_space<smem>>
    %c0_183 = arith.constant 0 : index
    %c1_184 = arith.constant 1 : index
    %c0_185 = arith.constant 0 : index
    %252 = vector.load %arg2[%c0_183, %c1_184, %c0_185] : memref<1x4x512xf32, #tpu.memory_space<vmem>>, vector<1x1x512xf32>
    %253 = vector.shape_cast %252 : vector<1x1x512xf32> to vector<1x512xf32>
    %254 = vector.broadcast %251 : f32 to vector<1x512xf32>
    %255 = arith.mulf %254, %253 : vector<1x512xf32>
    %256 = arith.addf %250, %255 : vector<1x512xf32>
    %c6_186 = arith.constant 6 : index
    %c2_187 = arith.constant 2 : index
    %257 = memref.load %arg4[%c6_186, %c2_187] : memref<8x4xf32, #tpu.memory_space<smem>>
    %c0_188 = arith.constant 0 : index
    %c2_189 = arith.constant 2 : index
    %c0_190 = arith.constant 0 : index
    %258 = vector.load %arg2[%c0_188, %c2_189, %c0_190] : memref<1x4x512xf32, #tpu.memory_space<vmem>>, vector<1x1x512xf32>
    %259 = vector.shape_cast %258 : vector<1x1x512xf32> to vector<1x512xf32>
    %260 = vector.broadcast %257 : f32 to vector<1x512xf32>
    %261 = arith.mulf %260, %259 : vector<1x512xf32>
    %262 = arith.addf %256, %261 : vector<1x512xf32>
    %c6_191 = arith.constant 6 : index
    %c3_192 = arith.constant 3 : index
    %263 = memref.load %arg4[%c6_191, %c3_192] : memref<8x4xf32, #tpu.memory_space<smem>>
    %c0_193 = arith.constant 0 : index
    %c3_194 = arith.constant 3 : index
    %c0_195 = arith.constant 0 : index
    %264 = vector.load %arg2[%c0_193, %c3_194, %c0_195] : memref<1x4x512xf32, #tpu.memory_space<vmem>>, vector<1x1x512xf32>
    %265 = vector.shape_cast %264 : vector<1x1x512xf32> to vector<1x512xf32>
    %266 = vector.broadcast %263 : f32 to vector<1x512xf32>
    %267 = arith.mulf %266, %265 : vector<1x512xf32>
    %268 = arith.addf %262, %267 : vector<1x512xf32>
    %cst_196 = arith.constant 5.000000e-01 : f32
    %269 = vector.broadcast %cst_196 : f32 to vector<1x512xf32>
    %270 = arith.mulf %269, %268 : vector<1x512xf32>
    %cst_197 = arith.constant 0.707106769 : f32
    %271 = vector.broadcast %cst_197 : f32 to vector<1x512xf32>
    %272 = arith.mulf %268, %271 : vector<1x512xf32>
    %273 = math.erf %272 : vector<1x512xf32>
    %cst_198 = arith.constant 1.000000e+00 : f32
    %274 = vector.broadcast %cst_198 : f32 to vector<1x512xf32>
    %275 = arith.addf %274, %273 : vector<1x512xf32>
    %276 = arith.mulf %270, %275 : vector<1x512xf32>
    %c0_199 = arith.constant 0 : index
    %c6_200 = arith.constant 6 : index
    %c0_201 = arith.constant 0 : index
    %277 = vector.load %arg6[%c0_199, %c6_200, %c0_201] : memref<1x8x512xf32, #tpu.memory_space<vmem>>, vector<1x1x512xf32>
    %278 = vector.shape_cast %277 : vector<1x1x512xf32> to vector<1x512xf32>
    %279 = vector.shape_cast %276 : vector<1x512xf32> to vector<1x1x512xf32>
    tpu.vector_store %arg6[%c0_199, %c6_200, %c0_201], %279 {strides = array<i32>} : memref<1x8x512xf32, #tpu.memory_space<vmem>>, vector<1x1x512xf32>,
    %c0_202 = arith.constant 0 : index
    %c7 = arith.constant 7 : index
    %c0_203 = arith.constant 0 : index
    %280 = vector.load %arg3[%c0_202, %c7, %c0_203] : memref<1x8x512xf32, #tpu.memory_space<vmem>>, vector<1x1x512xf32>
    %281 = vector.shape_cast %280 : vector<1x1x512xf32> to vector<1x512xf32>
    %c7_204 = arith.constant 7 : index
    %282 = memref.load %arg5[%c7_204] : memref<8xf32, #tpu.memory_space<smem>>
    %283 = vector.broadcast %282 : f32 to vector<1x512xf32>
    %284 = arith.addf %281, %283 : vector<1x512xf32>
    %c7_205 = arith.constant 7 : index
    %c0_206 = arith.constant 0 : index
    %285 = memref.load %arg4[%c7_205, %c0_206] : memref<8x4xf32, #tpu.memory_space<smem>>
    %c0_207 = arith.constant 0 : index
    %c0_208 = arith.constant 0 : index
    %c0_209 = arith.constant 0 : index
    %286 = vector.load %arg2[%c0_207, %c0_208, %c0_209] : memref<1x4x512xf32, #tpu.memory_space<vmem>>, vector<1x1x512xf32>
    %287 = vector.shape_cast %286 : vector<1x1x512xf32> to vector<1x512xf32>
    %288 = vector.broadcast %285 : f32 to vector<1x512xf32>
    %289 = arith.mulf %288, %287 : vector<1x512xf32>
    %290 = arith.addf %284, %289 : vector<1x512xf32>
    %c7_210 = arith.constant 7 : index
    %c1_211 = arith.constant 1 : index
    %291 = memref.load %arg4[%c7_210, %c1_211] : memref<8x4xf32, #tpu.memory_space<smem>>
    %c0_212 = arith.constant 0 : index
    %c1_213 = arith.constant 1 : index
    %c0_214 = arith.constant 0 : index
    %292 = vector.load %arg2[%c0_212, %c1_213, %c0_214] : memref<1x4x512xf32, #tpu.memory_space<vmem>>, vector<1x1x512xf32>
    %293 = vector.shape_cast %292 : vector<1x1x512xf32> to vector<1x512xf32>
    %294 = vector.broadcast %291 : f32 to vector<1x512xf32>
    %295 = arith.mulf %294, %293 : vector<1x512xf32>
    %296 = arith.addf %290, %295 : vector<1x512xf32>
    %c7_215 = arith.constant 7 : index
    %c2_216 = arith.constant 2 : index
    %297 = memref.load %arg4[%c7_215, %c2_216] : memref<8x4xf32, #tpu.memory_space<smem>>
    %c0_217 = arith.constant 0 : index
    %c2_218 = arith.constant 2 : index
    %c0_219 = arith.constant 0 : index
    %298 = vector.load %arg2[%c0_217, %c2_218, %c0_219] : memref<1x4x512xf32, #tpu.memory_space<vmem>>, vector<1x1x512xf32>
    %299 = vector.shape_cast %298 : vector<1x1x512xf32> to vector<1x512xf32>
    %300 = vector.broadcast %297 : f32 to vector<1x512xf32>
    %301 = arith.mulf %300, %299 : vector<1x512xf32>
    %302 = arith.addf %296, %301 : vector<1x512xf32>
    %c7_220 = arith.constant 7 : index
    %c3_221 = arith.constant 3 : index
    %303 = memref.load %arg4[%c7_220, %c3_221] : memref<8x4xf32, #tpu.memory_space<smem>>
    %c0_222 = arith.constant 0 : index
    %c3_223 = arith.constant 3 : index
    %c0_224 = arith.constant 0 : index
    %304 = vector.load %arg2[%c0_222, %c3_223, %c0_224] : memref<1x4x512xf32, #tpu.memory_space<vmem>>, vector<1x1x512xf32>
    %305 = vector.shape_cast %304 : vector<1x1x512xf32> to vector<1x512xf32>
    %306 = vector.broadcast %303 : f32 to vector<1x512xf32>
    %307 = arith.mulf %306, %305 : vector<1x512xf32>
    %308 = arith.addf %302, %307 : vector<1x512xf32>
    %cst_225 = arith.constant 5.000000e-01 : f32
    %309 = vector.broadcast %cst_225 : f32 to vector<1x512xf32>
    %310 = arith.mulf %309, %308 : vector<1x512xf32>
    %cst_226 = arith.constant 0.707106769 : f32
    %311 = vector.broadcast %cst_226 : f32 to vector<1x512xf32>
    %312 = arith.mulf %308, %311 : vector<1x512xf32>
    %313 = math.erf %312 : vector<1x512xf32>
    %cst_227 = arith.constant 1.000000e+00 : f32
    %314 = vector.broadcast %cst_227 : f32 to vector<1x512xf32>
    %315 = arith.addf %314, %313 : vector<1x512xf32>
    %316 = arith.mulf %310, %315 : vector<1x512xf32>
    %c0_228 = arith.constant 0 : index
    %c7_229 = arith.constant 7 : index
    %c0_230 = arith.constant 0 : index
    %317 = vector.load %arg6[%c0_228, %c7_229, %c0_230] : memref<1x8x512xf32, #tpu.memory_space<vmem>>, vector<1x1x512xf32>
    %318 = vector.shape_cast %317 : vector<1x1x512xf32> to vector<1x512xf32>
    %319 = vector.shape_cast %316 : vector<1x512xf32> to vector<1x1x512xf32>
    tpu.vector_store %arg6[%c0_228, %c7_229, %c0_230], %319 {strides = array<i32>} : memref<1x8x512xf32, #tpu.memory_space<vmem>>, vector<1x1x512xf32>,
    return
  }
  func.func @transform_0(%arg0: i32, %arg1: i32) -> (i32, i32, i32) {
    %c0_i32 = arith.constant 0 : i32
    %c0_i32_0 = arith.constant 0 : i32
    return %arg0, %c0_i32, %arg1 : i32, i32, i32
  }
  func.func @transform_1(%arg0: i32, %arg1: i32) -> (i32, i32, i32) {
    %c0_i32 = arith.constant 0 : i32
    %c0_i32_0 = arith.constant 0 : i32
    return %arg0, %c0_i32, %arg1 : i32, i32, i32
  }
  func.func @transform_2(%arg0: i32, %arg1: i32) -> (i32, i32) {
    %c0_i32 = arith.constant 0 : i32
    %c0_i32_0 = arith.constant 0 : i32
    %c0_i32_1 = arith.constant 0 : i32
    return %c0_i32, %c0_i32_0 : i32, i32
  }
  func.func @transform_3(%arg0: i32, %arg1: i32) -> i32 {
    %c0_i32 = arith.constant 0 : i32
    %c0_i32_0 = arith.constant 0 : i32
    return %c0_i32 : i32
  }
  func.func @transform_4(%arg0: i32, %arg1: i32) -> (i32, i32, i32) {
    %c0_i32 = arith.constant 0 : i32
    %c0_i32_0 = arith.constant 0 : i32
    return %arg0, %c0_i32, %arg1 : i32, i32, i32
  }
}

module attributes {stable_mosaic.version = 11 : i64} {
  func.func @_spectral_mul_kernel(%arg0: i32, %arg1: i32, %arg2: i32, %arg3: memref<2x8x256xf32, #tpu.memory_space<vmem>>, %arg4: memref<2x8x256xf32, #tpu.memory_space<vmem>>, %arg5: memref<8x8x256xbf16, #tpu.memory_space<vmem>>, %arg6: memref<8x8x256xbf16, #tpu.memory_space<vmem>>, %arg7: memref<2x8x256xf32, #tpu.memory_space<vmem>>, %arg8: memref<2x8x256xf32, #tpu.memory_space<vmem>>) attributes {dimension_semantics = [#tpu.dimension_semantics<parallel>, #tpu.dimension_semantics<arbitrary>, #tpu.dimension_semantics<arbitrary>], iteration_bounds = array<i64: 1, 1, 1>, scalar_prefetch = 0 : i64, scratch_operands = 0 : i64, tpu.core_type = #tpu.core_type<tc>, window_params = [{transform_indices = @transform_0, window_bounds = array<i64: 2, 8, 256>}, {transform_indices = @transform_1, window_bounds = array<i64: 2, 8, 256>}, {transform_indices = @transform_2, window_bounds = array<i64: 8, 8, 256>}, {transform_indices = @transform_3, window_bounds = array<i64: 8, 8, 256>}, {transform_indices = @transform_4, window_bounds = array<i64: 2, 8, 256>}, {transform_indices = @transform_5, window_bounds = array<i64: 2, 8, 256>}]} {
    %cst = arith.constant 0.000000e+00 : f32
    %0 = vector.broadcast %cst : f32 to vector<8x256xf32>
    %c0_i32 = arith.constant 0 : i32
    %1 = arith.index_cast %c0_i32 : i32 to index
    %c0 = arith.constant 0 : index
    %c0_0 = arith.constant 0 : index
    %2 = vector.load %arg5[%1, %c0, %c0_0] : memref<8x8x256xbf16, #tpu.memory_space<vmem>>, vector<1x8x256xbf16>
    %3 = vector.shape_cast %2 : vector<1x8x256xbf16> to vector<8x256xbf16>
    %4 = arith.extf %3 : vector<8x256xbf16> to vector<8x256xf32>
    %5 = arith.index_cast %c0_i32 : i32 to index
    %c0_1 = arith.constant 0 : index
    %c0_2 = arith.constant 0 : index
    %6 = vector.load %arg6[%5, %c0_1, %c0_2] : memref<8x8x256xbf16, #tpu.memory_space<vmem>>, vector<1x8x256xbf16>
    %7 = vector.shape_cast %6 : vector<1x8x256xbf16> to vector<8x256xbf16>
    %8 = arith.extf %7 : vector<8x256xbf16> to vector<8x256xf32>
    %c0_3 = arith.constant 0 : index
    %9 = arith.index_cast %c0_i32 : i32 to index
    %c0_4 = arith.constant 0 : index
    %10 = vector.load %arg3[%c0_3, %9, %c0_4] : memref<2x8x256xf32, #tpu.memory_space<vmem>>, vector<1x1x256xf32>
    %11 = vector.shape_cast %10 : vector<1x1x256xf32> to vector<1x256xf32>
    %c0_5 = arith.constant 0 : index
    %12 = arith.index_cast %c0_i32 : i32 to index
    %c0_6 = arith.constant 0 : index
    %13 = vector.load %arg4[%c0_5, %12, %c0_6] : memref<2x8x256xf32, #tpu.memory_space<vmem>>, vector<1x1x256xf32>
    %14 = vector.shape_cast %13 : vector<1x1x256xf32> to vector<1x256xf32>
    %15 = vector.broadcast %11 : vector<1x256xf32> to vector<8x256xf32>
    %16 = arith.mulf %4, %15 : vector<8x256xf32>
    %17 = vector.broadcast %14 : vector<1x256xf32> to vector<8x256xf32>
    %18 = arith.mulf %8, %17 : vector<8x256xf32>
    %19 = arith.subf %16, %18 : vector<8x256xf32>
    %20 = arith.addf %0, %19 : vector<8x256xf32>
    %21 = vector.broadcast %14 : vector<1x256xf32> to vector<8x256xf32>
    %22 = arith.mulf %4, %21 : vector<8x256xf32>
    %23 = vector.broadcast %11 : vector<1x256xf32> to vector<8x256xf32>
    %24 = arith.mulf %8, %23 : vector<8x256xf32>
    %25 = arith.addf %22, %24 : vector<8x256xf32>
    %26 = arith.addf %0, %25 : vector<8x256xf32>
    %c1 = arith.constant 1 : index
    %27 = arith.index_cast %c0_i32 : i32 to index
    %c0_7 = arith.constant 0 : index
    %28 = vector.load %arg3[%c1, %27, %c0_7] : memref<2x8x256xf32, #tpu.memory_space<vmem>>, vector<1x1x256xf32>
    %29 = vector.shape_cast %28 : vector<1x1x256xf32> to vector<1x256xf32>
    %c1_8 = arith.constant 1 : index
    %30 = arith.index_cast %c0_i32 : i32 to index
    %c0_9 = arith.constant 0 : index
    %31 = vector.load %arg4[%c1_8, %30, %c0_9] : memref<2x8x256xf32, #tpu.memory_space<vmem>>, vector<1x1x256xf32>
    %32 = vector.shape_cast %31 : vector<1x1x256xf32> to vector<1x256xf32>
    %33 = vector.broadcast %29 : vector<1x256xf32> to vector<8x256xf32>
    %34 = arith.mulf %4, %33 : vector<8x256xf32>
    %35 = vector.broadcast %32 : vector<1x256xf32> to vector<8x256xf32>
    %36 = arith.mulf %8, %35 : vector<8x256xf32>
    %37 = arith.subf %34, %36 : vector<8x256xf32>
    %38 = arith.addf %0, %37 : vector<8x256xf32>
    %39 = vector.broadcast %32 : vector<1x256xf32> to vector<8x256xf32>
    %40 = arith.mulf %4, %39 : vector<8x256xf32>
    %41 = vector.broadcast %29 : vector<1x256xf32> to vector<8x256xf32>
    %42 = arith.mulf %8, %41 : vector<8x256xf32>
    %43 = arith.addf %40, %42 : vector<8x256xf32>
    %44 = arith.addf %0, %43 : vector<8x256xf32>
    %c1_i32 = arith.constant 1 : i32
    %45 = arith.index_cast %c1_i32 : i32 to index
    %c0_10 = arith.constant 0 : index
    %c0_11 = arith.constant 0 : index
    %46 = vector.load %arg5[%45, %c0_10, %c0_11] : memref<8x8x256xbf16, #tpu.memory_space<vmem>>, vector<1x8x256xbf16>
    %47 = vector.shape_cast %46 : vector<1x8x256xbf16> to vector<8x256xbf16>
    %48 = arith.extf %47 : vector<8x256xbf16> to vector<8x256xf32>
    %49 = arith.index_cast %c1_i32 : i32 to index
    %c0_12 = arith.constant 0 : index
    %c0_13 = arith.constant 0 : index
    %50 = vector.load %arg6[%49, %c0_12, %c0_13] : memref<8x8x256xbf16, #tpu.memory_space<vmem>>, vector<1x8x256xbf16>
    %51 = vector.shape_cast %50 : vector<1x8x256xbf16> to vector<8x256xbf16>
    %52 = arith.extf %51 : vector<8x256xbf16> to vector<8x256xf32>
    %c0_14 = arith.constant 0 : index
    %53 = arith.index_cast %c1_i32 : i32 to index
    %c0_15 = arith.constant 0 : index
    %54 = vector.load %arg3[%c0_14, %53, %c0_15] : memref<2x8x256xf32, #tpu.memory_space<vmem>>, vector<1x1x256xf32>
    %55 = vector.shape_cast %54 : vector<1x1x256xf32> to vector<1x256xf32>
    %c0_16 = arith.constant 0 : index
    %56 = arith.index_cast %c1_i32 : i32 to index
    %c0_17 = arith.constant 0 : index
    %57 = vector.load %arg4[%c0_16, %56, %c0_17] : memref<2x8x256xf32, #tpu.memory_space<vmem>>, vector<1x1x256xf32>
    %58 = vector.shape_cast %57 : vector<1x1x256xf32> to vector<1x256xf32>
    %59 = vector.broadcast %55 : vector<1x256xf32> to vector<8x256xf32>
    %60 = arith.mulf %48, %59 : vector<8x256xf32>
    %61 = vector.broadcast %58 : vector<1x256xf32> to vector<8x256xf32>
    %62 = arith.mulf %52, %61 : vector<8x256xf32>
    %63 = arith.subf %60, %62 : vector<8x256xf32>
    %64 = arith.addf %20, %63 : vector<8x256xf32>
    %65 = vector.broadcast %58 : vector<1x256xf32> to vector<8x256xf32>
    %66 = arith.mulf %48, %65 : vector<8x256xf32>
    %67 = vector.broadcast %55 : vector<1x256xf32> to vector<8x256xf32>
    %68 = arith.mulf %52, %67 : vector<8x256xf32>
    %69 = arith.addf %66, %68 : vector<8x256xf32>
    %70 = arith.addf %26, %69 : vector<8x256xf32>
    %c1_18 = arith.constant 1 : index
    %71 = arith.index_cast %c1_i32 : i32 to index
    %c0_19 = arith.constant 0 : index
    %72 = vector.load %arg3[%c1_18, %71, %c0_19] : memref<2x8x256xf32, #tpu.memory_space<vmem>>, vector<1x1x256xf32>
    %73 = vector.shape_cast %72 : vector<1x1x256xf32> to vector<1x256xf32>
    %c1_20 = arith.constant 1 : index
    %74 = arith.index_cast %c1_i32 : i32 to index
    %c0_21 = arith.constant 0 : index
    %75 = vector.load %arg4[%c1_20, %74, %c0_21] : memref<2x8x256xf32, #tpu.memory_space<vmem>>, vector<1x1x256xf32>
    %76 = vector.shape_cast %75 : vector<1x1x256xf32> to vector<1x256xf32>
    %77 = vector.broadcast %73 : vector<1x256xf32> to vector<8x256xf32>
    %78 = arith.mulf %48, %77 : vector<8x256xf32>
    %79 = vector.broadcast %76 : vector<1x256xf32> to vector<8x256xf32>
    %80 = arith.mulf %52, %79 : vector<8x256xf32>
    %81 = arith.subf %78, %80 : vector<8x256xf32>
    %82 = arith.addf %38, %81 : vector<8x256xf32>
    %83 = vector.broadcast %76 : vector<1x256xf32> to vector<8x256xf32>
    %84 = arith.mulf %48, %83 : vector<8x256xf32>
    %85 = vector.broadcast %73 : vector<1x256xf32> to vector<8x256xf32>
    %86 = arith.mulf %52, %85 : vector<8x256xf32>
    %87 = arith.addf %84, %86 : vector<8x256xf32>
    %88 = arith.addf %44, %87 : vector<8x256xf32>
    %c2_i32 = arith.constant 2 : i32
    %89 = arith.index_cast %c2_i32 : i32 to index
    %c0_22 = arith.constant 0 : index
    %c0_23 = arith.constant 0 : index
    %90 = vector.load %arg5[%89, %c0_22, %c0_23] : memref<8x8x256xbf16, #tpu.memory_space<vmem>>, vector<1x8x256xbf16>
    %91 = vector.shape_cast %90 : vector<1x8x256xbf16> to vector<8x256xbf16>
    %92 = arith.extf %91 : vector<8x256xbf16> to vector<8x256xf32>
    %93 = arith.index_cast %c2_i32 : i32 to index
    %c0_24 = arith.constant 0 : index
    %c0_25 = arith.constant 0 : index
    %94 = vector.load %arg6[%93, %c0_24, %c0_25] : memref<8x8x256xbf16, #tpu.memory_space<vmem>>, vector<1x8x256xbf16>
    %95 = vector.shape_cast %94 : vector<1x8x256xbf16> to vector<8x256xbf16>
    %96 = arith.extf %95 : vector<8x256xbf16> to vector<8x256xf32>
    %c0_26 = arith.constant 0 : index
    %97 = arith.index_cast %c2_i32 : i32 to index
    %c0_27 = arith.constant 0 : index
    %98 = vector.load %arg3[%c0_26, %97, %c0_27] : memref<2x8x256xf32, #tpu.memory_space<vmem>>, vector<1x1x256xf32>
    %99 = vector.shape_cast %98 : vector<1x1x256xf32> to vector<1x256xf32>
    %c0_28 = arith.constant 0 : index
    %100 = arith.index_cast %c2_i32 : i32 to index
    %c0_29 = arith.constant 0 : index
    %101 = vector.load %arg4[%c0_28, %100, %c0_29] : memref<2x8x256xf32, #tpu.memory_space<vmem>>, vector<1x1x256xf32>
    %102 = vector.shape_cast %101 : vector<1x1x256xf32> to vector<1x256xf32>
    %103 = vector.broadcast %99 : vector<1x256xf32> to vector<8x256xf32>
    %104 = arith.mulf %92, %103 : vector<8x256xf32>
    %105 = vector.broadcast %102 : vector<1x256xf32> to vector<8x256xf32>
    %106 = arith.mulf %96, %105 : vector<8x256xf32>
    %107 = arith.subf %104, %106 : vector<8x256xf32>
    %108 = arith.addf %64, %107 : vector<8x256xf32>
    %109 = vector.broadcast %102 : vector<1x256xf32> to vector<8x256xf32>
    %110 = arith.mulf %92, %109 : vector<8x256xf32>
    %111 = vector.broadcast %99 : vector<1x256xf32> to vector<8x256xf32>
    %112 = arith.mulf %96, %111 : vector<8x256xf32>
    %113 = arith.addf %110, %112 : vector<8x256xf32>
    %114 = arith.addf %70, %113 : vector<8x256xf32>
    %c1_30 = arith.constant 1 : index
    %115 = arith.index_cast %c2_i32 : i32 to index
    %c0_31 = arith.constant 0 : index
    %116 = vector.load %arg3[%c1_30, %115, %c0_31] : memref<2x8x256xf32, #tpu.memory_space<vmem>>, vector<1x1x256xf32>
    %117 = vector.shape_cast %116 : vector<1x1x256xf32> to vector<1x256xf32>
    %c1_32 = arith.constant 1 : index
    %118 = arith.index_cast %c2_i32 : i32 to index
    %c0_33 = arith.constant 0 : index
    %119 = vector.load %arg4[%c1_32, %118, %c0_33] : memref<2x8x256xf32, #tpu.memory_space<vmem>>, vector<1x1x256xf32>
    %120 = vector.shape_cast %119 : vector<1x1x256xf32> to vector<1x256xf32>
    %121 = vector.broadcast %117 : vector<1x256xf32> to vector<8x256xf32>
    %122 = arith.mulf %92, %121 : vector<8x256xf32>
    %123 = vector.broadcast %120 : vector<1x256xf32> to vector<8x256xf32>
    %124 = arith.mulf %96, %123 : vector<8x256xf32>
    %125 = arith.subf %122, %124 : vector<8x256xf32>
    %126 = arith.addf %82, %125 : vector<8x256xf32>
    %127 = vector.broadcast %120 : vector<1x256xf32> to vector<8x256xf32>
    %128 = arith.mulf %92, %127 : vector<8x256xf32>
    %129 = vector.broadcast %117 : vector<1x256xf32> to vector<8x256xf32>
    %130 = arith.mulf %96, %129 : vector<8x256xf32>
    %131 = arith.addf %128, %130 : vector<8x256xf32>
    %132 = arith.addf %88, %131 : vector<8x256xf32>
    %c3_i32 = arith.constant 3 : i32
    %133 = arith.index_cast %c3_i32 : i32 to index
    %c0_34 = arith.constant 0 : index
    %c0_35 = arith.constant 0 : index
    %134 = vector.load %arg5[%133, %c0_34, %c0_35] : memref<8x8x256xbf16, #tpu.memory_space<vmem>>, vector<1x8x256xbf16>
    %135 = vector.shape_cast %134 : vector<1x8x256xbf16> to vector<8x256xbf16>
    %136 = arith.extf %135 : vector<8x256xbf16> to vector<8x256xf32>
    %137 = arith.index_cast %c3_i32 : i32 to index
    %c0_36 = arith.constant 0 : index
    %c0_37 = arith.constant 0 : index
    %138 = vector.load %arg6[%137, %c0_36, %c0_37] : memref<8x8x256xbf16, #tpu.memory_space<vmem>>, vector<1x8x256xbf16>
    %139 = vector.shape_cast %138 : vector<1x8x256xbf16> to vector<8x256xbf16>
    %140 = arith.extf %139 : vector<8x256xbf16> to vector<8x256xf32>
    %c0_38 = arith.constant 0 : index
    %141 = arith.index_cast %c3_i32 : i32 to index
    %c0_39 = arith.constant 0 : index
    %142 = vector.load %arg3[%c0_38, %141, %c0_39] : memref<2x8x256xf32, #tpu.memory_space<vmem>>, vector<1x1x256xf32>
    %143 = vector.shape_cast %142 : vector<1x1x256xf32> to vector<1x256xf32>
    %c0_40 = arith.constant 0 : index
    %144 = arith.index_cast %c3_i32 : i32 to index
    %c0_41 = arith.constant 0 : index
    %145 = vector.load %arg4[%c0_40, %144, %c0_41] : memref<2x8x256xf32, #tpu.memory_space<vmem>>, vector<1x1x256xf32>
    %146 = vector.shape_cast %145 : vector<1x1x256xf32> to vector<1x256xf32>
    %147 = vector.broadcast %143 : vector<1x256xf32> to vector<8x256xf32>
    %148 = arith.mulf %136, %147 : vector<8x256xf32>
    %149 = vector.broadcast %146 : vector<1x256xf32> to vector<8x256xf32>
    %150 = arith.mulf %140, %149 : vector<8x256xf32>
    %151 = arith.subf %148, %150 : vector<8x256xf32>
    %152 = arith.addf %108, %151 : vector<8x256xf32>
    %153 = vector.broadcast %146 : vector<1x256xf32> to vector<8x256xf32>
    %154 = arith.mulf %136, %153 : vector<8x256xf32>
    %155 = vector.broadcast %143 : vector<1x256xf32> to vector<8x256xf32>
    %156 = arith.mulf %140, %155 : vector<8x256xf32>
    %157 = arith.addf %154, %156 : vector<8x256xf32>
    %158 = arith.addf %114, %157 : vector<8x256xf32>
    %c1_42 = arith.constant 1 : index
    %159 = arith.index_cast %c3_i32 : i32 to index
    %c0_43 = arith.constant 0 : index
    %160 = vector.load %arg3[%c1_42, %159, %c0_43] : memref<2x8x256xf32, #tpu.memory_space<vmem>>, vector<1x1x256xf32>
    %161 = vector.shape_cast %160 : vector<1x1x256xf32> to vector<1x256xf32>
    %c1_44 = arith.constant 1 : index
    %162 = arith.index_cast %c3_i32 : i32 to index
    %c0_45 = arith.constant 0 : index
    %163 = vector.load %arg4[%c1_44, %162, %c0_45] : memref<2x8x256xf32, #tpu.memory_space<vmem>>, vector<1x1x256xf32>
    %164 = vector.shape_cast %163 : vector<1x1x256xf32> to vector<1x256xf32>
    %165 = vector.broadcast %161 : vector<1x256xf32> to vector<8x256xf32>
    %166 = arith.mulf %136, %165 : vector<8x256xf32>
    %167 = vector.broadcast %164 : vector<1x256xf32> to vector<8x256xf32>
    %168 = arith.mulf %140, %167 : vector<8x256xf32>
    %169 = arith.subf %166, %168 : vector<8x256xf32>
    %170 = arith.addf %126, %169 : vector<8x256xf32>
    %171 = vector.broadcast %164 : vector<1x256xf32> to vector<8x256xf32>
    %172 = arith.mulf %136, %171 : vector<8x256xf32>
    %173 = vector.broadcast %161 : vector<1x256xf32> to vector<8x256xf32>
    %174 = arith.mulf %140, %173 : vector<8x256xf32>
    %175 = arith.addf %172, %174 : vector<8x256xf32>
    %176 = arith.addf %132, %175 : vector<8x256xf32>
    %c4_i32 = arith.constant 4 : i32
    %177 = arith.index_cast %c4_i32 : i32 to index
    %c0_46 = arith.constant 0 : index
    %c0_47 = arith.constant 0 : index
    %178 = vector.load %arg5[%177, %c0_46, %c0_47] : memref<8x8x256xbf16, #tpu.memory_space<vmem>>, vector<1x8x256xbf16>
    %179 = vector.shape_cast %178 : vector<1x8x256xbf16> to vector<8x256xbf16>
    %180 = arith.extf %179 : vector<8x256xbf16> to vector<8x256xf32>
    %181 = arith.index_cast %c4_i32 : i32 to index
    %c0_48 = arith.constant 0 : index
    %c0_49 = arith.constant 0 : index
    %182 = vector.load %arg6[%181, %c0_48, %c0_49] : memref<8x8x256xbf16, #tpu.memory_space<vmem>>, vector<1x8x256xbf16>
    %183 = vector.shape_cast %182 : vector<1x8x256xbf16> to vector<8x256xbf16>
    %184 = arith.extf %183 : vector<8x256xbf16> to vector<8x256xf32>
    %c0_50 = arith.constant 0 : index
    %185 = arith.index_cast %c4_i32 : i32 to index
    %c0_51 = arith.constant 0 : index
    %186 = vector.load %arg3[%c0_50, %185, %c0_51] : memref<2x8x256xf32, #tpu.memory_space<vmem>>, vector<1x1x256xf32>
    %187 = vector.shape_cast %186 : vector<1x1x256xf32> to vector<1x256xf32>
    %c0_52 = arith.constant 0 : index
    %188 = arith.index_cast %c4_i32 : i32 to index
    %c0_53 = arith.constant 0 : index
    %189 = vector.load %arg4[%c0_52, %188, %c0_53] : memref<2x8x256xf32, #tpu.memory_space<vmem>>, vector<1x1x256xf32>
    %190 = vector.shape_cast %189 : vector<1x1x256xf32> to vector<1x256xf32>
    %191 = vector.broadcast %187 : vector<1x256xf32> to vector<8x256xf32>
    %192 = arith.mulf %180, %191 : vector<8x256xf32>
    %193 = vector.broadcast %190 : vector<1x256xf32> to vector<8x256xf32>
    %194 = arith.mulf %184, %193 : vector<8x256xf32>
    %195 = arith.subf %192, %194 : vector<8x256xf32>
    %196 = arith.addf %152, %195 : vector<8x256xf32>
    %197 = vector.broadcast %190 : vector<1x256xf32> to vector<8x256xf32>
    %198 = arith.mulf %180, %197 : vector<8x256xf32>
    %199 = vector.broadcast %187 : vector<1x256xf32> to vector<8x256xf32>
    %200 = arith.mulf %184, %199 : vector<8x256xf32>
    %201 = arith.addf %198, %200 : vector<8x256xf32>
    %202 = arith.addf %158, %201 : vector<8x256xf32>
    %c1_54 = arith.constant 1 : index
    %203 = arith.index_cast %c4_i32 : i32 to index
    %c0_55 = arith.constant 0 : index
    %204 = vector.load %arg3[%c1_54, %203, %c0_55] : memref<2x8x256xf32, #tpu.memory_space<vmem>>, vector<1x1x256xf32>
    %205 = vector.shape_cast %204 : vector<1x1x256xf32> to vector<1x256xf32>
    %c1_56 = arith.constant 1 : index
    %206 = arith.index_cast %c4_i32 : i32 to index
    %c0_57 = arith.constant 0 : index
    %207 = vector.load %arg4[%c1_56, %206, %c0_57] : memref<2x8x256xf32, #tpu.memory_space<vmem>>, vector<1x1x256xf32>
    %208 = vector.shape_cast %207 : vector<1x1x256xf32> to vector<1x256xf32>
    %209 = vector.broadcast %205 : vector<1x256xf32> to vector<8x256xf32>
    %210 = arith.mulf %180, %209 : vector<8x256xf32>
    %211 = vector.broadcast %208 : vector<1x256xf32> to vector<8x256xf32>
    %212 = arith.mulf %184, %211 : vector<8x256xf32>
    %213 = arith.subf %210, %212 : vector<8x256xf32>
    %214 = arith.addf %170, %213 : vector<8x256xf32>
    %215 = vector.broadcast %208 : vector<1x256xf32> to vector<8x256xf32>
    %216 = arith.mulf %180, %215 : vector<8x256xf32>
    %217 = vector.broadcast %205 : vector<1x256xf32> to vector<8x256xf32>
    %218 = arith.mulf %184, %217 : vector<8x256xf32>
    %219 = arith.addf %216, %218 : vector<8x256xf32>
    %220 = arith.addf %176, %219 : vector<8x256xf32>
    %c5_i32 = arith.constant 5 : i32
    %221 = arith.index_cast %c5_i32 : i32 to index
    %c0_58 = arith.constant 0 : index
    %c0_59 = arith.constant 0 : index
    %222 = vector.load %arg5[%221, %c0_58, %c0_59] : memref<8x8x256xbf16, #tpu.memory_space<vmem>>, vector<1x8x256xbf16>
    %223 = vector.shape_cast %222 : vector<1x8x256xbf16> to vector<8x256xbf16>
    %224 = arith.extf %223 : vector<8x256xbf16> to vector<8x256xf32>
    %225 = arith.index_cast %c5_i32 : i32 to index
    %c0_60 = arith.constant 0 : index
    %c0_61 = arith.constant 0 : index
    %226 = vector.load %arg6[%225, %c0_60, %c0_61] : memref<8x8x256xbf16, #tpu.memory_space<vmem>>, vector<1x8x256xbf16>
    %227 = vector.shape_cast %226 : vector<1x8x256xbf16> to vector<8x256xbf16>
    %228 = arith.extf %227 : vector<8x256xbf16> to vector<8x256xf32>
    %c0_62 = arith.constant 0 : index
    %229 = arith.index_cast %c5_i32 : i32 to index
    %c0_63 = arith.constant 0 : index
    %230 = vector.load %arg3[%c0_62, %229, %c0_63] : memref<2x8x256xf32, #tpu.memory_space<vmem>>, vector<1x1x256xf32>
    %231 = vector.shape_cast %230 : vector<1x1x256xf32> to vector<1x256xf32>
    %c0_64 = arith.constant 0 : index
    %232 = arith.index_cast %c5_i32 : i32 to index
    %c0_65 = arith.constant 0 : index
    %233 = vector.load %arg4[%c0_64, %232, %c0_65] : memref<2x8x256xf32, #tpu.memory_space<vmem>>, vector<1x1x256xf32>
    %234 = vector.shape_cast %233 : vector<1x1x256xf32> to vector<1x256xf32>
    %235 = vector.broadcast %231 : vector<1x256xf32> to vector<8x256xf32>
    %236 = arith.mulf %224, %235 : vector<8x256xf32>
    %237 = vector.broadcast %234 : vector<1x256xf32> to vector<8x256xf32>
    %238 = arith.mulf %228, %237 : vector<8x256xf32>
    %239 = arith.subf %236, %238 : vector<8x256xf32>
    %240 = arith.addf %196, %239 : vector<8x256xf32>
    %241 = vector.broadcast %234 : vector<1x256xf32> to vector<8x256xf32>
    %242 = arith.mulf %224, %241 : vector<8x256xf32>
    %243 = vector.broadcast %231 : vector<1x256xf32> to vector<8x256xf32>
    %244 = arith.mulf %228, %243 : vector<8x256xf32>
    %245 = arith.addf %242, %244 : vector<8x256xf32>
    %246 = arith.addf %202, %245 : vector<8x256xf32>
    %c1_66 = arith.constant 1 : index
    %247 = arith.index_cast %c5_i32 : i32 to index
    %c0_67 = arith.constant 0 : index
    %248 = vector.load %arg3[%c1_66, %247, %c0_67] : memref<2x8x256xf32, #tpu.memory_space<vmem>>, vector<1x1x256xf32>
    %249 = vector.shape_cast %248 : vector<1x1x256xf32> to vector<1x256xf32>
    %c1_68 = arith.constant 1 : index
    %250 = arith.index_cast %c5_i32 : i32 to index
    %c0_69 = arith.constant 0 : index
    %251 = vector.load %arg4[%c1_68, %250, %c0_69] : memref<2x8x256xf32, #tpu.memory_space<vmem>>, vector<1x1x256xf32>
    %252 = vector.shape_cast %251 : vector<1x1x256xf32> to vector<1x256xf32>
    %253 = vector.broadcast %249 : vector<1x256xf32> to vector<8x256xf32>
    %254 = arith.mulf %224, %253 : vector<8x256xf32>
    %255 = vector.broadcast %252 : vector<1x256xf32> to vector<8x256xf32>
    %256 = arith.mulf %228, %255 : vector<8x256xf32>
    %257 = arith.subf %254, %256 : vector<8x256xf32>
    %258 = arith.addf %214, %257 : vector<8x256xf32>
    %259 = vector.broadcast %252 : vector<1x256xf32> to vector<8x256xf32>
    %260 = arith.mulf %224, %259 : vector<8x256xf32>
    %261 = vector.broadcast %249 : vector<1x256xf32> to vector<8x256xf32>
    %262 = arith.mulf %228, %261 : vector<8x256xf32>
    %263 = arith.addf %260, %262 : vector<8x256xf32>
    %264 = arith.addf %220, %263 : vector<8x256xf32>
    %c6_i32 = arith.constant 6 : i32
    %265 = arith.index_cast %c6_i32 : i32 to index
    %c0_70 = arith.constant 0 : index
    %c0_71 = arith.constant 0 : index
    %266 = vector.load %arg5[%265, %c0_70, %c0_71] : memref<8x8x256xbf16, #tpu.memory_space<vmem>>, vector<1x8x256xbf16>
    %267 = vector.shape_cast %266 : vector<1x8x256xbf16> to vector<8x256xbf16>
    %268 = arith.extf %267 : vector<8x256xbf16> to vector<8x256xf32>
    %269 = arith.index_cast %c6_i32 : i32 to index
    %c0_72 = arith.constant 0 : index
    %c0_73 = arith.constant 0 : index
    %270 = vector.load %arg6[%269, %c0_72, %c0_73] : memref<8x8x256xbf16, #tpu.memory_space<vmem>>, vector<1x8x256xbf16>
    %271 = vector.shape_cast %270 : vector<1x8x256xbf16> to vector<8x256xbf16>
    %272 = arith.extf %271 : vector<8x256xbf16> to vector<8x256xf32>
    %c0_74 = arith.constant 0 : index
    %273 = arith.index_cast %c6_i32 : i32 to index
    %c0_75 = arith.constant 0 : index
    %274 = vector.load %arg3[%c0_74, %273, %c0_75] : memref<2x8x256xf32, #tpu.memory_space<vmem>>, vector<1x1x256xf32>
    %275 = vector.shape_cast %274 : vector<1x1x256xf32> to vector<1x256xf32>
    %c0_76 = arith.constant 0 : index
    %276 = arith.index_cast %c6_i32 : i32 to index
    %c0_77 = arith.constant 0 : index
    %277 = vector.load %arg4[%c0_76, %276, %c0_77] : memref<2x8x256xf32, #tpu.memory_space<vmem>>, vector<1x1x256xf32>
    %278 = vector.shape_cast %277 : vector<1x1x256xf32> to vector<1x256xf32>
    %279 = vector.broadcast %275 : vector<1x256xf32> to vector<8x256xf32>
    %280 = arith.mulf %268, %279 : vector<8x256xf32>
    %281 = vector.broadcast %278 : vector<1x256xf32> to vector<8x256xf32>
    %282 = arith.mulf %272, %281 : vector<8x256xf32>
    %283 = arith.subf %280, %282 : vector<8x256xf32>
    %284 = arith.addf %240, %283 : vector<8x256xf32>
    %285 = vector.broadcast %278 : vector<1x256xf32> to vector<8x256xf32>
    %286 = arith.mulf %268, %285 : vector<8x256xf32>
    %287 = vector.broadcast %275 : vector<1x256xf32> to vector<8x256xf32>
    %288 = arith.mulf %272, %287 : vector<8x256xf32>
    %289 = arith.addf %286, %288 : vector<8x256xf32>
    %290 = arith.addf %246, %289 : vector<8x256xf32>
    %c1_78 = arith.constant 1 : index
    %291 = arith.index_cast %c6_i32 : i32 to index
    %c0_79 = arith.constant 0 : index
    %292 = vector.load %arg3[%c1_78, %291, %c0_79] : memref<2x8x256xf32, #tpu.memory_space<vmem>>, vector<1x1x256xf32>
    %293 = vector.shape_cast %292 : vector<1x1x256xf32> to vector<1x256xf32>
    %c1_80 = arith.constant 1 : index
    %294 = arith.index_cast %c6_i32 : i32 to index
    %c0_81 = arith.constant 0 : index
    %295 = vector.load %arg4[%c1_80, %294, %c0_81] : memref<2x8x256xf32, #tpu.memory_space<vmem>>, vector<1x1x256xf32>
    %296 = vector.shape_cast %295 : vector<1x1x256xf32> to vector<1x256xf32>
    %297 = vector.broadcast %293 : vector<1x256xf32> to vector<8x256xf32>
    %298 = arith.mulf %268, %297 : vector<8x256xf32>
    %299 = vector.broadcast %296 : vector<1x256xf32> to vector<8x256xf32>
    %300 = arith.mulf %272, %299 : vector<8x256xf32>
    %301 = arith.subf %298, %300 : vector<8x256xf32>
    %302 = arith.addf %258, %301 : vector<8x256xf32>
    %303 = vector.broadcast %296 : vector<1x256xf32> to vector<8x256xf32>
    %304 = arith.mulf %268, %303 : vector<8x256xf32>
    %305 = vector.broadcast %293 : vector<1x256xf32> to vector<8x256xf32>
    %306 = arith.mulf %272, %305 : vector<8x256xf32>
    %307 = arith.addf %304, %306 : vector<8x256xf32>
    %308 = arith.addf %264, %307 : vector<8x256xf32>
    %c7_i32 = arith.constant 7 : i32
    %309 = arith.index_cast %c7_i32 : i32 to index
    %c0_82 = arith.constant 0 : index
    %c0_83 = arith.constant 0 : index
    %310 = vector.load %arg5[%309, %c0_82, %c0_83] : memref<8x8x256xbf16, #tpu.memory_space<vmem>>, vector<1x8x256xbf16>
    %311 = vector.shape_cast %310 : vector<1x8x256xbf16> to vector<8x256xbf16>
    %312 = arith.extf %311 : vector<8x256xbf16> to vector<8x256xf32>
    %313 = arith.index_cast %c7_i32 : i32 to index
    %c0_84 = arith.constant 0 : index
    %c0_85 = arith.constant 0 : index
    %314 = vector.load %arg6[%313, %c0_84, %c0_85] : memref<8x8x256xbf16, #tpu.memory_space<vmem>>, vector<1x8x256xbf16>
    %315 = vector.shape_cast %314 : vector<1x8x256xbf16> to vector<8x256xbf16>
    %316 = arith.extf %315 : vector<8x256xbf16> to vector<8x256xf32>
    %c0_86 = arith.constant 0 : index
    %317 = arith.index_cast %c7_i32 : i32 to index
    %c0_87 = arith.constant 0 : index
    %318 = vector.load %arg3[%c0_86, %317, %c0_87] : memref<2x8x256xf32, #tpu.memory_space<vmem>>, vector<1x1x256xf32>
    %319 = vector.shape_cast %318 : vector<1x1x256xf32> to vector<1x256xf32>
    %c0_88 = arith.constant 0 : index
    %320 = arith.index_cast %c7_i32 : i32 to index
    %c0_89 = arith.constant 0 : index
    %321 = vector.load %arg4[%c0_88, %320, %c0_89] : memref<2x8x256xf32, #tpu.memory_space<vmem>>, vector<1x1x256xf32>
    %322 = vector.shape_cast %321 : vector<1x1x256xf32> to vector<1x256xf32>
    %323 = vector.broadcast %319 : vector<1x256xf32> to vector<8x256xf32>
    %324 = arith.mulf %312, %323 : vector<8x256xf32>
    %325 = vector.broadcast %322 : vector<1x256xf32> to vector<8x256xf32>
    %326 = arith.mulf %316, %325 : vector<8x256xf32>
    %327 = arith.subf %324, %326 : vector<8x256xf32>
    %328 = arith.addf %284, %327 : vector<8x256xf32>
    %329 = vector.broadcast %322 : vector<1x256xf32> to vector<8x256xf32>
    %330 = arith.mulf %312, %329 : vector<8x256xf32>
    %331 = vector.broadcast %319 : vector<1x256xf32> to vector<8x256xf32>
    %332 = arith.mulf %316, %331 : vector<8x256xf32>
    %333 = arith.addf %330, %332 : vector<8x256xf32>
    %334 = arith.addf %290, %333 : vector<8x256xf32>
    %c1_90 = arith.constant 1 : index
    %335 = arith.index_cast %c7_i32 : i32 to index
    %c0_91 = arith.constant 0 : index
    %336 = vector.load %arg3[%c1_90, %335, %c0_91] : memref<2x8x256xf32, #tpu.memory_space<vmem>>, vector<1x1x256xf32>
    %337 = vector.shape_cast %336 : vector<1x1x256xf32> to vector<1x256xf32>
    %c1_92 = arith.constant 1 : index
    %338 = arith.index_cast %c7_i32 : i32 to index
    %c0_93 = arith.constant 0 : index
    %339 = vector.load %arg4[%c1_92, %338, %c0_93] : memref<2x8x256xf32, #tpu.memory_space<vmem>>, vector<1x1x256xf32>
    %340 = vector.shape_cast %339 : vector<1x1x256xf32> to vector<1x256xf32>
    %341 = vector.broadcast %337 : vector<1x256xf32> to vector<8x256xf32>
    %342 = arith.mulf %312, %341 : vector<8x256xf32>
    %343 = vector.broadcast %340 : vector<1x256xf32> to vector<8x256xf32>
    %344 = arith.mulf %316, %343 : vector<8x256xf32>
    %345 = arith.subf %342, %344 : vector<8x256xf32>
    %346 = arith.addf %302, %345 : vector<8x256xf32>
    %347 = vector.broadcast %340 : vector<1x256xf32> to vector<8x256xf32>
    %348 = arith.mulf %312, %347 : vector<8x256xf32>
    %349 = vector.broadcast %337 : vector<1x256xf32> to vector<8x256xf32>
    %350 = arith.mulf %316, %349 : vector<8x256xf32>
    %351 = arith.addf %348, %350 : vector<8x256xf32>
    %352 = arith.addf %308, %351 : vector<8x256xf32>
    %c8_i32 = arith.constant 8 : i32
    %c0_94 = arith.constant 0 : index
    %c0_95 = arith.constant 0 : index
    %c0_96 = arith.constant 0 : index
    %353 = vector.load %arg7[%c0_94, %c0_95, %c0_96] : memref<2x8x256xf32, #tpu.memory_space<vmem>>, vector<1x8x256xf32>
    %354 = vector.shape_cast %353 : vector<1x8x256xf32> to vector<8x256xf32>
    %355 = vector.shape_cast %328 : vector<8x256xf32> to vector<1x8x256xf32>
    tpu.vector_store %arg7[%c0_94, %c0_95, %c0_96], %355 {strides = array<i32>} : memref<2x8x256xf32, #tpu.memory_space<vmem>>, vector<1x8x256xf32>,
    %c0_97 = arith.constant 0 : index
    %c0_98 = arith.constant 0 : index
    %c0_99 = arith.constant 0 : index
    %356 = vector.load %arg8[%c0_97, %c0_98, %c0_99] : memref<2x8x256xf32, #tpu.memory_space<vmem>>, vector<1x8x256xf32>
    %357 = vector.shape_cast %356 : vector<1x8x256xf32> to vector<8x256xf32>
    %358 = vector.shape_cast %334 : vector<8x256xf32> to vector<1x8x256xf32>
    tpu.vector_store %arg8[%c0_97, %c0_98, %c0_99], %358 {strides = array<i32>} : memref<2x8x256xf32, #tpu.memory_space<vmem>>, vector<1x8x256xf32>,
    %c1_100 = arith.constant 1 : index
    %c0_101 = arith.constant 0 : index
    %c0_102 = arith.constant 0 : index
    %359 = vector.load %arg7[%c1_100, %c0_101, %c0_102] : memref<2x8x256xf32, #tpu.memory_space<vmem>>, vector<1x8x256xf32>
    %360 = vector.shape_cast %359 : vector<1x8x256xf32> to vector<8x256xf32>
    %361 = vector.shape_cast %346 : vector<8x256xf32> to vector<1x8x256xf32>
    tpu.vector_store %arg7[%c1_100, %c0_101, %c0_102], %361 {strides = array<i32>} : memref<2x8x256xf32, #tpu.memory_space<vmem>>, vector<1x8x256xf32>,
    %c1_103 = arith.constant 1 : index
    %c0_104 = arith.constant 0 : index
    %c0_105 = arith.constant 0 : index
    %362 = vector.load %arg8[%c1_103, %c0_104, %c0_105] : memref<2x8x256xf32, #tpu.memory_space<vmem>>, vector<1x8x256xf32>
    %363 = vector.shape_cast %362 : vector<1x8x256xf32> to vector<8x256xf32>
    %364 = vector.shape_cast %352 : vector<8x256xf32> to vector<1x8x256xf32>
    tpu.vector_store %arg8[%c1_103, %c0_104, %c0_105], %364 {strides = array<i32>} : memref<2x8x256xf32, #tpu.memory_space<vmem>>, vector<1x8x256xf32>,
    return
  }
  func.func @transform_0(%arg0: i32, %arg1: i32, %arg2: i32) -> (i32, i32, i32) {
    %c0_i32 = arith.constant 0 : i32
    %c0_i32_0 = arith.constant 0 : i32
    return %arg0, %c0_i32, %arg1 : i32, i32, i32
  }
  func.func @transform_1(%arg0: i32, %arg1: i32, %arg2: i32) -> (i32, i32, i32) {
    %c0_i32 = arith.constant 0 : i32
    %c0_i32_0 = arith.constant 0 : i32
    return %arg0, %c0_i32, %arg1 : i32, i32, i32
  }
  func.func @transform_2(%arg0: i32, %arg1: i32, %arg2: i32) -> (i32, i32, i32) {
    %c0_i32 = arith.constant 0 : i32
    %c0_i32_0 = arith.constant 0 : i32
    return %c0_i32, %arg2, %arg1 : i32, i32, i32
  }
  func.func @transform_3(%arg0: i32, %arg1: i32, %arg2: i32) -> (i32, i32, i32) {
    %c0_i32 = arith.constant 0 : i32
    %c0_i32_0 = arith.constant 0 : i32
    return %c0_i32, %arg2, %arg1 : i32, i32, i32
  }
  func.func @transform_4(%arg0: i32, %arg1: i32, %arg2: i32) -> (i32, i32, i32) {
    %c0_i32 = arith.constant 0 : i32
    return %arg0, %arg2, %arg1 : i32, i32, i32
  }
  func.func @transform_5(%arg0: i32, %arg1: i32, %arg2: i32) -> (i32, i32, i32) {
    %c0_i32 = arith.constant 0 : i32
    return %arg0, %arg2, %arg1 : i32, i32, i32
  }
}

module attributes {stable_mosaic.version = 11 : i64} {
  func.func @_conv_add_gelu_small_kernel(%arg0: i32, %arg1: i32, %arg2: memref<1x8x512xf32, #tpu.memory_space<vmem>>, %arg3: memref<1x8x512xf32, #tpu.memory_space<vmem>>, %arg4: memref<8x8xf32, #tpu.memory_space<smem>>, %arg5: memref<8xf32, #tpu.memory_space<smem>>, %arg6: memref<1x8x512xf32, #tpu.memory_space<vmem>>) attributes {dimension_semantics = [#tpu.dimension_semantics<parallel>, #tpu.dimension_semantics<parallel>], iteration_bounds = array<i64: 2, 1>, scalar_prefetch = 0 : i64, scratch_operands = 0 : i64, tpu.core_type = #tpu.core_type<tc>, window_params = [{transform_indices = @transform_0, window_bounds = array<i64: 1, 8, 512>}, {transform_indices = @transform_1, window_bounds = array<i64: 1, 8, 512>}, {transform_indices = @transform_2, window_bounds = array<i64: 8, 8>}, {transform_indices = @transform_3, window_bounds = array<i64: 8>}, {transform_indices = @transform_4, window_bounds = array<i64: 1, 8, 512>}]} {
    %c0 = arith.constant 0 : index
    %c0_0 = arith.constant 0 : index
    %c0_1 = arith.constant 0 : index
    %0 = vector.load %arg3[%c0, %c0_0, %c0_1] : memref<1x8x512xf32, #tpu.memory_space<vmem>>, vector<1x1x512xf32>
    %1 = vector.shape_cast %0 : vector<1x1x512xf32> to vector<1x512xf32>
    %c0_2 = arith.constant 0 : index
    %2 = memref.load %arg5[%c0_2] : memref<8xf32, #tpu.memory_space<smem>>
    %3 = vector.broadcast %2 : f32 to vector<1x512xf32>
    %4 = arith.addf %1, %3 : vector<1x512xf32>
    %c0_3 = arith.constant 0 : index
    %c0_4 = arith.constant 0 : index
    %5 = memref.load %arg4[%c0_3, %c0_4] : memref<8x8xf32, #tpu.memory_space<smem>>
    %c0_5 = arith.constant 0 : index
    %c0_6 = arith.constant 0 : index
    %c0_7 = arith.constant 0 : index
    %6 = vector.load %arg2[%c0_5, %c0_6, %c0_7] : memref<1x8x512xf32, #tpu.memory_space<vmem>>, vector<1x1x512xf32>
    %7 = vector.shape_cast %6 : vector<1x1x512xf32> to vector<1x512xf32>
    %8 = vector.broadcast %5 : f32 to vector<1x512xf32>
    %9 = arith.mulf %8, %7 : vector<1x512xf32>
    %10 = arith.addf %4, %9 : vector<1x512xf32>
    %c0_8 = arith.constant 0 : index
    %c1 = arith.constant 1 : index
    %11 = memref.load %arg4[%c0_8, %c1] : memref<8x8xf32, #tpu.memory_space<smem>>
    %c0_9 = arith.constant 0 : index
    %c1_10 = arith.constant 1 : index
    %c0_11 = arith.constant 0 : index
    %12 = vector.load %arg2[%c0_9, %c1_10, %c0_11] : memref<1x8x512xf32, #tpu.memory_space<vmem>>, vector<1x1x512xf32>
    %13 = vector.shape_cast %12 : vector<1x1x512xf32> to vector<1x512xf32>
    %14 = vector.broadcast %11 : f32 to vector<1x512xf32>
    %15 = arith.mulf %14, %13 : vector<1x512xf32>
    %16 = arith.addf %10, %15 : vector<1x512xf32>
    %c0_12 = arith.constant 0 : index
    %c2 = arith.constant 2 : index
    %17 = memref.load %arg4[%c0_12, %c2] : memref<8x8xf32, #tpu.memory_space<smem>>
    %c0_13 = arith.constant 0 : index
    %c2_14 = arith.constant 2 : index
    %c0_15 = arith.constant 0 : index
    %18 = vector.load %arg2[%c0_13, %c2_14, %c0_15] : memref<1x8x512xf32, #tpu.memory_space<vmem>>, vector<1x1x512xf32>
    %19 = vector.shape_cast %18 : vector<1x1x512xf32> to vector<1x512xf32>
    %20 = vector.broadcast %17 : f32 to vector<1x512xf32>
    %21 = arith.mulf %20, %19 : vector<1x512xf32>
    %22 = arith.addf %16, %21 : vector<1x512xf32>
    %c0_16 = arith.constant 0 : index
    %c3 = arith.constant 3 : index
    %23 = memref.load %arg4[%c0_16, %c3] : memref<8x8xf32, #tpu.memory_space<smem>>
    %c0_17 = arith.constant 0 : index
    %c3_18 = arith.constant 3 : index
    %c0_19 = arith.constant 0 : index
    %24 = vector.load %arg2[%c0_17, %c3_18, %c0_19] : memref<1x8x512xf32, #tpu.memory_space<vmem>>, vector<1x1x512xf32>
    %25 = vector.shape_cast %24 : vector<1x1x512xf32> to vector<1x512xf32>
    %26 = vector.broadcast %23 : f32 to vector<1x512xf32>
    %27 = arith.mulf %26, %25 : vector<1x512xf32>
    %28 = arith.addf %22, %27 : vector<1x512xf32>
    %c0_20 = arith.constant 0 : index
    %c4 = arith.constant 4 : index
    %29 = memref.load %arg4[%c0_20, %c4] : memref<8x8xf32, #tpu.memory_space<smem>>
    %c0_21 = arith.constant 0 : index
    %c4_22 = arith.constant 4 : index
    %c0_23 = arith.constant 0 : index
    %30 = vector.load %arg2[%c0_21, %c4_22, %c0_23] : memref<1x8x512xf32, #tpu.memory_space<vmem>>, vector<1x1x512xf32>
    %31 = vector.shape_cast %30 : vector<1x1x512xf32> to vector<1x512xf32>
    %32 = vector.broadcast %29 : f32 to vector<1x512xf32>
    %33 = arith.mulf %32, %31 : vector<1x512xf32>
    %34 = arith.addf %28, %33 : vector<1x512xf32>
    %c0_24 = arith.constant 0 : index
    %c5 = arith.constant 5 : index
    %35 = memref.load %arg4[%c0_24, %c5] : memref<8x8xf32, #tpu.memory_space<smem>>
    %c0_25 = arith.constant 0 : index
    %c5_26 = arith.constant 5 : index
    %c0_27 = arith.constant 0 : index
    %36 = vector.load %arg2[%c0_25, %c5_26, %c0_27] : memref<1x8x512xf32, #tpu.memory_space<vmem>>, vector<1x1x512xf32>
    %37 = vector.shape_cast %36 : vector<1x1x512xf32> to vector<1x512xf32>
    %38 = vector.broadcast %35 : f32 to vector<1x512xf32>
    %39 = arith.mulf %38, %37 : vector<1x512xf32>
    %40 = arith.addf %34, %39 : vector<1x512xf32>
    %c0_28 = arith.constant 0 : index
    %c6 = arith.constant 6 : index
    %41 = memref.load %arg4[%c0_28, %c6] : memref<8x8xf32, #tpu.memory_space<smem>>
    %c0_29 = arith.constant 0 : index
    %c6_30 = arith.constant 6 : index
    %c0_31 = arith.constant 0 : index
    %42 = vector.load %arg2[%c0_29, %c6_30, %c0_31] : memref<1x8x512xf32, #tpu.memory_space<vmem>>, vector<1x1x512xf32>
    %43 = vector.shape_cast %42 : vector<1x1x512xf32> to vector<1x512xf32>
    %44 = vector.broadcast %41 : f32 to vector<1x512xf32>
    %45 = arith.mulf %44, %43 : vector<1x512xf32>
    %46 = arith.addf %40, %45 : vector<1x512xf32>
    %c0_32 = arith.constant 0 : index
    %c7 = arith.constant 7 : index
    %47 = memref.load %arg4[%c0_32, %c7] : memref<8x8xf32, #tpu.memory_space<smem>>
    %c0_33 = arith.constant 0 : index
    %c7_34 = arith.constant 7 : index
    %c0_35 = arith.constant 0 : index
    %48 = vector.load %arg2[%c0_33, %c7_34, %c0_35] : memref<1x8x512xf32, #tpu.memory_space<vmem>>, vector<1x1x512xf32>
    %49 = vector.shape_cast %48 : vector<1x1x512xf32> to vector<1x512xf32>
    %50 = vector.broadcast %47 : f32 to vector<1x512xf32>
    %51 = arith.mulf %50, %49 : vector<1x512xf32>
    %52 = arith.addf %46, %51 : vector<1x512xf32>
    %cst = arith.constant 5.000000e-01 : f32
    %53 = vector.broadcast %cst : f32 to vector<1x512xf32>
    %54 = arith.mulf %53, %52 : vector<1x512xf32>
    %cst_36 = arith.constant 0.707106769 : f32
    %55 = vector.broadcast %cst_36 : f32 to vector<1x512xf32>
    %56 = arith.mulf %52, %55 : vector<1x512xf32>
    %57 = math.erf %56 : vector<1x512xf32>
    %cst_37 = arith.constant 1.000000e+00 : f32
    %58 = vector.broadcast %cst_37 : f32 to vector<1x512xf32>
    %59 = arith.addf %58, %57 : vector<1x512xf32>
    %60 = arith.mulf %54, %59 : vector<1x512xf32>
    %c0_38 = arith.constant 0 : index
    %c0_39 = arith.constant 0 : index
    %c0_40 = arith.constant 0 : index
    %61 = vector.load %arg6[%c0_38, %c0_39, %c0_40] : memref<1x8x512xf32, #tpu.memory_space<vmem>>, vector<1x1x512xf32>
    %62 = vector.shape_cast %61 : vector<1x1x512xf32> to vector<1x512xf32>
    %63 = vector.shape_cast %60 : vector<1x512xf32> to vector<1x1x512xf32>
    tpu.vector_store %arg6[%c0_38, %c0_39, %c0_40], %63 {strides = array<i32>} : memref<1x8x512xf32, #tpu.memory_space<vmem>>, vector<1x1x512xf32>,
    %c0_41 = arith.constant 0 : index
    %c1_42 = arith.constant 1 : index
    %c0_43 = arith.constant 0 : index
    %64 = vector.load %arg3[%c0_41, %c1_42, %c0_43] : memref<1x8x512xf32, #tpu.memory_space<vmem>>, vector<1x1x512xf32>
    %65 = vector.shape_cast %64 : vector<1x1x512xf32> to vector<1x512xf32>
    %c1_44 = arith.constant 1 : index
    %66 = memref.load %arg5[%c1_44] : memref<8xf32, #tpu.memory_space<smem>>
    %67 = vector.broadcast %66 : f32 to vector<1x512xf32>
    %68 = arith.addf %65, %67 : vector<1x512xf32>
    %c1_45 = arith.constant 1 : index
    %c0_46 = arith.constant 0 : index
    %69 = memref.load %arg4[%c1_45, %c0_46] : memref<8x8xf32, #tpu.memory_space<smem>>
    %c0_47 = arith.constant 0 : index
    %c0_48 = arith.constant 0 : index
    %c0_49 = arith.constant 0 : index
    %70 = vector.load %arg2[%c0_47, %c0_48, %c0_49] : memref<1x8x512xf32, #tpu.memory_space<vmem>>, vector<1x1x512xf32>
    %71 = vector.shape_cast %70 : vector<1x1x512xf32> to vector<1x512xf32>
    %72 = vector.broadcast %69 : f32 to vector<1x512xf32>
    %73 = arith.mulf %72, %71 : vector<1x512xf32>
    %74 = arith.addf %68, %73 : vector<1x512xf32>
    %c1_50 = arith.constant 1 : index
    %c1_51 = arith.constant 1 : index
    %75 = memref.load %arg4[%c1_50, %c1_51] : memref<8x8xf32, #tpu.memory_space<smem>>
    %c0_52 = arith.constant 0 : index
    %c1_53 = arith.constant 1 : index
    %c0_54 = arith.constant 0 : index
    %76 = vector.load %arg2[%c0_52, %c1_53, %c0_54] : memref<1x8x512xf32, #tpu.memory_space<vmem>>, vector<1x1x512xf32>
    %77 = vector.shape_cast %76 : vector<1x1x512xf32> to vector<1x512xf32>
    %78 = vector.broadcast %75 : f32 to vector<1x512xf32>
    %79 = arith.mulf %78, %77 : vector<1x512xf32>
    %80 = arith.addf %74, %79 : vector<1x512xf32>
    %c1_55 = arith.constant 1 : index
    %c2_56 = arith.constant 2 : index
    %81 = memref.load %arg4[%c1_55, %c2_56] : memref<8x8xf32, #tpu.memory_space<smem>>
    %c0_57 = arith.constant 0 : index
    %c2_58 = arith.constant 2 : index
    %c0_59 = arith.constant 0 : index
    %82 = vector.load %arg2[%c0_57, %c2_58, %c0_59] : memref<1x8x512xf32, #tpu.memory_space<vmem>>, vector<1x1x512xf32>
    %83 = vector.shape_cast %82 : vector<1x1x512xf32> to vector<1x512xf32>
    %84 = vector.broadcast %81 : f32 to vector<1x512xf32>
    %85 = arith.mulf %84, %83 : vector<1x512xf32>
    %86 = arith.addf %80, %85 : vector<1x512xf32>
    %c1_60 = arith.constant 1 : index
    %c3_61 = arith.constant 3 : index
    %87 = memref.load %arg4[%c1_60, %c3_61] : memref<8x8xf32, #tpu.memory_space<smem>>
    %c0_62 = arith.constant 0 : index
    %c3_63 = arith.constant 3 : index
    %c0_64 = arith.constant 0 : index
    %88 = vector.load %arg2[%c0_62, %c3_63, %c0_64] : memref<1x8x512xf32, #tpu.memory_space<vmem>>, vector<1x1x512xf32>
    %89 = vector.shape_cast %88 : vector<1x1x512xf32> to vector<1x512xf32>
    %90 = vector.broadcast %87 : f32 to vector<1x512xf32>
    %91 = arith.mulf %90, %89 : vector<1x512xf32>
    %92 = arith.addf %86, %91 : vector<1x512xf32>
    %c1_65 = arith.constant 1 : index
    %c4_66 = arith.constant 4 : index
    %93 = memref.load %arg4[%c1_65, %c4_66] : memref<8x8xf32, #tpu.memory_space<smem>>
    %c0_67 = arith.constant 0 : index
    %c4_68 = arith.constant 4 : index
    %c0_69 = arith.constant 0 : index
    %94 = vector.load %arg2[%c0_67, %c4_68, %c0_69] : memref<1x8x512xf32, #tpu.memory_space<vmem>>, vector<1x1x512xf32>
    %95 = vector.shape_cast %94 : vector<1x1x512xf32> to vector<1x512xf32>
    %96 = vector.broadcast %93 : f32 to vector<1x512xf32>
    %97 = arith.mulf %96, %95 : vector<1x512xf32>
    %98 = arith.addf %92, %97 : vector<1x512xf32>
    %c1_70 = arith.constant 1 : index
    %c5_71 = arith.constant 5 : index
    %99 = memref.load %arg4[%c1_70, %c5_71] : memref<8x8xf32, #tpu.memory_space<smem>>
    %c0_72 = arith.constant 0 : index
    %c5_73 = arith.constant 5 : index
    %c0_74 = arith.constant 0 : index
    %100 = vector.load %arg2[%c0_72, %c5_73, %c0_74] : memref<1x8x512xf32, #tpu.memory_space<vmem>>, vector<1x1x512xf32>
    %101 = vector.shape_cast %100 : vector<1x1x512xf32> to vector<1x512xf32>
    %102 = vector.broadcast %99 : f32 to vector<1x512xf32>
    %103 = arith.mulf %102, %101 : vector<1x512xf32>
    %104 = arith.addf %98, %103 : vector<1x512xf32>
    %c1_75 = arith.constant 1 : index
    %c6_76 = arith.constant 6 : index
    %105 = memref.load %arg4[%c1_75, %c6_76] : memref<8x8xf32, #tpu.memory_space<smem>>
    %c0_77 = arith.constant 0 : index
    %c6_78 = arith.constant 6 : index
    %c0_79 = arith.constant 0 : index
    %106 = vector.load %arg2[%c0_77, %c6_78, %c0_79] : memref<1x8x512xf32, #tpu.memory_space<vmem>>, vector<1x1x512xf32>
    %107 = vector.shape_cast %106 : vector<1x1x512xf32> to vector<1x512xf32>
    %108 = vector.broadcast %105 : f32 to vector<1x512xf32>
    %109 = arith.mulf %108, %107 : vector<1x512xf32>
    %110 = arith.addf %104, %109 : vector<1x512xf32>
    %c1_80 = arith.constant 1 : index
    %c7_81 = arith.constant 7 : index
    %111 = memref.load %arg4[%c1_80, %c7_81] : memref<8x8xf32, #tpu.memory_space<smem>>
    %c0_82 = arith.constant 0 : index
    %c7_83 = arith.constant 7 : index
    %c0_84 = arith.constant 0 : index
    %112 = vector.load %arg2[%c0_82, %c7_83, %c0_84] : memref<1x8x512xf32, #tpu.memory_space<vmem>>, vector<1x1x512xf32>
    %113 = vector.shape_cast %112 : vector<1x1x512xf32> to vector<1x512xf32>
    %114 = vector.broadcast %111 : f32 to vector<1x512xf32>
    %115 = arith.mulf %114, %113 : vector<1x512xf32>
    %116 = arith.addf %110, %115 : vector<1x512xf32>
    %cst_85 = arith.constant 5.000000e-01 : f32
    %117 = vector.broadcast %cst_85 : f32 to vector<1x512xf32>
    %118 = arith.mulf %117, %116 : vector<1x512xf32>
    %cst_86 = arith.constant 0.707106769 : f32
    %119 = vector.broadcast %cst_86 : f32 to vector<1x512xf32>
    %120 = arith.mulf %116, %119 : vector<1x512xf32>
    %121 = math.erf %120 : vector<1x512xf32>
    %cst_87 = arith.constant 1.000000e+00 : f32
    %122 = vector.broadcast %cst_87 : f32 to vector<1x512xf32>
    %123 = arith.addf %122, %121 : vector<1x512xf32>
    %124 = arith.mulf %118, %123 : vector<1x512xf32>
    %c0_88 = arith.constant 0 : index
    %c1_89 = arith.constant 1 : index
    %c0_90 = arith.constant 0 : index
    %125 = vector.load %arg6[%c0_88, %c1_89, %c0_90] : memref<1x8x512xf32, #tpu.memory_space<vmem>>, vector<1x1x512xf32>
    %126 = vector.shape_cast %125 : vector<1x1x512xf32> to vector<1x512xf32>
    %127 = vector.shape_cast %124 : vector<1x512xf32> to vector<1x1x512xf32>
    tpu.vector_store %arg6[%c0_88, %c1_89, %c0_90], %127 {strides = array<i32>} : memref<1x8x512xf32, #tpu.memory_space<vmem>>, vector<1x1x512xf32>,
    %c0_91 = arith.constant 0 : index
    %c2_92 = arith.constant 2 : index
    %c0_93 = arith.constant 0 : index
    %128 = vector.load %arg3[%c0_91, %c2_92, %c0_93] : memref<1x8x512xf32, #tpu.memory_space<vmem>>, vector<1x1x512xf32>
    %129 = vector.shape_cast %128 : vector<1x1x512xf32> to vector<1x512xf32>
    %c2_94 = arith.constant 2 : index
    %130 = memref.load %arg5[%c2_94] : memref<8xf32, #tpu.memory_space<smem>>
    %131 = vector.broadcast %130 : f32 to vector<1x512xf32>
    %132 = arith.addf %129, %131 : vector<1x512xf32>
    %c2_95 = arith.constant 2 : index
    %c0_96 = arith.constant 0 : index
    %133 = memref.load %arg4[%c2_95, %c0_96] : memref<8x8xf32, #tpu.memory_space<smem>>
    %c0_97 = arith.constant 0 : index
    %c0_98 = arith.constant 0 : index
    %c0_99 = arith.constant 0 : index
    %134 = vector.load %arg2[%c0_97, %c0_98, %c0_99] : memref<1x8x512xf32, #tpu.memory_space<vmem>>, vector<1x1x512xf32>
    %135 = vector.shape_cast %134 : vector<1x1x512xf32> to vector<1x512xf32>
    %136 = vector.broadcast %133 : f32 to vector<1x512xf32>
    %137 = arith.mulf %136, %135 : vector<1x512xf32>
    %138 = arith.addf %132, %137 : vector<1x512xf32>
    %c2_100 = arith.constant 2 : index
    %c1_101 = arith.constant 1 : index
    %139 = memref.load %arg4[%c2_100, %c1_101] : memref<8x8xf32, #tpu.memory_space<smem>>
    %c0_102 = arith.constant 0 : index
    %c1_103 = arith.constant 1 : index
    %c0_104 = arith.constant 0 : index
    %140 = vector.load %arg2[%c0_102, %c1_103, %c0_104] : memref<1x8x512xf32, #tpu.memory_space<vmem>>, vector<1x1x512xf32>
    %141 = vector.shape_cast %140 : vector<1x1x512xf32> to vector<1x512xf32>
    %142 = vector.broadcast %139 : f32 to vector<1x512xf32>
    %143 = arith.mulf %142, %141 : vector<1x512xf32>
    %144 = arith.addf %138, %143 : vector<1x512xf32>
    %c2_105 = arith.constant 2 : index
    %c2_106 = arith.constant 2 : index
    %145 = memref.load %arg4[%c2_105, %c2_106] : memref<8x8xf32, #tpu.memory_space<smem>>
    %c0_107 = arith.constant 0 : index
    %c2_108 = arith.constant 2 : index
    %c0_109 = arith.constant 0 : index
    %146 = vector.load %arg2[%c0_107, %c2_108, %c0_109] : memref<1x8x512xf32, #tpu.memory_space<vmem>>, vector<1x1x512xf32>
    %147 = vector.shape_cast %146 : vector<1x1x512xf32> to vector<1x512xf32>
    %148 = vector.broadcast %145 : f32 to vector<1x512xf32>
    %149 = arith.mulf %148, %147 : vector<1x512xf32>
    %150 = arith.addf %144, %149 : vector<1x512xf32>
    %c2_110 = arith.constant 2 : index
    %c3_111 = arith.constant 3 : index
    %151 = memref.load %arg4[%c2_110, %c3_111] : memref<8x8xf32, #tpu.memory_space<smem>>
    %c0_112 = arith.constant 0 : index
    %c3_113 = arith.constant 3 : index
    %c0_114 = arith.constant 0 : index
    %152 = vector.load %arg2[%c0_112, %c3_113, %c0_114] : memref<1x8x512xf32, #tpu.memory_space<vmem>>, vector<1x1x512xf32>
    %153 = vector.shape_cast %152 : vector<1x1x512xf32> to vector<1x512xf32>
    %154 = vector.broadcast %151 : f32 to vector<1x512xf32>
    %155 = arith.mulf %154, %153 : vector<1x512xf32>
    %156 = arith.addf %150, %155 : vector<1x512xf32>
    %c2_115 = arith.constant 2 : index
    %c4_116 = arith.constant 4 : index
    %157 = memref.load %arg4[%c2_115, %c4_116] : memref<8x8xf32, #tpu.memory_space<smem>>
    %c0_117 = arith.constant 0 : index
    %c4_118 = arith.constant 4 : index
    %c0_119 = arith.constant 0 : index
    %158 = vector.load %arg2[%c0_117, %c4_118, %c0_119] : memref<1x8x512xf32, #tpu.memory_space<vmem>>, vector<1x1x512xf32>
    %159 = vector.shape_cast %158 : vector<1x1x512xf32> to vector<1x512xf32>
    %160 = vector.broadcast %157 : f32 to vector<1x512xf32>
    %161 = arith.mulf %160, %159 : vector<1x512xf32>
    %162 = arith.addf %156, %161 : vector<1x512xf32>
    %c2_120 = arith.constant 2 : index
    %c5_121 = arith.constant 5 : index
    %163 = memref.load %arg4[%c2_120, %c5_121] : memref<8x8xf32, #tpu.memory_space<smem>>
    %c0_122 = arith.constant 0 : index
    %c5_123 = arith.constant 5 : index
    %c0_124 = arith.constant 0 : index
    %164 = vector.load %arg2[%c0_122, %c5_123, %c0_124] : memref<1x8x512xf32, #tpu.memory_space<vmem>>, vector<1x1x512xf32>
    %165 = vector.shape_cast %164 : vector<1x1x512xf32> to vector<1x512xf32>
    %166 = vector.broadcast %163 : f32 to vector<1x512xf32>
    %167 = arith.mulf %166, %165 : vector<1x512xf32>
    %168 = arith.addf %162, %167 : vector<1x512xf32>
    %c2_125 = arith.constant 2 : index
    %c6_126 = arith.constant 6 : index
    %169 = memref.load %arg4[%c2_125, %c6_126] : memref<8x8xf32, #tpu.memory_space<smem>>
    %c0_127 = arith.constant 0 : index
    %c6_128 = arith.constant 6 : index
    %c0_129 = arith.constant 0 : index
    %170 = vector.load %arg2[%c0_127, %c6_128, %c0_129] : memref<1x8x512xf32, #tpu.memory_space<vmem>>, vector<1x1x512xf32>
    %171 = vector.shape_cast %170 : vector<1x1x512xf32> to vector<1x512xf32>
    %172 = vector.broadcast %169 : f32 to vector<1x512xf32>
    %173 = arith.mulf %172, %171 : vector<1x512xf32>
    %174 = arith.addf %168, %173 : vector<1x512xf32>
    %c2_130 = arith.constant 2 : index
    %c7_131 = arith.constant 7 : index
    %175 = memref.load %arg4[%c2_130, %c7_131] : memref<8x8xf32, #tpu.memory_space<smem>>
    %c0_132 = arith.constant 0 : index
    %c7_133 = arith.constant 7 : index
    %c0_134 = arith.constant 0 : index
    %176 = vector.load %arg2[%c0_132, %c7_133, %c0_134] : memref<1x8x512xf32, #tpu.memory_space<vmem>>, vector<1x1x512xf32>
    %177 = vector.shape_cast %176 : vector<1x1x512xf32> to vector<1x512xf32>
    %178 = vector.broadcast %175 : f32 to vector<1x512xf32>
    %179 = arith.mulf %178, %177 : vector<1x512xf32>
    %180 = arith.addf %174, %179 : vector<1x512xf32>
    %cst_135 = arith.constant 5.000000e-01 : f32
    %181 = vector.broadcast %cst_135 : f32 to vector<1x512xf32>
    %182 = arith.mulf %181, %180 : vector<1x512xf32>
    %cst_136 = arith.constant 0.707106769 : f32
    %183 = vector.broadcast %cst_136 : f32 to vector<1x512xf32>
    %184 = arith.mulf %180, %183 : vector<1x512xf32>
    %185 = math.erf %184 : vector<1x512xf32>
    %cst_137 = arith.constant 1.000000e+00 : f32
    %186 = vector.broadcast %cst_137 : f32 to vector<1x512xf32>
    %187 = arith.addf %186, %185 : vector<1x512xf32>
    %188 = arith.mulf %182, %187 : vector<1x512xf32>
    %c0_138 = arith.constant 0 : index
    %c2_139 = arith.constant 2 : index
    %c0_140 = arith.constant 0 : index
    %189 = vector.load %arg6[%c0_138, %c2_139, %c0_140] : memref<1x8x512xf32, #tpu.memory_space<vmem>>, vector<1x1x512xf32>
    %190 = vector.shape_cast %189 : vector<1x1x512xf32> to vector<1x512xf32>
    %191 = vector.shape_cast %188 : vector<1x512xf32> to vector<1x1x512xf32>
    tpu.vector_store %arg6[%c0_138, %c2_139, %c0_140], %191 {strides = array<i32>} : memref<1x8x512xf32, #tpu.memory_space<vmem>>, vector<1x1x512xf32>,
    %c0_141 = arith.constant 0 : index
    %c3_142 = arith.constant 3 : index
    %c0_143 = arith.constant 0 : index
    %192 = vector.load %arg3[%c0_141, %c3_142, %c0_143] : memref<1x8x512xf32, #tpu.memory_space<vmem>>, vector<1x1x512xf32>
    %193 = vector.shape_cast %192 : vector<1x1x512xf32> to vector<1x512xf32>
    %c3_144 = arith.constant 3 : index
    %194 = memref.load %arg5[%c3_144] : memref<8xf32, #tpu.memory_space<smem>>
    %195 = vector.broadcast %194 : f32 to vector<1x512xf32>
    %196 = arith.addf %193, %195 : vector<1x512xf32>
    %c3_145 = arith.constant 3 : index
    %c0_146 = arith.constant 0 : index
    %197 = memref.load %arg4[%c3_145, %c0_146] : memref<8x8xf32, #tpu.memory_space<smem>>
    %c0_147 = arith.constant 0 : index
    %c0_148 = arith.constant 0 : index
    %c0_149 = arith.constant 0 : index
    %198 = vector.load %arg2[%c0_147, %c0_148, %c0_149] : memref<1x8x512xf32, #tpu.memory_space<vmem>>, vector<1x1x512xf32>
    %199 = vector.shape_cast %198 : vector<1x1x512xf32> to vector<1x512xf32>
    %200 = vector.broadcast %197 : f32 to vector<1x512xf32>
    %201 = arith.mulf %200, %199 : vector<1x512xf32>
    %202 = arith.addf %196, %201 : vector<1x512xf32>
    %c3_150 = arith.constant 3 : index
    %c1_151 = arith.constant 1 : index
    %203 = memref.load %arg4[%c3_150, %c1_151] : memref<8x8xf32, #tpu.memory_space<smem>>
    %c0_152 = arith.constant 0 : index
    %c1_153 = arith.constant 1 : index
    %c0_154 = arith.constant 0 : index
    %204 = vector.load %arg2[%c0_152, %c1_153, %c0_154] : memref<1x8x512xf32, #tpu.memory_space<vmem>>, vector<1x1x512xf32>
    %205 = vector.shape_cast %204 : vector<1x1x512xf32> to vector<1x512xf32>
    %206 = vector.broadcast %203 : f32 to vector<1x512xf32>
    %207 = arith.mulf %206, %205 : vector<1x512xf32>
    %208 = arith.addf %202, %207 : vector<1x512xf32>
    %c3_155 = arith.constant 3 : index
    %c2_156 = arith.constant 2 : index
    %209 = memref.load %arg4[%c3_155, %c2_156] : memref<8x8xf32, #tpu.memory_space<smem>>
    %c0_157 = arith.constant 0 : index
    %c2_158 = arith.constant 2 : index
    %c0_159 = arith.constant 0 : index
    %210 = vector.load %arg2[%c0_157, %c2_158, %c0_159] : memref<1x8x512xf32, #tpu.memory_space<vmem>>, vector<1x1x512xf32>
    %211 = vector.shape_cast %210 : vector<1x1x512xf32> to vector<1x512xf32>
    %212 = vector.broadcast %209 : f32 to vector<1x512xf32>
    %213 = arith.mulf %212, %211 : vector<1x512xf32>
    %214 = arith.addf %208, %213 : vector<1x512xf32>
    %c3_160 = arith.constant 3 : index
    %c3_161 = arith.constant 3 : index
    %215 = memref.load %arg4[%c3_160, %c3_161] : memref<8x8xf32, #tpu.memory_space<smem>>
    %c0_162 = arith.constant 0 : index
    %c3_163 = arith.constant 3 : index
    %c0_164 = arith.constant 0 : index
    %216 = vector.load %arg2[%c0_162, %c3_163, %c0_164] : memref<1x8x512xf32, #tpu.memory_space<vmem>>, vector<1x1x512xf32>
    %217 = vector.shape_cast %216 : vector<1x1x512xf32> to vector<1x512xf32>
    %218 = vector.broadcast %215 : f32 to vector<1x512xf32>
    %219 = arith.mulf %218, %217 : vector<1x512xf32>
    %220 = arith.addf %214, %219 : vector<1x512xf32>
    %c3_165 = arith.constant 3 : index
    %c4_166 = arith.constant 4 : index
    %221 = memref.load %arg4[%c3_165, %c4_166] : memref<8x8xf32, #tpu.memory_space<smem>>
    %c0_167 = arith.constant 0 : index
    %c4_168 = arith.constant 4 : index
    %c0_169 = arith.constant 0 : index
    %222 = vector.load %arg2[%c0_167, %c4_168, %c0_169] : memref<1x8x512xf32, #tpu.memory_space<vmem>>, vector<1x1x512xf32>
    %223 = vector.shape_cast %222 : vector<1x1x512xf32> to vector<1x512xf32>
    %224 = vector.broadcast %221 : f32 to vector<1x512xf32>
    %225 = arith.mulf %224, %223 : vector<1x512xf32>
    %226 = arith.addf %220, %225 : vector<1x512xf32>
    %c3_170 = arith.constant 3 : index
    %c5_171 = arith.constant 5 : index
    %227 = memref.load %arg4[%c3_170, %c5_171] : memref<8x8xf32, #tpu.memory_space<smem>>
    %c0_172 = arith.constant 0 : index
    %c5_173 = arith.constant 5 : index
    %c0_174 = arith.constant 0 : index
    %228 = vector.load %arg2[%c0_172, %c5_173, %c0_174] : memref<1x8x512xf32, #tpu.memory_space<vmem>>, vector<1x1x512xf32>
    %229 = vector.shape_cast %228 : vector<1x1x512xf32> to vector<1x512xf32>
    %230 = vector.broadcast %227 : f32 to vector<1x512xf32>
    %231 = arith.mulf %230, %229 : vector<1x512xf32>
    %232 = arith.addf %226, %231 : vector<1x512xf32>
    %c3_175 = arith.constant 3 : index
    %c6_176 = arith.constant 6 : index
    %233 = memref.load %arg4[%c3_175, %c6_176] : memref<8x8xf32, #tpu.memory_space<smem>>
    %c0_177 = arith.constant 0 : index
    %c6_178 = arith.constant 6 : index
    %c0_179 = arith.constant 0 : index
    %234 = vector.load %arg2[%c0_177, %c6_178, %c0_179] : memref<1x8x512xf32, #tpu.memory_space<vmem>>, vector<1x1x512xf32>
    %235 = vector.shape_cast %234 : vector<1x1x512xf32> to vector<1x512xf32>
    %236 = vector.broadcast %233 : f32 to vector<1x512xf32>
    %237 = arith.mulf %236, %235 : vector<1x512xf32>
    %238 = arith.addf %232, %237 : vector<1x512xf32>
    %c3_180 = arith.constant 3 : index
    %c7_181 = arith.constant 7 : index
    %239 = memref.load %arg4[%c3_180, %c7_181] : memref<8x8xf32, #tpu.memory_space<smem>>
    %c0_182 = arith.constant 0 : index
    %c7_183 = arith.constant 7 : index
    %c0_184 = arith.constant 0 : index
    %240 = vector.load %arg2[%c0_182, %c7_183, %c0_184] : memref<1x8x512xf32, #tpu.memory_space<vmem>>, vector<1x1x512xf32>
    %241 = vector.shape_cast %240 : vector<1x1x512xf32> to vector<1x512xf32>
    %242 = vector.broadcast %239 : f32 to vector<1x512xf32>
    %243 = arith.mulf %242, %241 : vector<1x512xf32>
    %244 = arith.addf %238, %243 : vector<1x512xf32>
    %cst_185 = arith.constant 5.000000e-01 : f32
    %245 = vector.broadcast %cst_185 : f32 to vector<1x512xf32>
    %246 = arith.mulf %245, %244 : vector<1x512xf32>
    %cst_186 = arith.constant 0.707106769 : f32
    %247 = vector.broadcast %cst_186 : f32 to vector<1x512xf32>
    %248 = arith.mulf %244, %247 : vector<1x512xf32>
    %249 = math.erf %248 : vector<1x512xf32>
    %cst_187 = arith.constant 1.000000e+00 : f32
    %250 = vector.broadcast %cst_187 : f32 to vector<1x512xf32>
    %251 = arith.addf %250, %249 : vector<1x512xf32>
    %252 = arith.mulf %246, %251 : vector<1x512xf32>
    %c0_188 = arith.constant 0 : index
    %c3_189 = arith.constant 3 : index
    %c0_190 = arith.constant 0 : index
    %253 = vector.load %arg6[%c0_188, %c3_189, %c0_190] : memref<1x8x512xf32, #tpu.memory_space<vmem>>, vector<1x1x512xf32>
    %254 = vector.shape_cast %253 : vector<1x1x512xf32> to vector<1x512xf32>
    %255 = vector.shape_cast %252 : vector<1x512xf32> to vector<1x1x512xf32>
    tpu.vector_store %arg6[%c0_188, %c3_189, %c0_190], %255 {strides = array<i32>} : memref<1x8x512xf32, #tpu.memory_space<vmem>>, vector<1x1x512xf32>,
    %c0_191 = arith.constant 0 : index
    %c4_192 = arith.constant 4 : index
    %c0_193 = arith.constant 0 : index
    %256 = vector.load %arg3[%c0_191, %c4_192, %c0_193] : memref<1x8x512xf32, #tpu.memory_space<vmem>>, vector<1x1x512xf32>
    %257 = vector.shape_cast %256 : vector<1x1x512xf32> to vector<1x512xf32>
    %c4_194 = arith.constant 4 : index
    %258 = memref.load %arg5[%c4_194] : memref<8xf32, #tpu.memory_space<smem>>
    %259 = vector.broadcast %258 : f32 to vector<1x512xf32>
    %260 = arith.addf %257, %259 : vector<1x512xf32>
    %c4_195 = arith.constant 4 : index
    %c0_196 = arith.constant 0 : index
    %261 = memref.load %arg4[%c4_195, %c0_196] : memref<8x8xf32, #tpu.memory_space<smem>>
    %c0_197 = arith.constant 0 : index
    %c0_198 = arith.constant 0 : index
    %c0_199 = arith.constant 0 : index
    %262 = vector.load %arg2[%c0_197, %c0_198, %c0_199] : memref<1x8x512xf32, #tpu.memory_space<vmem>>, vector<1x1x512xf32>
    %263 = vector.shape_cast %262 : vector<1x1x512xf32> to vector<1x512xf32>
    %264 = vector.broadcast %261 : f32 to vector<1x512xf32>
    %265 = arith.mulf %264, %263 : vector<1x512xf32>
    %266 = arith.addf %260, %265 : vector<1x512xf32>
    %c4_200 = arith.constant 4 : index
    %c1_201 = arith.constant 1 : index
    %267 = memref.load %arg4[%c4_200, %c1_201] : memref<8x8xf32, #tpu.memory_space<smem>>
    %c0_202 = arith.constant 0 : index
    %c1_203 = arith.constant 1 : index
    %c0_204 = arith.constant 0 : index
    %268 = vector.load %arg2[%c0_202, %c1_203, %c0_204] : memref<1x8x512xf32, #tpu.memory_space<vmem>>, vector<1x1x512xf32>
    %269 = vector.shape_cast %268 : vector<1x1x512xf32> to vector<1x512xf32>
    %270 = vector.broadcast %267 : f32 to vector<1x512xf32>
    %271 = arith.mulf %270, %269 : vector<1x512xf32>
    %272 = arith.addf %266, %271 : vector<1x512xf32>
    %c4_205 = arith.constant 4 : index
    %c2_206 = arith.constant 2 : index
    %273 = memref.load %arg4[%c4_205, %c2_206] : memref<8x8xf32, #tpu.memory_space<smem>>
    %c0_207 = arith.constant 0 : index
    %c2_208 = arith.constant 2 : index
    %c0_209 = arith.constant 0 : index
    %274 = vector.load %arg2[%c0_207, %c2_208, %c0_209] : memref<1x8x512xf32, #tpu.memory_space<vmem>>, vector<1x1x512xf32>
    %275 = vector.shape_cast %274 : vector<1x1x512xf32> to vector<1x512xf32>
    %276 = vector.broadcast %273 : f32 to vector<1x512xf32>
    %277 = arith.mulf %276, %275 : vector<1x512xf32>
    %278 = arith.addf %272, %277 : vector<1x512xf32>
    %c4_210 = arith.constant 4 : index
    %c3_211 = arith.constant 3 : index
    %279 = memref.load %arg4[%c4_210, %c3_211] : memref<8x8xf32, #tpu.memory_space<smem>>
    %c0_212 = arith.constant 0 : index
    %c3_213 = arith.constant 3 : index
    %c0_214 = arith.constant 0 : index
    %280 = vector.load %arg2[%c0_212, %c3_213, %c0_214] : memref<1x8x512xf32, #tpu.memory_space<vmem>>, vector<1x1x512xf32>
    %281 = vector.shape_cast %280 : vector<1x1x512xf32> to vector<1x512xf32>
    %282 = vector.broadcast %279 : f32 to vector<1x512xf32>
    %283 = arith.mulf %282, %281 : vector<1x512xf32>
    %284 = arith.addf %278, %283 : vector<1x512xf32>
    %c4_215 = arith.constant 4 : index
    %c4_216 = arith.constant 4 : index
    %285 = memref.load %arg4[%c4_215, %c4_216] : memref<8x8xf32, #tpu.memory_space<smem>>
    %c0_217 = arith.constant 0 : index
    %c4_218 = arith.constant 4 : index
    %c0_219 = arith.constant 0 : index
    %286 = vector.load %arg2[%c0_217, %c4_218, %c0_219] : memref<1x8x512xf32, #tpu.memory_space<vmem>>, vector<1x1x512xf32>
    %287 = vector.shape_cast %286 : vector<1x1x512xf32> to vector<1x512xf32>
    %288 = vector.broadcast %285 : f32 to vector<1x512xf32>
    %289 = arith.mulf %288, %287 : vector<1x512xf32>
    %290 = arith.addf %284, %289 : vector<1x512xf32>
    %c4_220 = arith.constant 4 : index
    %c5_221 = arith.constant 5 : index
    %291 = memref.load %arg4[%c4_220, %c5_221] : memref<8x8xf32, #tpu.memory_space<smem>>
    %c0_222 = arith.constant 0 : index
    %c5_223 = arith.constant 5 : index
    %c0_224 = arith.constant 0 : index
    %292 = vector.load %arg2[%c0_222, %c5_223, %c0_224] : memref<1x8x512xf32, #tpu.memory_space<vmem>>, vector<1x1x512xf32>
    %293 = vector.shape_cast %292 : vector<1x1x512xf32> to vector<1x512xf32>
    %294 = vector.broadcast %291 : f32 to vector<1x512xf32>
    %295 = arith.mulf %294, %293 : vector<1x512xf32>
    %296 = arith.addf %290, %295 : vector<1x512xf32>
    %c4_225 = arith.constant 4 : index
    %c6_226 = arith.constant 6 : index
    %297 = memref.load %arg4[%c4_225, %c6_226] : memref<8x8xf32, #tpu.memory_space<smem>>
    %c0_227 = arith.constant 0 : index
    %c6_228 = arith.constant 6 : index
    %c0_229 = arith.constant 0 : index
    %298 = vector.load %arg2[%c0_227, %c6_228, %c0_229] : memref<1x8x512xf32, #tpu.memory_space<vmem>>, vector<1x1x512xf32>
    %299 = vector.shape_cast %298 : vector<1x1x512xf32> to vector<1x512xf32>
    %300 = vector.broadcast %297 : f32 to vector<1x512xf32>
    %301 = arith.mulf %300, %299 : vector<1x512xf32>
    %302 = arith.addf %296, %301 : vector<1x512xf32>
    %c4_230 = arith.constant 4 : index
    %c7_231 = arith.constant 7 : index
    %303 = memref.load %arg4[%c4_230, %c7_231] : memref<8x8xf32, #tpu.memory_space<smem>>
    %c0_232 = arith.constant 0 : index
    %c7_233 = arith.constant 7 : index
    %c0_234 = arith.constant 0 : index
    %304 = vector.load %arg2[%c0_232, %c7_233, %c0_234] : memref<1x8x512xf32, #tpu.memory_space<vmem>>, vector<1x1x512xf32>
    %305 = vector.shape_cast %304 : vector<1x1x512xf32> to vector<1x512xf32>
    %306 = vector.broadcast %303 : f32 to vector<1x512xf32>
    %307 = arith.mulf %306, %305 : vector<1x512xf32>
    %308 = arith.addf %302, %307 : vector<1x512xf32>
    %cst_235 = arith.constant 5.000000e-01 : f32
    %309 = vector.broadcast %cst_235 : f32 to vector<1x512xf32>
    %310 = arith.mulf %309, %308 : vector<1x512xf32>
    %cst_236 = arith.constant 0.707106769 : f32
    %311 = vector.broadcast %cst_236 : f32 to vector<1x512xf32>
    %312 = arith.mulf %308, %311 : vector<1x512xf32>
    %313 = math.erf %312 : vector<1x512xf32>
    %cst_237 = arith.constant 1.000000e+00 : f32
    %314 = vector.broadcast %cst_237 : f32 to vector<1x512xf32>
    %315 = arith.addf %314, %313 : vector<1x512xf32>
    %316 = arith.mulf %310, %315 : vector<1x512xf32>
    %c0_238 = arith.constant 0 : index
    %c4_239 = arith.constant 4 : index
    %c0_240 = arith.constant 0 : index
    %317 = vector.load %arg6[%c0_238, %c4_239, %c0_240] : memref<1x8x512xf32, #tpu.memory_space<vmem>>, vector<1x1x512xf32>
    %318 = vector.shape_cast %317 : vector<1x1x512xf32> to vector<1x512xf32>
    %319 = vector.shape_cast %316 : vector<1x512xf32> to vector<1x1x512xf32>
    tpu.vector_store %arg6[%c0_238, %c4_239, %c0_240], %319 {strides = array<i32>} : memref<1x8x512xf32, #tpu.memory_space<vmem>>, vector<1x1x512xf32>,
    %c0_241 = arith.constant 0 : index
    %c5_242 = arith.constant 5 : index
    %c0_243 = arith.constant 0 : index
    %320 = vector.load %arg3[%c0_241, %c5_242, %c0_243] : memref<1x8x512xf32, #tpu.memory_space<vmem>>, vector<1x1x512xf32>
    %321 = vector.shape_cast %320 : vector<1x1x512xf32> to vector<1x512xf32>
    %c5_244 = arith.constant 5 : index
    %322 = memref.load %arg5[%c5_244] : memref<8xf32, #tpu.memory_space<smem>>
    %323 = vector.broadcast %322 : f32 to vector<1x512xf32>
    %324 = arith.addf %321, %323 : vector<1x512xf32>
    %c5_245 = arith.constant 5 : index
    %c0_246 = arith.constant 0 : index
    %325 = memref.load %arg4[%c5_245, %c0_246] : memref<8x8xf32, #tpu.memory_space<smem>>
    %c0_247 = arith.constant 0 : index
    %c0_248 = arith.constant 0 : index
    %c0_249 = arith.constant 0 : index
    %326 = vector.load %arg2[%c0_247, %c0_248, %c0_249] : memref<1x8x512xf32, #tpu.memory_space<vmem>>, vector<1x1x512xf32>
    %327 = vector.shape_cast %326 : vector<1x1x512xf32> to vector<1x512xf32>
    %328 = vector.broadcast %325 : f32 to vector<1x512xf32>
    %329 = arith.mulf %328, %327 : vector<1x512xf32>
    %330 = arith.addf %324, %329 : vector<1x512xf32>
    %c5_250 = arith.constant 5 : index
    %c1_251 = arith.constant 1 : index
    %331 = memref.load %arg4[%c5_250, %c1_251] : memref<8x8xf32, #tpu.memory_space<smem>>
    %c0_252 = arith.constant 0 : index
    %c1_253 = arith.constant 1 : index
    %c0_254 = arith.constant 0 : index
    %332 = vector.load %arg2[%c0_252, %c1_253, %c0_254] : memref<1x8x512xf32, #tpu.memory_space<vmem>>, vector<1x1x512xf32>
    %333 = vector.shape_cast %332 : vector<1x1x512xf32> to vector<1x512xf32>
    %334 = vector.broadcast %331 : f32 to vector<1x512xf32>
    %335 = arith.mulf %334, %333 : vector<1x512xf32>
    %336 = arith.addf %330, %335 : vector<1x512xf32>
    %c5_255 = arith.constant 5 : index
    %c2_256 = arith.constant 2 : index
    %337 = memref.load %arg4[%c5_255, %c2_256] : memref<8x8xf32, #tpu.memory_space<smem>>
    %c0_257 = arith.constant 0 : index
    %c2_258 = arith.constant 2 : index
    %c0_259 = arith.constant 0 : index
    %338 = vector.load %arg2[%c0_257, %c2_258, %c0_259] : memref<1x8x512xf32, #tpu.memory_space<vmem>>, vector<1x1x512xf32>
    %339 = vector.shape_cast %338 : vector<1x1x512xf32> to vector<1x512xf32>
    %340 = vector.broadcast %337 : f32 to vector<1x512xf32>
    %341 = arith.mulf %340, %339 : vector<1x512xf32>
    %342 = arith.addf %336, %341 : vector<1x512xf32>
    %c5_260 = arith.constant 5 : index
    %c3_261 = arith.constant 3 : index
    %343 = memref.load %arg4[%c5_260, %c3_261] : memref<8x8xf32, #tpu.memory_space<smem>>
    %c0_262 = arith.constant 0 : index
    %c3_263 = arith.constant 3 : index
    %c0_264 = arith.constant 0 : index
    %344 = vector.load %arg2[%c0_262, %c3_263, %c0_264] : memref<1x8x512xf32, #tpu.memory_space<vmem>>, vector<1x1x512xf32>
    %345 = vector.shape_cast %344 : vector<1x1x512xf32> to vector<1x512xf32>
    %346 = vector.broadcast %343 : f32 to vector<1x512xf32>
    %347 = arith.mulf %346, %345 : vector<1x512xf32>
    %348 = arith.addf %342, %347 : vector<1x512xf32>
    %c5_265 = arith.constant 5 : index
    %c4_266 = arith.constant 4 : index
    %349 = memref.load %arg4[%c5_265, %c4_266] : memref<8x8xf32, #tpu.memory_space<smem>>
    %c0_267 = arith.constant 0 : index
    %c4_268 = arith.constant 4 : index
    %c0_269 = arith.constant 0 : index
    %350 = vector.load %arg2[%c0_267, %c4_268, %c0_269] : memref<1x8x512xf32, #tpu.memory_space<vmem>>, vector<1x1x512xf32>
    %351 = vector.shape_cast %350 : vector<1x1x512xf32> to vector<1x512xf32>
    %352 = vector.broadcast %349 : f32 to vector<1x512xf32>
    %353 = arith.mulf %352, %351 : vector<1x512xf32>
    %354 = arith.addf %348, %353 : vector<1x512xf32>
    %c5_270 = arith.constant 5 : index
    %c5_271 = arith.constant 5 : index
    %355 = memref.load %arg4[%c5_270, %c5_271] : memref<8x8xf32, #tpu.memory_space<smem>>
    %c0_272 = arith.constant 0 : index
    %c5_273 = arith.constant 5 : index
    %c0_274 = arith.constant 0 : index
    %356 = vector.load %arg2[%c0_272, %c5_273, %c0_274] : memref<1x8x512xf32, #tpu.memory_space<vmem>>, vector<1x1x512xf32>
    %357 = vector.shape_cast %356 : vector<1x1x512xf32> to vector<1x512xf32>
    %358 = vector.broadcast %355 : f32 to vector<1x512xf32>
    %359 = arith.mulf %358, %357 : vector<1x512xf32>
    %360 = arith.addf %354, %359 : vector<1x512xf32>
    %c5_275 = arith.constant 5 : index
    %c6_276 = arith.constant 6 : index
    %361 = memref.load %arg4[%c5_275, %c6_276] : memref<8x8xf32, #tpu.memory_space<smem>>
    %c0_277 = arith.constant 0 : index
    %c6_278 = arith.constant 6 : index
    %c0_279 = arith.constant 0 : index
    %362 = vector.load %arg2[%c0_277, %c6_278, %c0_279] : memref<1x8x512xf32, #tpu.memory_space<vmem>>, vector<1x1x512xf32>
    %363 = vector.shape_cast %362 : vector<1x1x512xf32> to vector<1x512xf32>
    %364 = vector.broadcast %361 : f32 to vector<1x512xf32>
    %365 = arith.mulf %364, %363 : vector<1x512xf32>
    %366 = arith.addf %360, %365 : vector<1x512xf32>
    %c5_280 = arith.constant 5 : index
    %c7_281 = arith.constant 7 : index
    %367 = memref.load %arg4[%c5_280, %c7_281] : memref<8x8xf32, #tpu.memory_space<smem>>
    %c0_282 = arith.constant 0 : index
    %c7_283 = arith.constant 7 : index
    %c0_284 = arith.constant 0 : index
    %368 = vector.load %arg2[%c0_282, %c7_283, %c0_284] : memref<1x8x512xf32, #tpu.memory_space<vmem>>, vector<1x1x512xf32>
    %369 = vector.shape_cast %368 : vector<1x1x512xf32> to vector<1x512xf32>
    %370 = vector.broadcast %367 : f32 to vector<1x512xf32>
    %371 = arith.mulf %370, %369 : vector<1x512xf32>
    %372 = arith.addf %366, %371 : vector<1x512xf32>
    %cst_285 = arith.constant 5.000000e-01 : f32
    %373 = vector.broadcast %cst_285 : f32 to vector<1x512xf32>
    %374 = arith.mulf %373, %372 : vector<1x512xf32>
    %cst_286 = arith.constant 0.707106769 : f32
    %375 = vector.broadcast %cst_286 : f32 to vector<1x512xf32>
    %376 = arith.mulf %372, %375 : vector<1x512xf32>
    %377 = math.erf %376 : vector<1x512xf32>
    %cst_287 = arith.constant 1.000000e+00 : f32
    %378 = vector.broadcast %cst_287 : f32 to vector<1x512xf32>
    %379 = arith.addf %378, %377 : vector<1x512xf32>
    %380 = arith.mulf %374, %379 : vector<1x512xf32>
    %c0_288 = arith.constant 0 : index
    %c5_289 = arith.constant 5 : index
    %c0_290 = arith.constant 0 : index
    %381 = vector.load %arg6[%c0_288, %c5_289, %c0_290] : memref<1x8x512xf32, #tpu.memory_space<vmem>>, vector<1x1x512xf32>
    %382 = vector.shape_cast %381 : vector<1x1x512xf32> to vector<1x512xf32>
    %383 = vector.shape_cast %380 : vector<1x512xf32> to vector<1x1x512xf32>
    tpu.vector_store %arg6[%c0_288, %c5_289, %c0_290], %383 {strides = array<i32>} : memref<1x8x512xf32, #tpu.memory_space<vmem>>, vector<1x1x512xf32>,
    %c0_291 = arith.constant 0 : index
    %c6_292 = arith.constant 6 : index
    %c0_293 = arith.constant 0 : index
    %384 = vector.load %arg3[%c0_291, %c6_292, %c0_293] : memref<1x8x512xf32, #tpu.memory_space<vmem>>, vector<1x1x512xf32>
    %385 = vector.shape_cast %384 : vector<1x1x512xf32> to vector<1x512xf32>
    %c6_294 = arith.constant 6 : index
    %386 = memref.load %arg5[%c6_294] : memref<8xf32, #tpu.memory_space<smem>>
    %387 = vector.broadcast %386 : f32 to vector<1x512xf32>
    %388 = arith.addf %385, %387 : vector<1x512xf32>
    %c6_295 = arith.constant 6 : index
    %c0_296 = arith.constant 0 : index
    %389 = memref.load %arg4[%c6_295, %c0_296] : memref<8x8xf32, #tpu.memory_space<smem>>
    %c0_297 = arith.constant 0 : index
    %c0_298 = arith.constant 0 : index
    %c0_299 = arith.constant 0 : index
    %390 = vector.load %arg2[%c0_297, %c0_298, %c0_299] : memref<1x8x512xf32, #tpu.memory_space<vmem>>, vector<1x1x512xf32>
    %391 = vector.shape_cast %390 : vector<1x1x512xf32> to vector<1x512xf32>
    %392 = vector.broadcast %389 : f32 to vector<1x512xf32>
    %393 = arith.mulf %392, %391 : vector<1x512xf32>
    %394 = arith.addf %388, %393 : vector<1x512xf32>
    %c6_300 = arith.constant 6 : index
    %c1_301 = arith.constant 1 : index
    %395 = memref.load %arg4[%c6_300, %c1_301] : memref<8x8xf32, #tpu.memory_space<smem>>
    %c0_302 = arith.constant 0 : index
    %c1_303 = arith.constant 1 : index
    %c0_304 = arith.constant 0 : index
    %396 = vector.load %arg2[%c0_302, %c1_303, %c0_304] : memref<1x8x512xf32, #tpu.memory_space<vmem>>, vector<1x1x512xf32>
    %397 = vector.shape_cast %396 : vector<1x1x512xf32> to vector<1x512xf32>
    %398 = vector.broadcast %395 : f32 to vector<1x512xf32>
    %399 = arith.mulf %398, %397 : vector<1x512xf32>
    %400 = arith.addf %394, %399 : vector<1x512xf32>
    %c6_305 = arith.constant 6 : index
    %c2_306 = arith.constant 2 : index
    %401 = memref.load %arg4[%c6_305, %c2_306] : memref<8x8xf32, #tpu.memory_space<smem>>
    %c0_307 = arith.constant 0 : index
    %c2_308 = arith.constant 2 : index
    %c0_309 = arith.constant 0 : index
    %402 = vector.load %arg2[%c0_307, %c2_308, %c0_309] : memref<1x8x512xf32, #tpu.memory_space<vmem>>, vector<1x1x512xf32>
    %403 = vector.shape_cast %402 : vector<1x1x512xf32> to vector<1x512xf32>
    %404 = vector.broadcast %401 : f32 to vector<1x512xf32>
    %405 = arith.mulf %404, %403 : vector<1x512xf32>
    %406 = arith.addf %400, %405 : vector<1x512xf32>
    %c6_310 = arith.constant 6 : index
    %c3_311 = arith.constant 3 : index
    %407 = memref.load %arg4[%c6_310, %c3_311] : memref<8x8xf32, #tpu.memory_space<smem>>
    %c0_312 = arith.constant 0 : index
    %c3_313 = arith.constant 3 : index
    %c0_314 = arith.constant 0 : index
    %408 = vector.load %arg2[%c0_312, %c3_313, %c0_314] : memref<1x8x512xf32, #tpu.memory_space<vmem>>, vector<1x1x512xf32>
    %409 = vector.shape_cast %408 : vector<1x1x512xf32> to vector<1x512xf32>
    %410 = vector.broadcast %407 : f32 to vector<1x512xf32>
    %411 = arith.mulf %410, %409 : vector<1x512xf32>
    %412 = arith.addf %406, %411 : vector<1x512xf32>
    %c6_315 = arith.constant 6 : index
    %c4_316 = arith.constant 4 : index
    %413 = memref.load %arg4[%c6_315, %c4_316] : memref<8x8xf32, #tpu.memory_space<smem>>
    %c0_317 = arith.constant 0 : index
    %c4_318 = arith.constant 4 : index
    %c0_319 = arith.constant 0 : index
    %414 = vector.load %arg2[%c0_317, %c4_318, %c0_319] : memref<1x8x512xf32, #tpu.memory_space<vmem>>, vector<1x1x512xf32>
    %415 = vector.shape_cast %414 : vector<1x1x512xf32> to vector<1x512xf32>
    %416 = vector.broadcast %413 : f32 to vector<1x512xf32>
    %417 = arith.mulf %416, %415 : vector<1x512xf32>
    %418 = arith.addf %412, %417 : vector<1x512xf32>
    %c6_320 = arith.constant 6 : index
    %c5_321 = arith.constant 5 : index
    %419 = memref.load %arg4[%c6_320, %c5_321] : memref<8x8xf32, #tpu.memory_space<smem>>
    %c0_322 = arith.constant 0 : index
    %c5_323 = arith.constant 5 : index
    %c0_324 = arith.constant 0 : index
    %420 = vector.load %arg2[%c0_322, %c5_323, %c0_324] : memref<1x8x512xf32, #tpu.memory_space<vmem>>, vector<1x1x512xf32>
    %421 = vector.shape_cast %420 : vector<1x1x512xf32> to vector<1x512xf32>
    %422 = vector.broadcast %419 : f32 to vector<1x512xf32>
    %423 = arith.mulf %422, %421 : vector<1x512xf32>
    %424 = arith.addf %418, %423 : vector<1x512xf32>
    %c6_325 = arith.constant 6 : index
    %c6_326 = arith.constant 6 : index
    %425 = memref.load %arg4[%c6_325, %c6_326] : memref<8x8xf32, #tpu.memory_space<smem>>
    %c0_327 = arith.constant 0 : index
    %c6_328 = arith.constant 6 : index
    %c0_329 = arith.constant 0 : index
    %426 = vector.load %arg2[%c0_327, %c6_328, %c0_329] : memref<1x8x512xf32, #tpu.memory_space<vmem>>, vector<1x1x512xf32>
    %427 = vector.shape_cast %426 : vector<1x1x512xf32> to vector<1x512xf32>
    %428 = vector.broadcast %425 : f32 to vector<1x512xf32>
    %429 = arith.mulf %428, %427 : vector<1x512xf32>
    %430 = arith.addf %424, %429 : vector<1x512xf32>
    %c6_330 = arith.constant 6 : index
    %c7_331 = arith.constant 7 : index
    %431 = memref.load %arg4[%c6_330, %c7_331] : memref<8x8xf32, #tpu.memory_space<smem>>
    %c0_332 = arith.constant 0 : index
    %c7_333 = arith.constant 7 : index
    %c0_334 = arith.constant 0 : index
    %432 = vector.load %arg2[%c0_332, %c7_333, %c0_334] : memref<1x8x512xf32, #tpu.memory_space<vmem>>, vector<1x1x512xf32>
    %433 = vector.shape_cast %432 : vector<1x1x512xf32> to vector<1x512xf32>
    %434 = vector.broadcast %431 : f32 to vector<1x512xf32>
    %435 = arith.mulf %434, %433 : vector<1x512xf32>
    %436 = arith.addf %430, %435 : vector<1x512xf32>
    %cst_335 = arith.constant 5.000000e-01 : f32
    %437 = vector.broadcast %cst_335 : f32 to vector<1x512xf32>
    %438 = arith.mulf %437, %436 : vector<1x512xf32>
    %cst_336 = arith.constant 0.707106769 : f32
    %439 = vector.broadcast %cst_336 : f32 to vector<1x512xf32>
    %440 = arith.mulf %436, %439 : vector<1x512xf32>
    %441 = math.erf %440 : vector<1x512xf32>
    %cst_337 = arith.constant 1.000000e+00 : f32
    %442 = vector.broadcast %cst_337 : f32 to vector<1x512xf32>
    %443 = arith.addf %442, %441 : vector<1x512xf32>
    %444 = arith.mulf %438, %443 : vector<1x512xf32>
    %c0_338 = arith.constant 0 : index
    %c6_339 = arith.constant 6 : index
    %c0_340 = arith.constant 0 : index
    %445 = vector.load %arg6[%c0_338, %c6_339, %c0_340] : memref<1x8x512xf32, #tpu.memory_space<vmem>>, vector<1x1x512xf32>
    %446 = vector.shape_cast %445 : vector<1x1x512xf32> to vector<1x512xf32>
    %447 = vector.shape_cast %444 : vector<1x512xf32> to vector<1x1x512xf32>
    tpu.vector_store %arg6[%c0_338, %c6_339, %c0_340], %447 {strides = array<i32>} : memref<1x8x512xf32, #tpu.memory_space<vmem>>, vector<1x1x512xf32>,
    %c0_341 = arith.constant 0 : index
    %c7_342 = arith.constant 7 : index
    %c0_343 = arith.constant 0 : index
    %448 = vector.load %arg3[%c0_341, %c7_342, %c0_343] : memref<1x8x512xf32, #tpu.memory_space<vmem>>, vector<1x1x512xf32>
    %449 = vector.shape_cast %448 : vector<1x1x512xf32> to vector<1x512xf32>
    %c7_344 = arith.constant 7 : index
    %450 = memref.load %arg5[%c7_344] : memref<8xf32, #tpu.memory_space<smem>>
    %451 = vector.broadcast %450 : f32 to vector<1x512xf32>
    %452 = arith.addf %449, %451 : vector<1x512xf32>
    %c7_345 = arith.constant 7 : index
    %c0_346 = arith.constant 0 : index
    %453 = memref.load %arg4[%c7_345, %c0_346] : memref<8x8xf32, #tpu.memory_space<smem>>
    %c0_347 = arith.constant 0 : index
    %c0_348 = arith.constant 0 : index
    %c0_349 = arith.constant 0 : index
    %454 = vector.load %arg2[%c0_347, %c0_348, %c0_349] : memref<1x8x512xf32, #tpu.memory_space<vmem>>, vector<1x1x512xf32>
    %455 = vector.shape_cast %454 : vector<1x1x512xf32> to vector<1x512xf32>
    %456 = vector.broadcast %453 : f32 to vector<1x512xf32>
    %457 = arith.mulf %456, %455 : vector<1x512xf32>
    %458 = arith.addf %452, %457 : vector<1x512xf32>
    %c7_350 = arith.constant 7 : index
    %c1_351 = arith.constant 1 : index
    %459 = memref.load %arg4[%c7_350, %c1_351] : memref<8x8xf32, #tpu.memory_space<smem>>
    %c0_352 = arith.constant 0 : index
    %c1_353 = arith.constant 1 : index
    %c0_354 = arith.constant 0 : index
    %460 = vector.load %arg2[%c0_352, %c1_353, %c0_354] : memref<1x8x512xf32, #tpu.memory_space<vmem>>, vector<1x1x512xf32>
    %461 = vector.shape_cast %460 : vector<1x1x512xf32> to vector<1x512xf32>
    %462 = vector.broadcast %459 : f32 to vector<1x512xf32>
    %463 = arith.mulf %462, %461 : vector<1x512xf32>
    %464 = arith.addf %458, %463 : vector<1x512xf32>
    %c7_355 = arith.constant 7 : index
    %c2_356 = arith.constant 2 : index
    %465 = memref.load %arg4[%c7_355, %c2_356] : memref<8x8xf32, #tpu.memory_space<smem>>
    %c0_357 = arith.constant 0 : index
    %c2_358 = arith.constant 2 : index
    %c0_359 = arith.constant 0 : index
    %466 = vector.load %arg2[%c0_357, %c2_358, %c0_359] : memref<1x8x512xf32, #tpu.memory_space<vmem>>, vector<1x1x512xf32>
    %467 = vector.shape_cast %466 : vector<1x1x512xf32> to vector<1x512xf32>
    %468 = vector.broadcast %465 : f32 to vector<1x512xf32>
    %469 = arith.mulf %468, %467 : vector<1x512xf32>
    %470 = arith.addf %464, %469 : vector<1x512xf32>
    %c7_360 = arith.constant 7 : index
    %c3_361 = arith.constant 3 : index
    %471 = memref.load %arg4[%c7_360, %c3_361] : memref<8x8xf32, #tpu.memory_space<smem>>
    %c0_362 = arith.constant 0 : index
    %c3_363 = arith.constant 3 : index
    %c0_364 = arith.constant 0 : index
    %472 = vector.load %arg2[%c0_362, %c3_363, %c0_364] : memref<1x8x512xf32, #tpu.memory_space<vmem>>, vector<1x1x512xf32>
    %473 = vector.shape_cast %472 : vector<1x1x512xf32> to vector<1x512xf32>
    %474 = vector.broadcast %471 : f32 to vector<1x512xf32>
    %475 = arith.mulf %474, %473 : vector<1x512xf32>
    %476 = arith.addf %470, %475 : vector<1x512xf32>
    %c7_365 = arith.constant 7 : index
    %c4_366 = arith.constant 4 : index
    %477 = memref.load %arg4[%c7_365, %c4_366] : memref<8x8xf32, #tpu.memory_space<smem>>
    %c0_367 = arith.constant 0 : index
    %c4_368 = arith.constant 4 : index
    %c0_369 = arith.constant 0 : index
    %478 = vector.load %arg2[%c0_367, %c4_368, %c0_369] : memref<1x8x512xf32, #tpu.memory_space<vmem>>, vector<1x1x512xf32>
    %479 = vector.shape_cast %478 : vector<1x1x512xf32> to vector<1x512xf32>
    %480 = vector.broadcast %477 : f32 to vector<1x512xf32>
    %481 = arith.mulf %480, %479 : vector<1x512xf32>
    %482 = arith.addf %476, %481 : vector<1x512xf32>
    %c7_370 = arith.constant 7 : index
    %c5_371 = arith.constant 5 : index
    %483 = memref.load %arg4[%c7_370, %c5_371] : memref<8x8xf32, #tpu.memory_space<smem>>
    %c0_372 = arith.constant 0 : index
    %c5_373 = arith.constant 5 : index
    %c0_374 = arith.constant 0 : index
    %484 = vector.load %arg2[%c0_372, %c5_373, %c0_374] : memref<1x8x512xf32, #tpu.memory_space<vmem>>, vector<1x1x512xf32>
    %485 = vector.shape_cast %484 : vector<1x1x512xf32> to vector<1x512xf32>
    %486 = vector.broadcast %483 : f32 to vector<1x512xf32>
    %487 = arith.mulf %486, %485 : vector<1x512xf32>
    %488 = arith.addf %482, %487 : vector<1x512xf32>
    %c7_375 = arith.constant 7 : index
    %c6_376 = arith.constant 6 : index
    %489 = memref.load %arg4[%c7_375, %c6_376] : memref<8x8xf32, #tpu.memory_space<smem>>
    %c0_377 = arith.constant 0 : index
    %c6_378 = arith.constant 6 : index
    %c0_379 = arith.constant 0 : index
    %490 = vector.load %arg2[%c0_377, %c6_378, %c0_379] : memref<1x8x512xf32, #tpu.memory_space<vmem>>, vector<1x1x512xf32>
    %491 = vector.shape_cast %490 : vector<1x1x512xf32> to vector<1x512xf32>
    %492 = vector.broadcast %489 : f32 to vector<1x512xf32>
    %493 = arith.mulf %492, %491 : vector<1x512xf32>
    %494 = arith.addf %488, %493 : vector<1x512xf32>
    %c7_380 = arith.constant 7 : index
    %c7_381 = arith.constant 7 : index
    %495 = memref.load %arg4[%c7_380, %c7_381] : memref<8x8xf32, #tpu.memory_space<smem>>
    %c0_382 = arith.constant 0 : index
    %c7_383 = arith.constant 7 : index
    %c0_384 = arith.constant 0 : index
    %496 = vector.load %arg2[%c0_382, %c7_383, %c0_384] : memref<1x8x512xf32, #tpu.memory_space<vmem>>, vector<1x1x512xf32>
    %497 = vector.shape_cast %496 : vector<1x1x512xf32> to vector<1x512xf32>
    %498 = vector.broadcast %495 : f32 to vector<1x512xf32>
    %499 = arith.mulf %498, %497 : vector<1x512xf32>
    %500 = arith.addf %494, %499 : vector<1x512xf32>
    %cst_385 = arith.constant 5.000000e-01 : f32
    %501 = vector.broadcast %cst_385 : f32 to vector<1x512xf32>
    %502 = arith.mulf %501, %500 : vector<1x512xf32>
    %cst_386 = arith.constant 0.707106769 : f32
    %503 = vector.broadcast %cst_386 : f32 to vector<1x512xf32>
    %504 = arith.mulf %500, %503 : vector<1x512xf32>
    %505 = math.erf %504 : vector<1x512xf32>
    %cst_387 = arith.constant 1.000000e+00 : f32
    %506 = vector.broadcast %cst_387 : f32 to vector<1x512xf32>
    %507 = arith.addf %506, %505 : vector<1x512xf32>
    %508 = arith.mulf %502, %507 : vector<1x512xf32>
    %c0_388 = arith.constant 0 : index
    %c7_389 = arith.constant 7 : index
    %c0_390 = arith.constant 0 : index
    %509 = vector.load %arg6[%c0_388, %c7_389, %c0_390] : memref<1x8x512xf32, #tpu.memory_space<vmem>>, vector<1x1x512xf32>
    %510 = vector.shape_cast %509 : vector<1x1x512xf32> to vector<1x512xf32>
    %511 = vector.shape_cast %508 : vector<1x512xf32> to vector<1x1x512xf32>
    tpu.vector_store %arg6[%c0_388, %c7_389, %c0_390], %511 {strides = array<i32>} : memref<1x8x512xf32, #tpu.memory_space<vmem>>, vector<1x1x512xf32>,
    return
  }
  func.func @transform_0(%arg0: i32, %arg1: i32) -> (i32, i32, i32) {
    %c0_i32 = arith.constant 0 : i32
    %c0_i32_0 = arith.constant 0 : i32
    return %arg0, %c0_i32, %arg1 : i32, i32, i32
  }
  func.func @transform_1(%arg0: i32, %arg1: i32) -> (i32, i32, i32) {
    %c0_i32 = arith.constant 0 : i32
    %c0_i32_0 = arith.constant 0 : i32
    return %arg0, %c0_i32, %arg1 : i32, i32, i32
  }
  func.func @transform_2(%arg0: i32, %arg1: i32) -> (i32, i32) {
    %c0_i32 = arith.constant 0 : i32
    %c0_i32_0 = arith.constant 0 : i32
    %c0_i32_1 = arith.constant 0 : i32
    return %c0_i32, %c0_i32_0 : i32, i32
  }
  func.func @transform_3(%arg0: i32, %arg1: i32) -> i32 {
    %c0_i32 = arith.constant 0 : i32
    %c0_i32_0 = arith.constant 0 : i32
    return %c0_i32 : i32
  }
  func.func @transform_4(%arg0: i32, %arg1: i32) -> (i32, i32, i32) {
    %c0_i32 = arith.constant 0 : i32
    %c0_i32_0 = arith.constant 0 : i32
    return %arg0, %c0_i32, %arg1 : i32, i32, i32
  }
}

</mosaic_0001>

<bundles_post_ra>
// kernel: fourier_basic_block_3d.4
= control target key start
LH: loop header
LB: loop body
LE: loop exit
PB: predicated region body
PF: predicated region fallthrough
CT: control target
= control target key end

     0   :  { %v28_v0 = vlaneseq  ;;  %s689_s0 = inlined_call_operand.vmem [shape: f32[2,4,256], index: 0, kind: input, shape index: {}]   ;;  %s690_s1 = inlined_call_operand.vmem [shape: f32[2,4,256], index: 1, kind: input, shape index: {}]   ;;  %s691_s2 = inlined_call_operand.vmem [shape: bf16[4,8,256], index: 2, kind: input, shape index: {}]   ;;  %s692_s3 = inlined_call_operand.vmem [shape: bf16[4,8,256], index: 3, kind: input, shape index: {}]   ;;  %s693_s4 = inlined_call_operand.vmem [shape: f32[2,8,256], index: 4, kind: output, shape index: {0}]   ;;  %s694_s5 = inlined_call_operand.vmem [shape: f32[2,8,256], index: 5, kind: output, shape index: {1}]  }
   0x1   :  { %v19_v1 = vld [vmem:[%s691_s2] sm:$0xff]  ;;  %v409_v7 = vld [vmem:[%s691_s2 + $0x8] sm:$0xff]  ;;  %v415_v16 = vld [vmem:[%s691_s2 + $0x10] sm:$0xff] }
   0x2   :  { %v22_v2 = vld [vmem:[%s692_s3] sm:$0xff]  ;;  %v470_v4 = vunpack.c.l.bf16 %v19_v1  ;;  %v29_v6 = vshrl.u32 %v28_v0, 7  ;;  %v410_v8 = vld [vmem:[%s692_s3 + $0x8] sm:$0xff]  ;;  %v483_v10 = vunpack.c.l.bf16 %v409_v7  ;;  %v493_v14 = vunpack.c.h.bf16 %v19_v1  ;;  %v416_v17 = vld [vmem:[%s692_s3 + $0x10] sm:$0xff] }
   0x3   :  { %v25_v3 = vld [vmem:[%s689_s0] ss:$4 sm:$0x3]  ;;  %v481_v9 = vunpack.c.l.bf16 %v22_v2  ;;  %v485_v11 = vunpack.c.l.bf16 %v410_v8  ;;  %v411_v12 = vld [vmem:[%s689_s0 + $0x1] ss:$4 sm:$0x3]  ;;  %v506_v19 = vunpack.c.h.bf16 %v22_v2  ;;  %v508_v20 = vunpack.c.h.bf16 %v409_v7 }
   0x4   :  { %v26_v5 = vld [vmem:[%s690_s1] ss:$4 sm:$0x3]  ;;  %v412_v13 = vld [vmem:[%s690_s1 + $0x1] ss:$4 sm:$0x3]  ;;  %v510_v21 = vunpack.c.h.bf16 %v410_v8  ;;  %v512_v22 = vunpack.c.l.bf16 %v415_v16  ;;  %v514_v23 = vunpack.c.l.bf16 %v416_v17  ;;  %v527_v28 = vunpack.c.h.bf16 %v415_v16 }
   0x5   :  { %v495_v15 = vsub.s32 0, %v29_v6  ;;  %v417_v18 = vld [vmem:[%s689_s0 + $0x2] ss:$4 sm:$0x3]  ;;  %v421_v25 = vld [vmem:[%s691_s2 + $0x18] sm:$0xff]  ;;  %v525_v27 = vsub.s32 1, %v29_v6  ;;  %v562_v61 = vunpack.c.h.bf16 %v416_v17 }
   0x6   :  { %v418_v24 = vld [vmem:[%s690_s1 + $0x2] ss:$4 sm:$0x3]  ;;  %v422_v26 = vld [vmem:[%s692_s3 + $0x18] sm:$0xff]  ;;  %v541_v37 = vunpack.c.l.bf16 %v421_v25 }
   0x7   :  { %v31_v29 = vrot.slane %v25_v3, %v495_v15  ;;  %v44_v30 = vrot.slane %v26_v5, %v495_v15  ;;  %v123_v31 = vrot.slane %v411_v12, %v495_v15  ;;  %v136_v32 = vrot.slane %v412_v13, %v495_v15  ;;  %v423_v33 = vld [vmem:[%s689_s0 + $0x3] ss:$4 sm:$0x3] }
   0x8   :  { %v424_v34 = vld [vmem:[%s690_s1 + $0x3] ss:$4 sm:$0x3]  ;;  %v215_v35 = vrot.slane %v417_v18, %v495_v15  ;;  %v228_v36 = vrot.slane %v418_v24, %v495_v15  ;;  %v543_v38 = vunpack.c.l.bf16 %v422_v26  ;;  %v307_v45 = vrot.slane %v423_v33, %v495_v15 }
   0x9   :  { %v38_v39 = vmul.f32 %v31_v29, %v470_v4  ;;  %v51_v40 = vmul.f32 %v44_v30, %v481_v9  ;;  %v130_v41 = vmul.f32 %v123_v31, %v483_v10  ;;  %v143_v42 = vmul.f32 %v136_v32, %v485_v11 }
   0xa   :  { %v222_v43 = vmul.f32 %v215_v35, %v512_v22  ;;  %v235_v44 = vmul.f32 %v228_v36, %v514_v23  ;;  %v320_v46 = vrot.slane %v424_v34, %v495_v15  ;;  %v35_v49 = vrot.slane %v25_v3, %v525_v27 }
   0xb   :  { %v53_v47 = vsub.f32 %v38_v39, %v51_v40  ;;  %v145_v48 = vsub.f32 %v130_v41, %v143_v42  ;;  %v48_v50 = vrot.slane %v26_v5, %v525_v27  ;;  %v314_v52 = vmul.f32 %v307_v45, %v541_v37 }
   0xc   :  { %v237_v51 = vsub.f32 %v222_v43, %v235_v44  ;;  %v327_v53 = vmul.f32 %v320_v46, %v543_v38  ;;  %v127_v54 = vrot.slane %v411_v12, %v525_v27  ;;  %v39_v56 = vmul.f32 %v35_v49, %v493_v14 }
   0xd   :  { %v147_v55 = vadd.f32 %v145_v48, %v53_v47  ;;  %v52_v57 = vmul.f32 %v48_v50, %v506_v19  ;;  %v140_v58 = vrot.slane %v412_v13, %v525_v27  ;;  %v219_v62 = vrot.slane %v417_v18, %v525_v27 }
   0xe   :  { %v329_v59 = vsub.f32 %v314_v52, %v327_v53  ;;  %v131_v60 = vmul.f32 %v127_v54, %v508_v20  ;;  %v232_v2 = vrot.slane %v418_v24, %v525_v27  ;;  %v568_v5 = vunpack.c.h.bf16 %v421_v25 }
   0xf   :  { %v239_v63 = vadd.f32 %v237_v51, %v147_v55  ;;  %v54_v0 = vsub.f32 %v39_v56, %v52_v57  ;;  %v144_v1 = vmul.f32 %v140_v58, %v510_v21  ;;  %v223_v3 = vmul.f32 %v219_v62, %v527_v28 }
  0x10   :  { %v570_v6 = vunpack.c.h.bf16 %v422_v26  ;;  %v311_v7 = vrot.slane %v423_v33, %v525_v27  ;;  %v236_v13 = vmul.f32 %v232_v2, %v562_v61  ;;  %v324_v16 = vrot.slane %v424_v34, %v525_v27 }
  0x11   :  { %v331_v8 = vadd.f32 %v329_v59, %v239_v63  ;;  %v146_v12 = vsub.f32 %v131_v60, %v144_v1  ;;  %v57_v18 = vmul.f32 %v44_v30, %v470_v4  ;;  %v59_v24 = vmul.f32 %v31_v29, %v481_v9 }
  0x12   :  { %v315_v17 = vmul.f32 %v311_v7, %v568_v5  ;;  %v149_v39 = vmul.f32 %v136_v32, %v483_v10  ;;  %v238_v26 = vsub.f32 %v223_v3, %v236_v13  ;;  %v328_v33 = vmul.f32 %v324_v16, %v570_v6 }
  0x13   :  { %383 = vst [vmem:[%s693_s4] sm:$0xff] %v331_v8  ;;  %v148_v25 = vadd.f32 %v146_v12, %v54_v0  ;;  %v151_v40 = vmul.f32 %v123_v31, %v485_v11  ;;  %v61_v41 = vadd.f32 %v59_v24, %v57_v18  ;;  %v241_v34 = vmul.f32 %v228_v36, %v512_v22  ;;  %v407_v31 = vld [vmem:[%s689_s0 + $0x8] ss:$4 sm:$0x3]  ;;  %v419_v0 = vld [vmem:[%s689_s0 + $0xa] ss:$4 sm:$0x3] }
  0x14   :  { %v243_v42 = vmul.f32 %v215_v35, %v514_v23  ;;  %v333_v30 = vmul.f32 %v320_v46, %v541_v37  ;;  %v330_v43 = vsub.f32 %v315_v17, %v328_v33  ;;  %v335_v44 = vmul.f32 %v307_v45, %v543_v38  ;;  %v408_v35 = vld [vmem:[%s690_s1 + $0x8] ss:$4 sm:$0x3]  ;;  %v426_v12 = vld [vmem:[%s690_s1 + $0xb] ss:$4 sm:$0x3] }
  0x15   :  { %v240_v29 = vadd.f32 %v238_v26, %v148_v25  ;;  %v153_v32 = vadd.f32 %v151_v40, %v149_v39  ;;  %v58_v48 = vmul.f32 %v48_v50, %v493_v14  ;;  %v60_v51 = vmul.f32 %v35_v49, %v506_v19  ;;  %v413_v50 = vld [vmem:[%s689_s0 + $0x9] ss:$4 sm:$0x3] }
  0x16   :  { %v245_v47 = vadd.f32 %v243_v42, %v241_v34  ;;  %v150_v52 = vmul.f32 %v140_v58, %v508_v20  ;;  %v337_v53 = vadd.f32 %v335_v44, %v333_v30  ;;  %v152_v45 = vmul.f32 %v127_v54, %v510_v21  ;;  %v414_v49 = vld [vmem:[%s690_s1 + $0x9] ss:$4 sm:$0x3] }
  0x17   :  { %v332_v36 = vadd.f32 %v330_v43, %v240_v29  ;;  %v155_v46 = vadd.f32 %v153_v32, %v61_v41  ;;  %v62_v55 = vadd.f32 %v60_v51, %v58_v48  ;;  %v242_v56 = vmul.f32 %v232_v2, %v527_v28 }
  0x18   :  { %v244_v57 = vmul.f32 %v219_v62, %v562_v61  ;;  %v334_v58 = vmul.f32 %v324_v16, %v568_v5  ;;  %v154_v59 = vadd.f32 %v152_v45, %v150_v52  ;;  %v336_v60 = vmul.f32 %v311_v7, %v570_v6  ;;  %v420_v62 = vld [vmem:[%s690_s1 + $0xa] ss:$4 sm:$0x3]  ;;  %v425_v7 = vld [vmem:[%s689_s0 + $0xb] ss:$4 sm:$0x3] }
  0x19   :  { %384 = vst [vmem:[%s693_s4 + $0x8] sm:$0xff] %v332_v36  ;;  %v247_v54 = vadd.f32 %v245_v47, %v155_v46  ;;  %v73_v63 = vrot.slane %v407_v31, %v495_v15  ;;  %v86_v2 = vrot.slane %v408_v35, %v495_v15  ;;  %v165_v3 = vrot.slane %v413_v50, %v495_v15 }
  0x1a   :  { %v246_v1 = vadd.f32 %v244_v57, %v242_v56  ;;  %v178_v8 = vrot.slane %v414_v49, %v495_v15  ;;  %v156_v16 = vadd.f32 %v154_v59, %v62_v55  ;;  %v338_v17 = vadd.f32 %v336_v60, %v334_v58 }
  0x1b   :  { %v339_v13 = vadd.f32 %v337_v53, %v247_v54  ;;  %v80_v18 = vmul.f32 %v73_v63, %v470_v4  ;;  %v93_v24 = vmul.f32 %v86_v2, %v481_v9  ;;  %v172_v39 = vmul.f32 %v165_v3, %v483_v10 }
  0x1c   :  { %v185_v25 = vmul.f32 %v178_v8, %v485_v11  ;;  %v257_v26 = vrot.slane %v419_v0, %v495_v15  ;;  %v248_v33 = vadd.f32 %v246_v1, %v156_v16  ;;  %v270_v40 = vrot.slane %v420_v62, %v495_v15 }
  0x1d   :  { %385 = vst [vmem:[%s694_s5] sm:$0xff] %v339_v13  ;;  %v349_v41 = vrot.slane %v425_v7, %v495_v15  ;;  %v362_v34 = vrot.slane %v426_v12, %v495_v15  ;;  %v95_v42 = vsub.f32 %v80_v18, %v93_v24  ;;  %v77_v43 = vrot.slane %v407_v31, %v525_v27 }
  0x1e   :  { %v187_v30 = vsub.f32 %v172_v39, %v185_v25  ;;  %v264_v29 = vmul.f32 %v257_v26, %v512_v22  ;;  %v340_v32 = vadd.f32 %v338_v17, %v248_v33  ;;  %v277_v44 = vmul.f32 %v270_v40, %v514_v23 }
  0x1f   :  { %v356_v47 = vmul.f32 %v349_v41, %v541_v37  ;;  %v369_v48 = vmul.f32 %v362_v34, %v543_v38  ;;  %v81_v52 = vmul.f32 %v77_v43, %v493_v14  ;;  %v90_v36 = vrot.slane %v408_v35, %v525_v27 }
  0x20   :  { %v189_v51 = vadd.f32 %v187_v30, %v95_v42  ;;  %v169_v15 = vrot.slane %v413_v50, %v525_v27  ;;  %386 = vst [vmem:[%s694_s5 + $0x8] sm:$0xff] %v340_v32  ;;  %v279_v46 = vsub.f32 %v264_v29, %v277_v44  ;;  %v182_v53 = vrot.slane %v414_v49, %v525_v27 }
  0x21   :  { %v371_v31 = vsub.f32 %v356_v47, %v369_v48  ;;  %v261_v45 = vrot.slane %v419_v0, %v525_v27  ;;  %v94_v55 = vmul.f32 %v90_v36, %v506_v19  ;;  %v274_v57 = vrot.slane %v420_v62, %v525_v27 }
  0x22   :  { %v173_v56 = vmul.f32 %v169_v15, %v508_v20  ;;  %v353_v35 = vrot.slane %v425_v7, %v525_v27  ;;  %v281_v58 = vadd.f32 %v279_v46, %v189_v51  ;;  %v186_v50 = vmul.f32 %v182_v53, %v510_v21 }
  0x23   :  { %v265_v54 = vmul.f32 %v261_v45, %v527_v28  ;;  %v366_v59 = vrot.slane %v426_v12, %v525_v27  ;;  %v96_v60 = vsub.f32 %v81_v52, %v94_v55  ;;  %v278_v49 = vmul.f32 %v274_v57, %v562_v61 }
  0x24   :  { %v357_v0 = vmul.f32 %v353_v35, %v568_v5  ;;  %v99_v1 = vmul.f32 %v86_v2, %v470_v4  ;;  %v373_v13 = vadd.f32 %v371_v31, %v281_v58  ;;  %v188_v16 = vsub.f32 %v173_v56, %v186_v50 }
  0x25   :  { %v370_v62 = vmul.f32 %v366_v59, %v570_v6  ;;  %v101_v7 = vmul.f32 %v73_v63, %v481_v9  ;;  %v280_v17 = vsub.f32 %v265_v54, %v278_v49  ;;  %v191_v18 = vmul.f32 %v178_v8, %v483_v10 }
  0x26   :  { %v193_v24 = vmul.f32 %v165_v3, %v485_v11  ;;  %v283_v27 = vmul.f32 %v270_v40, %v512_v22  ;;  %427 = vst [vmem:[%s693_s4 + $0x10] sm:$0xff] %v373_v13  ;;  %v190_v12 = vadd.f32 %v188_v16, %v96_v60  ;;  %v285_v2 = vmul.f32 %v257_v26, %v514_v23 }
  0x27   :  { %v372_v39 = vsub.f32 %v357_v0, %v370_v62  ;;  %v103_v4 = vadd.f32 %v101_v7, %v99_v1  ;;  %v375_v33 = vmul.f32 %v362_v34, %v541_v37  ;;  %v377_v9 = vmul.f32 %v349_v41, %v543_v38 }
  0x28   :  { %v195_v25 = vadd.f32 %v193_v24, %v191_v18  ;;  %v100_v10 = vmul.f32 %v90_v36, %v493_v14  ;;  %v282_v63 = vadd.f32 %v280_v17, %v190_v12  ;;  %v287_v11 = vadd.f32 %v285_v2, %v283_v27 }
  0x29   :  { %v102_v22 = vmul.f32 %v77_v43, %v506_v19  ;;  %v192_v3 = vmul.f32 %v182_v53, %v508_v20  ;;  %v379_v40 = vadd.f32 %v377_v9, %v375_v33  ;;  %v194_v42 = vmul.f32 %v169_v15, %v510_v21 }
  0x2a   :  { %v197_v8 = vadd.f32 %v195_v25, %v103_v4  ;;  %v284_v30 = vmul.f32 %v274_v57, %v527_v28  ;;  %v374_v23 = vadd.f32 %v372_v39, %v282_v63  ;;  %v286_v37 = vmul.f32 %v261_v45, %v562_v61 }
  0x2b   :  { %v104_v26 = vadd.f32 %v102_v22, %v100_v10  ;;  %v376_v38 = vmul.f32 %v366_v59, %v568_v5  ;;  %v196_v14 = vadd.f32 %v194_v42, %v192_v3  ;;  %v378_v34 = vmul.f32 %v353_v35, %v570_v6 }
  0x2c   :  { %v289_v41 = vadd.f32 %v287_v11, %v197_v8  ;;  %428 = vst [vmem:[%s693_s4 + $0x18] sm:$0xff] %v374_v23  ;;  %v288_v19 = vadd.f32 %v286_v37, %v284_v30 }
  0x2d   :  { %v198_v29 = vadd.f32 %v196_v14, %v104_v26  ;;  %v380_v21 = vadd.f32 %v378_v34, %v376_v38 }
  0x2e   :  { %v381_v20 = vadd.f32 %v379_v40, %v289_v41 }
  0x2f   :  { %v290_v28 = vadd.f32 %v288_v19, %v198_v29 }
  0x30   :  { %429 = vst [vmem:[%s694_s5 + $0x10] sm:$0xff] %v381_v20 }
  0x31   :  { %v382_v61 = vadd.f32 %v380_v21, %v290_v28 }
  0x33   :  { %430 = vst [vmem:[%s694_s5 + $0x18] sm:$0xff] %v382_v61 }

// kernel: reverse.4
= control target key start
LH: loop header
LB: loop body
LE: loop exit
PB: predicated region body
PF: predicated region fallthrough
CT: control target
= control target key end

     0   :  { %s584_s0 = inlined_call_operand.vmem [shape: f32[2,8,8,8,3], index: 0, kind: input, shape index: {}]   ;;  %s585_s1 = inlined_call_operand.vmem [shape: f32[2,8,8,8,3], index: 1, kind: output, shape index: {}]  }
   0x1   :  { %v192_v0 = vld [vmem:[%s584_s0 + $0x10] sm:$0xff]  ;;  %v195_v2 = vld [vmem:[%s584_s0 + $0x28] sm:$0xff]  ;;  %v199_v4 = vld [vmem:[%s584_s0 + $0x40] sm:$0xff] }
   0x2   :  { %v193_v1 = vld [vmem:[%s584_s0 + $0xd0] sm:$0xff]  ;;  %4 = vst [vmem:[%s585_s1] sm:$0xff] %v192_v0  ;;  %196 = vst [vmem:[%s585_s1 + $0x18] sm:$0xff] %v195_v2  ;;  %v197_v3 = vld [vmem:[%s584_s0 + $0xe8] sm:$0xff] }
   0x3   :  { %194 = vst [vmem:[%s585_s1 + $0xc0] sm:$0xff] %v193_v1  ;;  %v201_v5 = vld [vmem:[%s584_s0 + $0x100] sm:$0xff]  ;;  %198 = vst [vmem:[%s585_s1 + $0xd8] sm:$0xff] %v197_v3  ;;  %v203_v6 = vld [vmem:[%s584_s0 + $0x58] sm:$0xff] }
   0x4   :  { %200 = vst [vmem:[%s585_s1 + $0x30] sm:$0xff] %v199_v4  ;;  %202 = vst [vmem:[%s585_s1 + $0xf0] sm:$0xff] %v201_v5  ;;  %v205_v7 = vld [vmem:[%s584_s0 + $0x118] sm:$0xff]  ;;  %v207_v8 = vld [vmem:[%s584_s0 + $0x70] sm:$0xff] }
   0x5   :  { %204 = vst [vmem:[%s585_s1 + $0x48] sm:$0xff] %v203_v6  ;;  %206 = vst [vmem:[%s585_s1 + $0x108] sm:$0xff] %v205_v7  ;;  %v209_v9 = vld [vmem:[%s584_s0 + $0x130] sm:$0xff]  ;;  %v211_v10 = vld [vmem:[%s584_s0 + $0x88] sm:$0xff] }
   0x6   :  { %208 = vst [vmem:[%s585_s1 + $0x60] sm:$0xff] %v207_v8  ;;  %v213_v11 = vld [vmem:[%s584_s0 + $0x148] sm:$0xff]  ;;  %210 = vst [vmem:[%s585_s1 + $0x120] sm:$0xff] %v209_v9  ;;  %v215_v12 = vld [vmem:[%s584_s0 + $0xa0] sm:$0xff] }
   0x7   :  { %212 = vst [vmem:[%s585_s1 + $0x78] sm:$0xff] %v211_v10  ;;  %214 = vst [vmem:[%s585_s1 + $0x138] sm:$0xff] %v213_v11  ;;  %v217_v13 = vld [vmem:[%s584_s0 + $0x160] sm:$0xff]  ;;  %v219_v14 = vld [vmem:[%s584_s0 + $0xb8] sm:$0xff] }
   0x8   :  { %216 = vst [vmem:[%s585_s1 + $0x90] sm:$0xff] %v215_v12  ;;  %218 = vst [vmem:[%s585_s1 + $0x150] sm:$0xff] %v217_v13  ;;  %v221_v15 = vld [vmem:[%s584_s0 + $0x178] sm:$0xff]  ;;  %v223_v16 = vld [vmem:[%s584_s0 + $0x8] sm:$0xff] }
   0x9   :  { %220 = vst [vmem:[%s585_s1 + $0xa8] sm:$0xff] %v219_v14  ;;  %v225_v17 = vld [vmem:[%s584_s0 + $0xc8] sm:$0xff]  ;;  %222 = vst [vmem:[%s585_s1 + $0x168] sm:$0xff] %v221_v15  ;;  %v227_v18 = vld [vmem:[%s584_s0 + $0x20] sm:$0xff] }
   0xa   :  { %224 = vst [vmem:[%s585_s1 + $0x8] sm:$0xff] %v223_v16  ;;  %226 = vst [vmem:[%s585_s1 + $0xc8] sm:$0xff] %v225_v17  ;;  %v229_v19 = vld [vmem:[%s584_s0 + $0xe0] sm:$0xff]  ;;  %v231_v20 = vld [vmem:[%s584_s0 + $0x38] sm:$0xff] }
   0xb   :  { %228 = vst [vmem:[%s585_s1 + $0x20] sm:$0xff] %v227_v18  ;;  %230 = vst [vmem:[%s585_s1 + $0xe0] sm:$0xff] %v229_v19  ;;  %v233_v21 = vld [vmem:[%s584_s0 + $0xf8] sm:$0xff]  ;;  %v235_v22 = vld [vmem:[%s584_s0 + $0x50] sm:$0xff] }
   0xc   :  { %232 = vst [vmem:[%s585_s1 + $0x38] sm:$0xff] %v231_v20  ;;  %v237_v23 = vld [vmem:[%s584_s0 + $0x110] sm:$0xff]  ;;  %234 = vst [vmem:[%s585_s1 + $0xf8] sm:$0xff] %v233_v21  ;;  %v239_v24 = vld [vmem:[%s584_s0 + $0x68] sm:$0xff] }
   0xd   :  { %236 = vst [vmem:[%s585_s1 + $0x50] sm:$0xff] %v235_v22  ;;  %238 = vst [vmem:[%s585_s1 + $0x110] sm:$0xff] %v237_v23  ;;  %v241_v25 = vld [vmem:[%s584_s0 + $0x128] sm:$0xff]  ;;  %v243_v26 = vld [vmem:[%s584_s0 + $0x80] sm:$0xff] }
   0xe   :  { %240 = vst [vmem:[%s585_s1 + $0x68] sm:$0xff] %v239_v24  ;;  %242 = vst [vmem:[%s585_s1 + $0x128] sm:$0xff] %v241_v25  ;;  %v245_v27 = vld [vmem:[%s584_s0 + $0x140] sm:$0xff]  ;;  %v247_v28 = vld [vmem:[%s584_s0 + $0x98] sm:$0xff] }
   0xf   :  { %244 = vst [vmem:[%s585_s1 + $0x80] sm:$0xff] %v243_v26  ;;  %v249_v29 = vld [vmem:[%s584_s0 + $0x158] sm:$0xff]  ;;  %246 = vst [vmem:[%s585_s1 + $0x140] sm:$0xff] %v245_v27  ;;  %v251_v30 = vld [vmem:[%s584_s0 + $0xb0] sm:$0xff] }
  0x10   :  { %248 = vst [vmem:[%s585_s1 + $0x98] sm:$0xff] %v247_v28  ;;  %250 = vst [vmem:[%s585_s1 + $0x158] sm:$0xff] %v249_v29  ;;  %v253_v31 = vld [vmem:[%s584_s0 + $0x170] sm:$0xff]  ;;  %v129_v32 = vld [vmem:[%s584_s0] sm:$0xff] }
  0x11   :  { %252 = vst [vmem:[%s585_s1 + $0xb0] sm:$0xff] %v251_v30  ;;  %254 = vst [vmem:[%s585_s1 + $0x170] sm:$0xff] %v253_v31  ;;  %v256_v33 = vld [vmem:[%s584_s0 + $0xc0] sm:$0xff]  ;;  %v258_v34 = vld [vmem:[%s584_s0 + $0x18] sm:$0xff] }
  0x12   :  { %255 = vst [vmem:[%s585_s1 + $0x10] sm:$0xff] %v129_v32  ;;  %v260_v35 = vld [vmem:[%s584_s0 + $0xd8] sm:$0xff]  ;;  %257 = vst [vmem:[%s585_s1 + $0xd0] sm:$0xff] %v256_v33  ;;  %v262_v36 = vld [vmem:[%s584_s0 + $0x30] sm:$0xff] }
  0x13   :  { %259 = vst [vmem:[%s585_s1 + $0x28] sm:$0xff] %v258_v34  ;;  %261 = vst [vmem:[%s585_s1 + $0xe8] sm:$0xff] %v260_v35  ;;  %v264_v37 = vld [vmem:[%s584_s0 + $0xf0] sm:$0xff]  ;;  %v266_v38 = vld [vmem:[%s584_s0 + $0x48] sm:$0xff] }
  0x14   :  { %263 = vst [vmem:[%s585_s1 + $0x40] sm:$0xff] %v262_v36  ;;  %265 = vst [vmem:[%s585_s1 + $0x100] sm:$0xff] %v264_v37  ;;  %v268_v39 = vld [vmem:[%s584_s0 + $0x108] sm:$0xff]  ;;  %v270_v40 = vld [vmem:[%s584_s0 + $0x60] sm:$0xff] }
  0x15   :  { %267 = vst [vmem:[%s585_s1 + $0x58] sm:$0xff] %v266_v38  ;;  %v272_v41 = vld [vmem:[%s584_s0 + $0x120] sm:$0xff]  ;;  %269 = vst [vmem:[%s585_s1 + $0x118] sm:$0xff] %v268_v39  ;;  %v274_v42 = vld [vmem:[%s584_s0 + $0x78] sm:$0xff] }
  0x16   :  { %271 = vst [vmem:[%s585_s1 + $0x70] sm:$0xff] %v270_v40  ;;  %273 = vst [vmem:[%s585_s1 + $0x130] sm:$0xff] %v272_v41  ;;  %v276_v43 = vld [vmem:[%s584_s0 + $0x138] sm:$0xff]  ;;  %v278_v44 = vld [vmem:[%s584_s0 + $0x90] sm:$0xff] }
  0x17   :  { %275 = vst [vmem:[%s585_s1 + $0x88] sm:$0xff] %v274_v42  ;;  %277 = vst [vmem:[%s585_s1 + $0x148] sm:$0xff] %v276_v43  ;;  %v280_v45 = vld [vmem:[%s584_s0 + $0x150] sm:$0xff]  ;;  %v282_v46 = vld [vmem:[%s584_s0 + $0xa8] sm:$0xff] }
  0x18   :  { %279 = vst [vmem:[%s585_s1 + $0xa0] sm:$0xff] %v278_v44  ;;  %v284_v47 = vld [vmem:[%s584_s0 + $0x168] sm:$0xff]  ;;  %281 = vst [vmem:[%s585_s1 + $0x160] sm:$0xff] %v280_v45 }
  0x19   :  { %283 = vst [vmem:[%s585_s1 + $0xb8] sm:$0xff] %v282_v46  ;;  %285 = vst [vmem:[%s585_s1 + $0x178] sm:$0xff] %v284_v47 }

// kernel: fourier_basic_block_3d.5
= control target key start
LH: loop header
LB: loop body
LE: loop exit
PB: predicated region body
PF: predicated region fallthrough
CT: control target
= control target key end

     0   :  { %9 = vsyncpa [#allocation3], 0  ;;  %s1099_s0 = inlined_call_operand.vmem [shape: f32[2,4,512], index: 0, kind: input, shape index: {}]   ;;  %s1100_s1 = inlined_call_operand.vmem [shape: f32[2,8,512], index: 1, kind: input, shape index: {}, may-alias: {1,4}]   ;;  %s1101_s2 = inlined_call_operand.vmem [shape: f32[8,4], index: 2, kind: input, shape index: {}]   ;;  %s1102_s3 = inlined_call_operand.vmem [shape: f32[8], index: 3, kind: input, shape index: {}]   ;;  %s1103_s4 = inlined_call_operand.vmem [shape: f32[2,8,512], index: 4, kind: output, shape index: {}, may-alias: {1,4}]  }
   0x1   :  { %10 = vsyncpa [#allocation5], 0  ;;  %s942_s15 = smov 0   ;;  %s944_s16 = smov 0  }
   0x2   :  { %s946_s17 = smov 0  }
   0x3 LB: > { %s696_s18 = sadd.s32 4294967295, %s913_s17   ;;  %s28_s19 = sadd.s32 1, %s909_s16  ;;  %s913_s17 = sphi %s946_s17, %s16_s17   ;;  %s909_s16 = sphi %s944_s16, %s1115_s16   ;;  %s905_s15 = sphi %s942_s15, %s1114_s15  }
   0x4   : > { %p30_p0 = scmp.ge.s32.totalorder %s28_s19, 2  ;;  %p698_p1 = scmp.ge.s32.totalorder %s913_s17, 1 }
   0x5   : > { %p159_p2 = scmp.lt.s32.totalorder %s913_s17, 3  ;;  %p967_p4 = scmp.eq.s32.totalorder %s696_s18, 0 }
   0x6   : > { %s1117_s19 = smov (%p30_p0, %s28_s19), 0  ;;  %s172_s24 = sshll.u32 %s1101_s2, 4  ;;  %s173_s24 = int_to_ptr.vmem [resolvable:$true] %s172_s24 }
   0x7   : > { %p963_p3 = pnand %p698_p1, %p159_p2  ;;  %s183_s27 = sshll.u32 %s1102_s3, 4  ;;  %s184_s27 = int_to_ptr.vmem [resolvable:$true] %s183_s27 }
   0x8   : > { %s1108_s21 = scalar_select %p967_p4, 1, 0 }
   0x9   : > { %s1107_s20 = scalar_select %p963_p3, 1, 0 }
   0xa   : > { %p800_p5 = pneg %p963_p3  ;;  %s853_s29 = scalar_lea.vmem %s173_s24, 128 }
   0xb   : > { %p854_p7 = scmp.ne.s32.totalorder %s173_s24, %s853_s29  ;;  %p861_p11 = scmp.lt.s32.totalorder %s173_s24, %s173_s24 }
   0xc   : > { %p981_p6 = pnand %p967_p4, %p800_p5  ;;  %p862_p12 = scmp.lt.s32.totalorder %s853_s29, %s853_s29 }
   0xe   : > { %p855_p8 = pneg %p981_p6  ;;  %p863_p13 = por %p862_p12, %p861_p11 }
  0x10   : > { %p856_p9 = pnand %p855_p8, %p854_p7 }
  0x12   : > { %p857_p10 = pneg %p856_p9 }
  0x14   : > { %p864_p0 = pnand %p863_p13, %p857_p10 }
  0x16   : > { %867 = shalt.err (!%p864_p0)
}
  0x17   : > { %s915_s30 = smov [#allocation2]   ;;  %s868_s5 = scalar_lea.vmem %s184_s27, 16 }
  0x18   : > { %803 = dma.vmem_to_smem (!%p981_p6), %s173_s24, 128, %s915_s30, [#allocation3]  }
  0x19   : > { %p869_p1 = scmp.ne.s32.totalorder %s184_s27, %s868_s5  ;;  %p876_p4 = scmp.lt.s32.totalorder %s184_s27, %s184_s27 }
  0x1a   : > { %p877_p3 = scmp.lt.s32.totalorder %s868_s5, %s868_s5 }
  0x1b   : > { %p871_p2 = pnand %p869_p1, %p855_p8 }
  0x1c   : > { %p878_p7 = por %p877_p3, %p876_p4 }
  0x1d   : > { %p872_p5 = pneg %p871_p2 }
  0x1f   : > { %p879_p9 = pnand %p878_p7, %p872_p5 }
  0x21   : > { %882 = shalt.err (!%p879_p9)
}
  0x22   : > { %s916_s6 = smov [#allocation4]   ;;  %p1110_p10 = scmp.ne.s32.totalorder %s1107_s20, 0 }
  0x23   : > { %806 = dma.vmem_to_smem (!%p981_p6), %s184_s27, 16, %s916_s6, [#allocation5]  }
  0x24   : > { %222 = sbr.rel (%p1110_p10) target bundleno = 329 (0x149), region = 36  ;;  %p1111_p11 = scmp.ne.s32.totalorder (!%p1110_p10), %s1108_s21, 0 }
  0x2b   : > { %896 = dma.done.wait (%p1111_p11), [#allocation3], 128  }
  0x2c   : > { %898 = vsyncadd (%p1111_p11), [#allocation3], 4294967168 }
  0x2d   : > { %900 = dma.done.wait (%p1111_p11), [#allocation5], 16  }
  0x2e   : > { %902 = vsyncadd (%p1111_p11), [#allocation5], 4294967280 }
  0x2f   : > { %232 = sfence }
  0x30   : > { %p271_p3 = scmp.lt.s32.totalorder %s905_s15, 1  ;;  %s301_s7 = sld [smem:[#allocation4]]  ;;  %v332_v20 = vlaneseq }
  0x31   : > { %s304_s8 = sld [smem:[#allocation2]]  ;;  %s711_s9 = sld [smem:[#allocation2 + $0x1]] }
  0x32   : > { %s1119_s15 = smov (!%p271_p3, %s905_s15), 1  ;;  %s713_s10 = sld [smem:[#allocation2 + $0x2]]  ;;  %vm1027_vm0 = vcmp.lt.s32.totalorder %v332_v20, 512 }
  0x33   : > { %s715_s11 = sld [smem:[#allocation2 + $0x3]]  ;;  %s789_s12 = sshll.u32 %s1119_s15, 4 }
  0x34   : > { %s790_s13 = sshll.u32 %s1119_s15, 5  ;;  %s1010_s20 = scalar_lea.vmem %s1099_s0, %s789_s12 }
  0x35   : > { %s1015_s23 = scalar_lea.vmem %s1100_s1, %s790_s13  ;;  %v305_v2 = vld [vmem:[%s1010_s20] ss:$4 sm:$0xf]  ;;  %v712_v5 = vld [vmem:[%s1010_s20 + $0x1] ss:$4 sm:$0xf]  ;;  %s1025_s26 = scalar_lea.vmem %s1103_s4, %s790_s13 }
  0x36   : > { %v300_v0 = vld [vmem:[%s1015_s23] ss:$8 sm:$0xf]  ;;  %v302_v1 = vstv %s301_s7  ;;  %v714_v7 = vld [vmem:[%s1010_s20 + $0x2] ss:$4 sm:$0xf] }
  0x37   : > { %v303_v3 = vadd.f32 %v302_v1, %v300_v0  ;;  %v306_v4 = vstv %s304_s8  ;;  %v312_v6 = vstv %s711_s9  ;;  %v716_v11 = vld [vmem:[%s1010_s20 + $0x3] ss:$4 sm:$0xf]  ;;  %s719_s15 = sld [smem:[#allocation2 + $0x80]]  ;;  %s718_s27 = sld [smem:[#allocation4 + $0x1]] }
  0x38   : > { %v307_v8 = vmul.f32 %v306_v4, %v305_v2  ;;  %v313_v9 = vmul.f32 %v712_v5, %v312_v6  ;;  %v318_v10 = vstv %s713_s10  ;;  %s720_s28 = sld [smem:[#allocation2 + $0x81]]  ;;  %s722_s29 = sld [smem:[#allocation2 + $0x82]]  ;;  %v344_v26 = vld [vmem:[%s1010_s20] ss:$4 sm:$0xf] }
  0x39   : > { %v324_v12 = vstv %s715_s11  ;;  %v319_v14 = vmul.f32 %v714_v7, %v318_v10  ;;  %s724_s30 = sld [smem:[#allocation2 + $0x83]]  ;;  %v721_v29 = vld [vmem:[%s1010_s20 + $0x1] ss:$4 sm:$0xf]  ;;  %s729_s5 = sld [smem:[#allocation2 + $0x100]] }
  0x3a   : > { %v308_v13 = vadd.f32 %v307_v8, %v303_v3  ;;  %v325_v16 = vmul.f32 %v716_v11, %v324_v12  ;;  %v723_v33 = vld [vmem:[%s1010_s20 + $0x2] ss:$4 sm:$0xf]  ;;  %v725_v37 = vld [vmem:[%s1010_s20 + $0x3] ss:$4 sm:$0xf] }
  0x3b   : > { %s728_s6 = sld [smem:[#allocation4 + $0x2]]  ;;  %s730_s7 = sld [smem:[#allocation2 + $0x101]]  ;;  %v377_v50 = vld [vmem:[%s1010_s20] ss:$4 sm:$0xf] }
  0x3c   : > { %v314_v15 = vadd.f32 %v313_v9, %v308_v13  ;;  %s732_s8 = sld [smem:[#allocation2 + $0x102]]  ;;  %s734_s9 = sld [smem:[#allocation2 + $0x103]]  ;;  %v731_v53 = vld [vmem:[%s1010_s20 + $0x1] ss:$4 sm:$0xf] }
  0x3d   : > { %v345_v27 = vstv %s719_s15  ;;  %v341_v28 = vstv %s718_s27  ;;  %v733_v57 = vld [vmem:[%s1010_s20 + $0x2] ss:$4 sm:$0xf]  ;;  %v735_v61 = vld [vmem:[%s1010_s20 + $0x3] ss:$4 sm:$0xf] }
  0x3e   : > { %v320_v17 = vadd.f32 %v319_v14, %v314_v15  ;;  %v350_v30 = vstv %s720_s28  ;;  %v346_v31 = vmul.f32 %v345_v27, %v344_v26  ;;  %v355_v34 = vstv %s722_s29  ;;  %s739_s10 = sld [smem:[#allocation2 + $0x180]]  ;;  %s738_s11 = sld [smem:[#allocation4 + $0x3]]  ;;  %v410_v10 = vld [vmem:[%s1010_s20] ss:$4 sm:$0xf] }
  0x3f   : > { %v351_v36 = vmul.f32 %v721_v29, %v350_v30  ;;  %v360_v38 = vstv %s724_s30  ;;  %v356_v40 = vmul.f32 %v723_v33, %v355_v34  ;;  %v378_v51 = vstv %s729_s5  ;;  %s740_s12 = sld [smem:[#allocation2 + $0x181]]  ;;  %s742_s13 = sld [smem:[#allocation2 + $0x182]]  ;;  %v741_v13 = vld [vmem:[%s1010_s20 + $0x1] ss:$4 sm:$0xf] }
  0x40   : > { %v326_v18 = vadd.f32 %v325_v16, %v320_v17  ;;  %v361_v42 = vmul.f32 %v725_v37, %v360_v38  ;;  %v379_v55 = vmul.f32 %v378_v51, %v377_v50  ;;  %s744_s14 = sld [smem:[#allocation2 + $0x183]]  ;;  %v743_v17 = vld [vmem:[%s1010_s20 + $0x2] ss:$4 sm:$0xf]  ;;  %s749_s18 = sld [smem:[#allocation2 + $0x200]] }
  0x41   : > { %v374_v52 = vstv %s728_s6  ;;  %v383_v54 = vstv %s730_s7  ;;  %s748_s21 = sld [smem:[#allocation4 + $0x4]]  ;;  %s750_s22 = sld [smem:[#allocation2 + $0x201]]  ;;  %v751_v38 = vld [vmem:[%s1010_s20 + $0x1] ss:$4 sm:$0xf] }
  0x42   : > { %v328_v19 = vmul.f32 0.70710677, %v326_v18  ;;  %v327_v21 = vmul.f32 0.5, %v326_v18  ;;  %v388_v58 = vstv %s732_s8  ;;  %v384_v60 = vmul.f32 %v731_v53, %v383_v54  ;;  %s752_s15 = sld [smem:[#allocation2 + $0x202]]  ;;  %s754_s24 = sld [smem:[#allocation2 + $0x203]] }
  0x43   : > { %v393_v62 = vstv %s734_s9  ;;  %v389_v0 = vmul.f32 %v733_v57, %v388_v58  ;;  %s759_s25 = sld [smem:[#allocation2 + $0x280]]  ;;  %s758_s27 = sld [smem:[#allocation4 + $0x5]] }
  0x44   : > { %837 = verf.f32 %v328_v19  ;;  %v394_v2 = vmul.f32 %v735_v61, %v393_v62  ;;  %v411_v11 = vstv %s739_s10  ;;  %v407_v12 = vstv %s738_s11  ;;  %s760_s28 = sld [smem:[#allocation2 + $0x281]]  ;;  %s762_s29 = sld [smem:[#allocation2 + $0x282]]  ;;  %v761_v62 = vld [vmem:[%s1010_s20 + $0x1] ss:$4 sm:$0xf] }
  0x45   : > { %v416_v14 = vstv %s740_s12  ;;  %v412_v15 = vmul.f32 %v411_v11, %v410_v10  ;;  %v421_v18 = vstv %s742_s13  ;;  %s764_s30 = sld [smem:[#allocation2 + $0x283]]  ;;  %s769_s5 = sld [smem:[#allocation2 + $0x300]] }
  0x46   : > { %v417_v20 = vmul.f32 %v741_v13, %v416_v14  ;;  %s768_s6 = sld [smem:[#allocation4 + $0x6]]  ;;  %s770_s7 = sld [smem:[#allocation2 + $0x301]] }
  0x47   : > { %v440_v37 = vstv %s748_s21  ;;  %s772_s8 = sld [smem:[#allocation2 + $0x302]]  ;;  %s774_s9 = sld [smem:[#allocation2 + $0x303]] }
  0x48   : > { %s779_s10 = sld [smem:[#allocation2 + $0x380]]  ;;  %s778_s11 = sld [smem:[#allocation4 + $0x7]] }
  0x49   : > { %v473_v61 = vstv %s758_s27  ;;  %s780_s12 = sld [smem:[#allocation2 + $0x381]]  ;;  %s782_s13 = sld [smem:[#allocation2 + $0x382]] }
  0x4e   : > { %v838_v22 = vpop.eup %837 }
  0x4f   : > { %v330_v23 = vadd.f32 1.0, %v838_v22  ;;  %v426_v22 = vstv %s744_s14  ;;  %s784_s14 = sld [smem:[#allocation2 + $0x383]] }
  0x51   : > { %v331_v25 = vmul.f32 %v330_v23, %v327_v21  ;;  %v745_v21 = vld [vmem:[%s1010_s20 + $0x3] ss:$4 sm:$0xf] }
  0x52   : > { %v427_v27 = vmul.f32 %v745_v21, %v426_v22  ;;  %v506_v21 = vstv %s768_s6  ;;  %v771_v22 = vld [vmem:[%s1010_s20 + $0x1] ss:$4 sm:$0xf] }
  0x53   : > { %336 = vst.msk [vmem:[%s1025_s26] ss:$8 sm:$0xf] %vm1027_vm0, %v331_v25  ;;  %v422_v25 = vmul.f32 %v743_v17, %v421_v18 }
  0x5a   : > { %v717_v32 = vld [vmem:[%s1015_s23 + $0x1] ss:$8 sm:$0xf] }
  0x5b   : > { %v342_v35 = vadd.f32 %v717_v32, %v341_v28 }
  0x5d   : > { %v347_v39 = vadd.f32 %v346_v31, %v342_v35  ;;  %v443_v35 = vld [vmem:[%s1010_s20] ss:$4 sm:$0xf] }
  0x5f   : > { %v352_v41 = vadd.f32 %v351_v36, %v347_v39  ;;  %v444_v36 = vstv %s749_s18  ;;  %v449_v39 = vstv %s750_s22 }
  0x61   : > { %v357_v43 = vadd.f32 %v356_v40, %v352_v41  ;;  %v445_v40 = vmul.f32 %v444_v36, %v443_v35 }
  0x63   : > { %v362_v44 = vadd.f32 %v361_v42, %v357_v43  ;;  %v753_v42 = vld [vmem:[%s1010_s20 + $0x2] ss:$4 sm:$0xf]  ;;  %v454_v43 = vstv %s752_s15 }
  0x65   : > { %v364_v45 = vmul.f32 0.70710677, %v362_v44  ;;  %v363_v47 = vmul.f32 0.5, %v362_v44 }
  0x67   : > { %839 = verf.f32 %v364_v45  ;;  %v450_v45 = vmul.f32 %v751_v38, %v449_v39 }
  0x71   : > { %v840_v46 = vpop.eup %839 }
  0x72   : > { %v366_v48 = vadd.f32 1.0, %v840_v46  ;;  %v755_v46 = vld [vmem:[%s1010_s20 + $0x3] ss:$4 sm:$0xf] }
  0x74   : > { %v367_v49 = vmul.f32 %v366_v48, %v363_v47  ;;  %v459_v47 = vstv %s754_s24 }
  0x75   : > { %v460_v51 = vmul.f32 %v755_v46, %v459_v47  ;;  %v539_v46 = vstv %s778_s11  ;;  %v781_v47 = vld [vmem:[%s1010_s20 + $0x1] ss:$4 sm:$0xf] }
  0x76   : > { %726 = vst.msk [vmem:[%s1025_s26 + $0x1] ss:$8 sm:$0xf] %vm1027_vm0, %v367_v49  ;;  %v455_v49 = vmul.f32 %v753_v42, %v454_v43 }
  0x7d   : > { %v727_v56 = vld [vmem:[%s1015_s23 + $0x2] ss:$8 sm:$0xf] }
  0x7e   : > { %v375_v59 = vadd.f32 %v727_v56, %v374_v52 }
  0x80   : > { %v380_v63 = vadd.f32 %v379_v55, %v375_v59  ;;  %v476_v59 = vld [vmem:[%s1010_s20] ss:$4 sm:$0xf] }
  0x82   : > { %v385_v1 = vadd.f32 %v384_v60, %v380_v63  ;;  %v477_v60 = vstv %s759_s25  ;;  %v482_v63 = vstv %s760_s28 }
  0x84   : > { %v390_v3 = vadd.f32 %v389_v0, %v385_v1  ;;  %v478_v0 = vmul.f32 %v477_v60, %v476_v59 }
  0x86   : > { %v395_v4 = vadd.f32 %v394_v2, %v390_v3  ;;  %v763_v2 = vld [vmem:[%s1010_s20 + $0x2] ss:$4 sm:$0xf]  ;;  %v487_v3 = vstv %s762_s29 }
  0x88   : > { %v397_v5 = vmul.f32 0.70710677, %v395_v4  ;;  %v396_v7 = vmul.f32 0.5, %v395_v4 }
  0x8a   : > { %841 = verf.f32 %v397_v5  ;;  %v483_v5 = vmul.f32 %v761_v62, %v482_v63 }
  0x94   : > { %v842_v6 = vpop.eup %841 }
  0x95   : > { %v399_v8 = vadd.f32 1.0, %v842_v6  ;;  %v765_v6 = vld [vmem:[%s1010_s20 + $0x3] ss:$4 sm:$0xf] }
  0x97   : > { %v400_v9 = vmul.f32 %v399_v8, %v396_v7  ;;  %v492_v7 = vstv %s764_s30 }
  0x98   : > { %v493_v11 = vmul.f32 %v765_v6, %v492_v7 }
  0x99   : > { %736 = vst.msk [vmem:[%s1025_s26 + $0x2] ss:$8 sm:$0xf] %vm1027_vm0, %v400_v9  ;;  %v488_v9 = vmul.f32 %v763_v2, %v487_v3 }
  0xa0   : > { %v737_v16 = vld [vmem:[%s1015_s23 + $0x3] ss:$8 sm:$0xf] }
  0xa1   : > { %v408_v19 = vadd.f32 %v737_v16, %v407_v12 }
  0xa3   : > { %v413_v23 = vadd.f32 %v412_v15, %v408_v19  ;;  %v509_v19 = vld [vmem:[%s1010_s20] ss:$4 sm:$0xf] }
  0xa5   : > { %v418_v26 = vadd.f32 %v417_v20, %v413_v23  ;;  %v510_v20 = vstv %s769_s5  ;;  %v515_v23 = vstv %s770_s7 }
  0xa7   : > { %v423_v28 = vadd.f32 %v422_v25, %v418_v26  ;;  %v511_v25 = vmul.f32 %v510_v20, %v509_v19 }
  0xa9   : > { %v428_v29 = vadd.f32 %v427_v27, %v423_v28  ;;  %v773_v27 = vld [vmem:[%s1010_s20 + $0x2] ss:$4 sm:$0xf]  ;;  %v520_v28 = vstv %s772_s8 }
  0xab   : > { %v430_v30 = vmul.f32 0.70710677, %v428_v29  ;;  %v429_v32 = vmul.f32 0.5, %v428_v29 }
  0xad   : > { %843 = verf.f32 %v430_v30  ;;  %v516_v30 = vmul.f32 %v771_v22, %v515_v23 }
  0xb7   : > { %v844_v31 = vpop.eup %843 }
  0xb8   : > { %v432_v33 = vadd.f32 1.0, %v844_v31  ;;  %v775_v31 = vld [vmem:[%s1010_s20 + $0x3] ss:$4 sm:$0xf] }
  0xba   : > { %v433_v34 = vmul.f32 %v432_v33, %v429_v32  ;;  %v525_v32 = vstv %s774_s9 }
  0xbb   : > { %v526_v36 = vmul.f32 %v775_v31, %v525_v32 }
  0xbc   : > { %746 = vst.msk [vmem:[%s1025_s26 + $0x3] ss:$8 sm:$0xf] %vm1027_vm0, %v433_v34  ;;  %v521_v34 = vmul.f32 %v773_v27, %v520_v28 }
  0xc3   : > { %v747_v41 = vld [vmem:[%s1015_s23 + $0x4] ss:$8 sm:$0xf] }
  0xc4   : > { %v441_v44 = vadd.f32 %v747_v41, %v440_v37 }
  0xc6   : > { %v446_v48 = vadd.f32 %v445_v40, %v441_v44  ;;  %v542_v44 = vld [vmem:[%s1010_s20] ss:$4 sm:$0xf] }
  0xc8   : > { %v451_v50 = vadd.f32 %v450_v45, %v446_v48  ;;  %v543_v45 = vstv %s779_s10  ;;  %v548_v48 = vstv %s780_s12 }
  0xca   : > { %v456_v52 = vadd.f32 %v455_v49, %v451_v50  ;;  %v544_v49 = vmul.f32 %v543_v45, %v542_v44 }
  0xcc   : > { %v461_v53 = vadd.f32 %v460_v51, %v456_v52  ;;  %v783_v51 = vld [vmem:[%s1010_s20 + $0x2] ss:$4 sm:$0xf]  ;;  %v553_v52 = vstv %s782_s13 }
  0xce   : > { %v463_v54 = vmul.f32 0.70710677, %v461_v53  ;;  %v462_v56 = vmul.f32 0.5, %v461_v53 }
  0xd0   : > { %845 = verf.f32 %v463_v54  ;;  %v549_v54 = vmul.f32 %v781_v47, %v548_v48 }
  0xda   : > { %v846_v55 = vpop.eup %845 }
  0xdb   : > { %v465_v57 = vadd.f32 1.0, %v846_v55  ;;  %v785_v55 = vld [vmem:[%s1010_s20 + $0x3] ss:$4 sm:$0xf] }
  0xdd   : > { %v466_v58 = vmul.f32 %v465_v57, %v462_v56  ;;  %v558_v56 = vstv %s784_s14 }
  0xde   : > { %v559_v60 = vmul.f32 %v785_v55, %v558_v56 }
  0xdf   : > { %756 = vst.msk [vmem:[%s1025_s26 + $0x4] ss:$8 sm:$0xf] %vm1027_vm0, %v466_v58  ;;  %v554_v58 = vmul.f32 %v783_v51, %v553_v52 }
  0xe6   : > { %v757_v1 = vld [vmem:[%s1015_s23 + $0x5] ss:$8 sm:$0xf] }
  0xe7   : > { %v474_v4 = vadd.f32 %v757_v1, %v473_v61 }
  0xe9   : > { %v479_v8 = vadd.f32 %v478_v0, %v474_v4 }
  0xeb   : > { %v484_v10 = vadd.f32 %v483_v5, %v479_v8 }
  0xed   : > { %v489_v12 = vadd.f32 %v488_v9, %v484_v10 }
  0xef   : > { %v494_v13 = vadd.f32 %v493_v11, %v489_v12 }
  0xf1   : > { %v496_v14 = vmul.f32 0.70710677, %v494_v13  ;;  %v495_v16 = vmul.f32 0.5, %v494_v13 }
  0xf3   : > { %847 = verf.f32 %v496_v14 }
  0xfd   : > { %v848_v15 = vpop.eup %847 }
  0xfe   : > { %v498_v17 = vadd.f32 1.0, %v848_v15 }
 0x100   : > { %v499_v18 = vmul.f32 %v498_v17, %v495_v16 }
 0x102   : > { %766 = vst.msk [vmem:[%s1025_s26 + $0x5] ss:$8 sm:$0xf] %vm1027_vm0, %v499_v18 }
 0x109   : > { %v767_v26 = vld [vmem:[%s1015_s23 + $0x6] ss:$8 sm:$0xf] }
 0x10a   : > { %v507_v29 = vadd.f32 %v767_v26, %v506_v21 }
 0x10c   : > { %v512_v33 = vadd.f32 %v511_v25, %v507_v29 }
 0x10e   : > { %v517_v35 = vadd.f32 %v516_v30, %v512_v33 }
 0x110   : > { %v522_v37 = vadd.f32 %v521_v34, %v517_v35 }
 0x112   : > { %v527_v38 = vadd.f32 %v526_v36, %v522_v37 }
 0x114   : > { %v529_v39 = vmul.f32 0.70710677, %v527_v38  ;;  %v528_v41 = vmul.f32 0.5, %v527_v38 }
 0x116   : > { %849 = verf.f32 %v529_v39 }
 0x120   : > { %v850_v40 = vpop.eup %849 }
 0x121   : > { %v531_v42 = vadd.f32 1.0, %v850_v40 }
 0x123   : > { %v532_v43 = vmul.f32 %v531_v42, %v528_v41 }
 0x125   : > { %776 = vst.msk [vmem:[%s1025_s26 + $0x6] ss:$8 sm:$0xf] %vm1027_vm0, %v532_v43 }
 0x12c   : > { %v777_v50 = vld [vmem:[%s1015_s23 + $0x7] ss:$8 sm:$0xf] }
 0x12d   : > { %v540_v53 = vadd.f32 %v777_v50, %v539_v46 }
 0x12f   : > { %v545_v57 = vadd.f32 %v544_v49, %v540_v53 }
 0x131   : > { %v550_v59 = vadd.f32 %v549_v54, %v545_v57 }
 0x133   : > { %v555_v61 = vadd.f32 %v554_v58, %v550_v59 }
 0x135   : > { %v560_v62 = vadd.f32 %v559_v60, %v555_v61 }
 0x137   : > { %v562_v63 = vmul.f32 0.70710677, %v560_v62  ;;  %v561_v1 = vmul.f32 0.5, %v560_v62 }
 0x139   : > { %851 = verf.f32 %v562_v63 }
 0x143   : > { %v852_v0 = vpop.eup %851 }
 0x144   : > { %v564_v2 = vadd.f32 1.0, %v852_v0 }
 0x146   : > { %v565_v3 = vmul.f32 %v564_v2, %v561_v1 }
 0x148   : > { %786 = vst.msk [vmem:[%s1025_s26 + $0x7] ss:$8 sm:$0xf] %vm1027_vm0, %v565_v3 }
 0x149 PF: > { %s16_s17 = sadd.s32 1, %s913_s17   ;;  %s1114_s15 = smov %s909_s16 }
 0x14a   : > { %p13_p4 = scmp.ge.s32.totalorder %s16_s17, 4   ;;  %s1115_s16 = smov %s1117_s19 }
 0x14c   :  { %15 = sbr.rel (!%p13_p4) target bundleno = 3 (0x3), region = 95 }
 0x153   :  { %599 = vsyncpa [#allocation3], 1 }
 0x154   :  { %601 = vsyncpa [#allocation3 + $0x1], 1 }
 0x155   :  { %602 = vsyncpa [#allocation5], 1 }

// kernel: fourier_basic_block_3d.6
= control target key start
LH: loop header
LB: loop body
LE: loop exit
PB: predicated region body
PF: predicated region fallthrough
CT: control target
= control target key end

     0   :  { %v28_v0 = vlaneseq  ;;  %s1705_s0 = inlined_call_operand.vmem [shape: f32[2,8,256], index: 0, kind: input, shape index: {}]   ;;  %s1706_s1 = inlined_call_operand.vmem [shape: f32[2,8,256], index: 1, kind: input, shape index: {}]   ;;  %s1707_s2 = inlined_call_operand.vmem [shape: bf16[8,8,256], index: 2, kind: input, shape index: {}]   ;;  %s1708_s3 = inlined_call_operand.vmem [shape: bf16[8,8,256], index: 3, kind: input, shape index: {}]   ;;  %s1709_s4 = inlined_call_operand.vmem [shape: f32[2,8,256], index: 4, kind: output, shape index: {0}]   ;;  %s1710_s5 = inlined_call_operand.vmem [shape: f32[2,8,256], index: 5, kind: output, shape index: {1}]  }
   0x1   :  { %v19_v1 = vld [vmem:[%s1707_s2] sm:$0xff]  ;;  %v785_v7 = vld [vmem:[%s1707_s2 + $0x8] sm:$0xff]  ;;  %v791_v16 = vld [vmem:[%s1707_s2 + $0x10] sm:$0xff] }
   0x2   :  { %v22_v2 = vld [vmem:[%s1708_s3] sm:$0xff]  ;;  %v872_v4 = vunpack.c.l.bf16 %v19_v1  ;;  %v29_v6 = vshrl.u32 %v28_v0, 7  ;;  %v786_v8 = vld [vmem:[%s1708_s3 + $0x8] sm:$0xff]  ;;  %v887_v10 = vunpack.c.l.bf16 %v785_v7  ;;  %v901_v14 = vunpack.c.h.bf16 %v19_v1  ;;  %v911_v17 = vld [vmem:[%s1708_s3 + $0x10] sm:$0xff] }
   0x3   :  { %v870_v3 = vld [vmem:[%s1705_s0] ss:$8 sm:$0x3]  ;;  %v885_v9 = vunpack.c.l.bf16 %v22_v2  ;;  %v889_v11 = vunpack.c.l.bf16 %v786_v8  ;;  %v894_v12 = vld [vmem:[%s1705_s0 + $0x1] ss:$8 sm:$0x3]  ;;  %v918_v19 = vunpack.c.h.bf16 %v22_v2  ;;  %v920_v20 = vunpack.c.h.bf16 %v785_v7 }
   0x4   :  { %1778 = vst [vmem:[#allocation2_spill] sm:$0xff] %v872_v4  ;;  %v877_v5 = vld [vmem:[%s1706_s1] ss:$8 sm:$0x3]  ;;  %1780 = vst [vmem:[#allocation4_spill] sm:$0xff] %v887_v10  ;;  %v903_v15 = vsub.s32 0, %v29_v6  ;;  %v922_v21 = vunpack.c.h.bf16 %v786_v8  ;;  %v924_v22 = vunpack.c.l.bf16 %v791_v16  ;;  %v927_v23 = vunpack.c.l.bf16 %v911_v17 }
   0x5   :  { %1779 = vst [vmem:[#allocation3_spill] sm:$0xff] %v885_v9  ;;  %1781 = vst [vmem:[#allocation5_spill] sm:$0xff] %v889_v11  ;;  %v899_v13 = vld [vmem:[%s1706_s1 + $0x1] ss:$8 sm:$0x3]  ;;  %v937_v25 = vld [vmem:[%s1707_s2 + $0x18] sm:$0xff]  ;;  %v946_v28 = vunpack.c.h.bf16 %v791_v16 }
   0x6   :  { %1782 = vst [vmem:[#allocation6_spill] sm:$0xff] %v903_v15  ;;  %v916_v18 = vld [vmem:[%s1705_s0 + $0x2] ss:$8 sm:$0x3]  ;;  %1783 = vst [vmem:[#allocation7_spill] sm:$0xff] %v918_v19  ;;  %v942_v26 = vld [vmem:[%s1708_s3 + $0x18] sm:$0xff]  ;;  %v950_v29 = vrot.slane %v870_v3, %v903_v15  ;;  %v954_v30 = vrot.slane %v877_v5, %v903_v15  ;;  %v958_v31 = vrot.slane %v894_v12, %v903_v15  ;;  %v983_v37 = vunpack.c.l.bf16 %v937_v25 }
   0x7   :  { %1784 = vst [vmem:[#allocation8_spill] sm:$0xff] %v922_v21  ;;  %1785 = vst [vmem:[#allocation9_spill] sm:$0xff] %v924_v22  ;;  %v932_v24 = vld [vmem:[%s1706_s1 + $0x2] ss:$8 sm:$0x3]  ;;  %v944_v27 = vsub.s32 1, %v29_v6  ;;  %v962_v32 = vrot.slane %v899_v13, %v903_v15  ;;  %v976_v35 = vrot.slane %v916_v18, %v903_v15  ;;  %v986_v38 = vunpack.c.l.bf16 %v942_v26 }
   0x8   :  { %1786 = vst [vmem:[#allocation10_spill] sm:$0xff] %v927_v23  ;;  %v967_v33 = vld [vmem:[%s1705_s0 + $0x3] ss:$8 sm:$0x3]  ;;  %v980_v36 = vrot.slane %v932_v24, %v903_v15  ;;  %1789 = vst [vmem:[#allocation13_spill] sm:$0xff] %v983_v37  ;;  %v38_v41 = vmul.f32 %v950_v29, %v872_v4  ;;  %v51_v42 = vmul.f32 %v954_v30, %v885_v9  ;;  %v1065_v63 = vld [vmem:[%s1707_s2 + $0x30] sm:$0xff] }
   0x9   :  { %1787 = vst [vmem:[#allocation11_spill] sm:$0xff] %v944_v27  ;;  %v972_v34 = vld [vmem:[%s1706_s1 + $0x3] ss:$8 sm:$0x3]  ;;  %1788 = vst [vmem:[#allocation12_spill] sm:$0xff] %v976_v35  ;;  %v130_v43 = vmul.f32 %v958_v31, %v887_v10  ;;  %v143_v44 = vmul.f32 %v962_v32, %v889_v11  ;;  %v222_v46 = vmul.f32 %v976_v35, %v924_v22  ;;  %v1070_v0 = vld [vmem:[%s1708_s3 + $0x30] sm:$0xff] }
   0xa   :  { %1790 = vst [vmem:[#allocation14_spill] sm:$0xff] %v986_v38  ;;  %v991_v39 = vld [vmem:[%s1707_s2 + $0x20] sm:$0xff]  ;;  %v235_v47 = vmul.f32 %v980_v36, %v927_v23  ;;  %v1017_v48 = vrot.slane %v967_v33, %v903_v15  ;;  %v1021_v49 = vrot.slane %v972_v34, %v903_v15  ;;  %v1031_v51 = vld [vmem:[%s1707_s2 + $0x28] sm:$0xff]  ;;  %v53_v53 = vsub.f32 %v38_v41, %v51_v42 }
   0xb   :  { %v996_v40 = vld [vmem:[%s1708_s3 + $0x20] sm:$0xff]  ;;  %v1036_v52 = vld [vmem:[%s1708_s3 + $0x28] sm:$0xff]  ;;  %v145_v54 = vsub.f32 %v130_v43, %v143_v44  ;;  %v1039_v55 = vunpack.c.l.bf16 %v991_v39  ;;  %v1077_v6 = vunpack.c.l.bf16 %v1031_v51 }
   0xc   :  { %v1009_v45 = vld [vmem:[%s1705_s0 + $0x4] ss:$8 sm:$0x3]  ;;  %1791 = vst [vmem:[#allocation15_spill] sm:$0xff] %v1017_v48  ;;  %1792 = vst [vmem:[#allocation16_spill] sm:$0xff] %v1021_v49  ;;  %v1042_v56 = vunpack.c.l.bf16 %v996_v40  ;;  %v237_v59 = vsub.f32 %v222_v46, %v235_v47  ;;  %v314_v60 = vmul.f32 %v1017_v48, %v983_v37  ;;  %v327_v61 = vmul.f32 %v1021_v49, %v986_v38  ;;  %v1105_v46 = vld [vmem:[%s1707_s2 + $0x38] sm:$0xff] }
   0xd   :  { %v1026_v50 = vld [vmem:[%s1706_s1 + $0x4] ss:$8 sm:$0x3]  ;;  %1793 = vst [vmem:[#allocation17_spill] sm:$0xff] %v1039_v55  ;;  %v1060_v62 = vrot.slane %v1009_v45, %v903_v15  ;;  %v147_v1 = vadd.f32 %v145_v54, %v53_v53  ;;  %1797 = vst [vmem:[#allocation21_spill] sm:$0xff] %v1077_v6  ;;  %v1080_v7 = vunpack.c.l.bf16 %v1036_v52  ;;  %v1110_v47 = vld [vmem:[%s1708_s3 + $0x38] sm:$0xff] }
   0xe   :  { %1794 = vst [vmem:[#allocation18_spill] sm:$0xff] %v1042_v56  ;;  %v1047_v57 = vld [vmem:[%s1705_s0 + $0x5] ss:$8 sm:$0x3]  ;;  %v1074_v2 = vrot.slane %v1026_v50, %v903_v15  ;;  %v329_v41 = vsub.f32 %v314_v60, %v327_v61  ;;  %v1115_v60 = vunpack.c.l.bf16 %v1065_v63  ;;  %v1118_v61 = vunpack.c.l.bf16 %v1070_v0 }
   0xf   :  { %v1052_v58 = vld [vmem:[%s1706_s1 + $0x5] ss:$8 sm:$0x3]  ;;  %1795 = vst [vmem:[#allocation19_spill] sm:$0xff] %v1060_v62  ;;  %1798 = vst [vmem:[#allocation22_spill] sm:$0xff] %v1080_v7  ;;  %v406_v42 = vmul.f32 %v1060_v62, %v1039_v55  ;;  %v1096_v43 = vrot.slane %v1047_v57, %v903_v15  ;;  %v239_v53 = vadd.f32 %v237_v59, %v147_v1 }
  0x10   :  { %1796 = vst [vmem:[#allocation20_spill] sm:$0xff] %v1074_v2  ;;  %v1085_v8 = vld [vmem:[%s1705_s0 + $0x6] ss:$8 sm:$0x3]  ;;  %v1100_v44 = vrot.slane %v1052_v58, %v903_v15  ;;  %v419_v54 = vmul.f32 %v1074_v2, %v1042_v56 }
  0x11   :  { %v1090_v16 = vld [vmem:[%s1706_s1 + $0x6] ss:$8 sm:$0x3]  ;;  %1799 = vst [vmem:[#allocation23_spill] sm:$0xff] %v1096_v43  ;;  %v498_v55 = vmul.f32 %v1096_v43, %v1077_v6  ;;  %v1131_v1 = vrot.slane %v1085_v8, %v903_v15  ;;  %v331_v48 = vadd.f32 %v329_v41, %v239_v53  ;;  %v1143_v43 = vunpack.c.l.bf16 %v1105_v46 }
  0x12   :  { %1800 = vst [vmem:[#allocation24_spill] sm:$0xff] %v1100_v44  ;;  %v1123_v62 = vld [vmem:[%s1705_s0 + $0x7] ss:$8 sm:$0x3]  ;;  %v511_v59 = vmul.f32 %v1100_v44, %v1080_v7  ;;  %v1135_v56 = vrot.slane %v1090_v16, %v903_v15  ;;  %v421_v38 = vsub.f32 %v406_v42, %v419_v54  ;;  %v1146_v7 = vunpack.c.l.bf16 %v1110_v47 }
  0x13   :  { %v1140_v2 = vld [vmem:[%s1706_s1 + $0x7] ss:$8 sm:$0x3]  ;;  %v590_v6 = vmul.f32 %v1131_v1, %v1115_v60  ;;  %v1154_v37 = vrot.slane %v1123_v62, %v903_v15  ;;  %v1162_v42 = vrot.slane %v870_v3, %v944_v27 }
  0x14   :  { %v513_v44 = vsub.f32 %v498_v55, %v511_v59  ;;  %v603_v49 = vmul.f32 %v1135_v56, %v1118_v61  ;;  %v423_v35 = vadd.f32 %v421_v38, %v331_v48  ;;  %v1158_v41 = vrot.slane %v1140_v2, %v903_v15 }
  0x15   :  { %1801 = vst [vmem:[#allocation25_spill] sm:$0xff] %v1154_v37  ;;  %1802 = vst [vmem:[#allocation26_spill] sm:$0xff] %v1162_v42  ;;  %v1166_v55 = vrot.slane %v877_v5, %v944_v27  ;;  %v682_v54 = vmul.f32 %v1154_v37, %v1143_v43  ;;  %v1172_v59 = vrot.slane %v894_v12, %v944_v27  ;;  %v1189_v15 = vunpack.c.h.bf16 %v911_v17 }
  0x16   :  { %v605_v53 = vsub.f32 %v590_v6, %v603_v49  ;;  %v1176_v38 = vrot.slane %v899_v13, %v944_v27  ;;  %v515_v48 = vadd.f32 %v513_v44, %v423_v35  ;;  %v695_v3 = vmul.f32 %v1158_v41, %v1146_v7 }
  0x17   :  { %1803 = vst [vmem:[#allocation27_spill] sm:$0xff] %v1172_v59  ;;  %v39_v5 = vmul.f32 %v1162_v42, %v901_v14  ;;  %v52_v49 = vmul.f32 %v1166_v55, %v918_v19  ;;  %v131_v6 = vmul.f32 %v1172_v59, %v920_v20  ;;  %v1193_v13 = vrot.slane %v916_v18, %v944_v27 }
  0x18   :  { %1804 = vst [vmem:[#allocation28_spill] sm:$0xff] %v1176_v38  ;;  %v144_v12 = vmul.f32 %v1176_v38, %v922_v21  ;;  %v607_v35 = vadd.f32 %v605_v53, %v515_v48  ;;  %v697_v44 = vsub.f32 %v682_v54, %v695_v3  ;;  %v1197_v42 = vrot.slane %v932_v24, %v944_v27 }
  0x19   :  { %v54_v37 = vsub.f32 %v39_v5, %v52_v49  ;;  %v223_v59 = vmul.f32 %v1193_v13, %v946_v28  ;;  %v1202_v21 = vunpack.c.h.bf16 %v937_v25  ;;  %v1205_v17 = vunpack.c.h.bf16 %v942_v26 }
  0x1a   :  { %v146_v19 = vsub.f32 %v131_v6, %v144_v12  ;;  %v699_v38 = vadd.f32 %v697_v44, %v607_v35  ;;  %v236_v18 = vmul.f32 %v1197_v42, %v1189_v15  ;;  %v1211_v53 = vrot.slane %v967_v33, %v944_v27 }
  0x1b   :  { %1805 = vst [vmem:[#allocation29_spill] sm:$0xff] %v1205_v17  ;;  %v1215_v24 = vrot.slane %v972_v34, %v944_v27  ;;  %v1218_v48 = vunpack.c.h.bf16 %v991_v39  ;;  %v1221_v25 = vunpack.c.h.bf16 %v996_v40  ;;  %v1225_v26 = vrot.slane %v1009_v45, %v944_v27 }
  0x1c   :  { %v148_v54 = vadd.f32 %v146_v19, %v54_v37  ;;  %751 = vst [vmem:[%s1709_s4] sm:$0xff] %v699_v38  ;;  %v238_v33 = vsub.f32 %v223_v59, %v236_v18  ;;  %v315_v34 = vmul.f32 %v1211_v53, %v1202_v21  ;;  %v1236_v37 = vrot.slane %v1026_v50, %v944_v27 }
  0x1d   :  { %v328_v19 = vmul.f32 %v1215_v24, %v1205_v17  ;;  %v407_v39 = vmul.f32 %v1225_v26, %v1218_v48  ;;  %v1241_v40 = vunpack.c.h.bf16 %v1031_v51  ;;  %v1244_v45 = vunpack.c.h.bf16 %v1036_v52 }
  0x1e   :  { %v1248_v59 = vrot.slane %v1047_v57, %v944_v27  ;;  %v240_v38 = vadd.f32 %v238_v33, %v148_v54  ;;  %v420_v5 = vmul.f32 %v1236_v37, %v1221_v25  ;;  %v1254_v50 = vrot.slane %v1052_v58, %v944_v27 }
  0x1f   :  { %v330_v3 = vsub.f32 %v315_v34, %v328_v19  ;;  %v1259_v49 = vunpack.c.h.bf16 %v1065_v63  ;;  %v1262_v52 = vunpack.c.h.bf16 %v1070_v0  ;;  %v1266_v57 = vrot.slane %v1085_v8, %v944_v27 }
  0x20   :  { %v499_v51 = vmul.f32 %v1248_v59, %v1241_v40  ;;  %v422_v12 = vsub.f32 %v407_v39, %v420_v5  ;;  %v512_v35 = vmul.f32 %v1254_v50, %v1244_v45  ;;  %v1272_v58 = vrot.slane %v1090_v16, %v944_v27 }
  0x21   :  { %1806 = vst [vmem:[#allocation30_spill] sm:$0xff] %v1259_v49  ;;  %1807 = vst [vmem:[#allocation31_spill] sm:$0xff] %v1262_v52  ;;  %v332_v6 = vadd.f32 %v330_v3, %v240_v38  ;;  %v591_v63 = vmul.f32 %v1266_v57, %v1259_v49  ;;  %v1277_v44 = vunpack.c.h.bf16 %v1105_v46  ;;  %v1280_v0 = vunpack.c.h.bf16 %v1110_v47 }
  0x22   :  { %v1284_v8 = vrot.slane %v1123_v62, %v944_v27  ;;  %v514_v54 = vsub.f32 %v499_v51, %v512_v35  ;;  %v604_v33 = vmul.f32 %v1272_v58, %v1262_v52  ;;  %v1290_v16 = vrot.slane %v1140_v2, %v944_v27 }
  0x23   :  { %1808 = vst [vmem:[#allocation32_spill] sm:$0xff] %v1277_v44  ;;  %1809 = vst [vmem:[#allocation33_spill] sm:$0xff] %v1280_v0  ;;  %v424_v18 = vadd.f32 %v422_v12, %v332_v6  ;;  %v57_v47 = vmul.f32 %v954_v30, %v872_v4  ;;  %v59_v34 = vmul.f32 %v950_v29, %v885_v9  ;;  %v1811_v30 = vld [vmem:[#allocation12_spill] sm:$0xff]  ;;  %v1812_v6 = vld [vmem:[#allocation13_spill] sm:$0xff] }
  0x24   :  { %1810 = vst [vmem:[#allocation34_spill] sm:$0xff] %v1284_v8  ;;  %v683_v46 = vmul.f32 %v1284_v8, %v1277_v44  ;;  %v149_v62 = vmul.f32 %v962_v32, %v887_v10  ;;  %v606_v39 = vsub.f32 %v591_v63, %v604_v33  ;;  %v696_v38 = vmul.f32 %v1290_v16, %v1280_v0  ;;  %v1813_v29 = vld [vmem:[#allocation16_spill] sm:$0xff]  ;;  %v1814_v63 = vld [vmem:[#allocation14_spill] sm:$0xff]  ;;  %v1816_v10 = vld [vmem:[#allocation17_spill] sm:$0xff] }
  0x25   :  { %v516_v19 = vadd.f32 %v514_v54, %v424_v18  ;;  %v151_v2 = vmul.f32 %v958_v31, %v889_v11  ;;  %v61_v3 = vadd.f32 %v59_v34, %v57_v47  ;;  %v241_v5 = vmul.f32 %v980_v36, %v924_v22  ;;  %v1815_v54 = vld [vmem:[#allocation15_spill] sm:$0xff]  ;;  %v1817_v9 = vld [vmem:[#allocation20_spill] sm:$0xff]  ;;  %v1818_v47 = vld [vmem:[#allocation18_spill] sm:$0xff] }
  0x26   :  { %v243_v51 = vmul.f32 %v1811_v30, %v927_v23  ;;  %v333_v12 = vmul.f32 %v1813_v29, %v1812_v6  ;;  %v698_v32 = vsub.f32 %v683_v46, %v696_v38  ;;  %v335_v33 = vmul.f32 %v1815_v54, %v1814_v63  ;;  %v1819_v34 = vld [vmem:[#allocation19_spill] sm:$0xff]  ;;  %v1820_v36 = vld [vmem:[#allocation21_spill] sm:$0xff]  ;;  %v1821_v22 = vld [vmem:[#allocation24_spill] sm:$0xff] }
  0x27   :  { %v608_v35 = vadd.f32 %v606_v39, %v516_v19  ;;  %v153_v18 = vadd.f32 %v151_v2, %v149_v62  ;;  %v425_v31 = vmul.f32 %v1817_v9, %v1816_v10  ;;  %v427_v11 = vmul.f32 %v1819_v34, %v1818_v47  ;;  %v1822_v29 = vld [vmem:[#allocation22_spill] sm:$0xff]  ;;  %v1823_v19 = vld [vmem:[#allocation23_spill] sm:$0xff] }
  0x28   :  { %v245_v27 = vadd.f32 %v243_v51, %v241_v5  ;;  %v517_v4 = vmul.f32 %v1821_v22, %v1820_v36  ;;  %v337_v8 = vadd.f32 %v335_v33, %v333_v12  ;;  %v519_v46 = vmul.f32 %v1823_v19, %v1822_v29  ;;  %v1826_v12 = vld [vmem:[#allocation26_spill] sm:$0xff] }
  0x29   :  { %v700_v30 = vadd.f32 %v698_v32, %v608_v35  ;;  %v155_v23 = vadd.f32 %v153_v18, %v61_v3  ;;  %v429_v62 = vadd.f32 %v427_v11, %v425_v31  ;;  %v609_v39 = vmul.f32 %v1135_v56, %v1115_v60  ;;  %v1824_v3 = vld [vmem:[#allocation25_spill] sm:$0xff]  ;;  %v1825_v56 = vld [vmem:[#allocation7_spill] sm:$0xff] }
  0x2a   :  { %v611_v38 = vmul.f32 %v1131_v1, %v1118_v61  ;;  %v701_v9 = vmul.f32 %v1158_v41, %v1143_v43  ;;  %v521_v2 = vadd.f32 %v519_v46, %v517_v4  ;;  %v703_v5 = vmul.f32 %v1824_v3, %v1146_v7  ;;  %v1827_v1 = vld [vmem:[#allocation28_spill] sm:$0xff]  ;;  %v1829_v18 = vld [vmem:[#allocation27_spill] sm:$0xff] }
  0x2b   :  { %752 = vst [vmem:[%s1709_s4 + $0x8] sm:$0xff] %v700_v30  ;;  %v247_v22 = vadd.f32 %v245_v27, %v155_v23  ;;  %v58_v11 = vmul.f32 %v1166_v55, %v901_v14  ;;  %v60_v35 = vmul.f32 %v1826_v12, %v1825_v56  ;;  %v150_v32 = vmul.f32 %v1827_v1, %v920_v20  ;;  %v1828_v41 = vld [vmem:[#allocation8_spill] sm:$0xff]  ;;  %v1831_v1 = vld [vmem:[#allocation6_spill] sm:$0xff] }
  0x2c   :  { %v613_v51 = vadd.f32 %v611_v38, %v609_v39  ;;  %v152_v54 = vmul.f32 %v1829_v18, %v1828_v41  ;;  %v705_v31 = vadd.f32 %v703_v5, %v701_v9  ;;  %v242_v4 = vmul.f32 %v1197_v42, %v946_v28 }
  0x2d   :  { %v339_v33 = vadd.f32 %v337_v8, %v247_v22  ;;  %v244_v23 = vmul.f32 %v1193_v13, %v1189_v15  ;;  %v62_v27 = vadd.f32 %v60_v35, %v58_v11  ;;  %v334_v34 = vmul.f32 %v1215_v24, %v1202_v21  ;;  %v1363_v24 = vld [vmem:[%s1706_s1 + $0x10] ss:$8 sm:$0x3]  ;;  %v1377_v22 = vld [vmem:[%s1706_s1 + $0x11] ss:$8 sm:$0x3] }
  0x2e   :  { %v154_v55 = vadd.f32 %v152_v54, %v150_v32  ;;  %v336_v30 = vmul.f32 %v1211_v53, %v1205_v17  ;;  %v426_v8 = vmul.f32 %v1236_v37, %v1218_v48  ;;  %v428_v39 = vmul.f32 %v1225_v26, %v1221_v25  ;;  %v1358_v53 = vld [vmem:[%s1705_s0 + $0x10] ss:$8 sm:$0x3] }
  0x2f   :  { %v431_v19 = vadd.f32 %v429_v62, %v339_v33  ;;  %v246_v46 = vadd.f32 %v244_v23, %v242_v4  ;;  %v518_v13 = vmul.f32 %v1254_v50, %v1241_v40  ;;  %v520_v9 = vmul.f32 %v1248_v59, %v1244_v45  ;;  %v1372_v59 = vld [vmem:[%s1705_s0 + $0x11] ss:$8 sm:$0x3]  ;;  %v1412_v23 = vld [vmem:[%s1705_s0 + $0x13] ss:$8 sm:$0x3] }
  0x30   :  { %v156_v42 = vadd.f32 %v154_v55, %v62_v27  ;;  %v338_v38 = vadd.f32 %v336_v30, %v334_v34  ;;  %v430_v26 = vadd.f32 %v428_v39, %v426_v8  ;;  %v610_v62 = vmul.f32 %v1272_v58, %v1259_v49  ;;  %v1830_v58 = vld [vmem:[#allocation34_spill] sm:$0xff]  ;;  %v1417_v27 = vld [vmem:[%s1706_s1 + $0x13] ss:$8 sm:$0x3] }
  0x31   :  { %v523_v37 = vadd.f32 %v521_v2, %v431_v19  ;;  %v612_v50 = vmul.f32 %v1266_v57, %v1262_v52  ;;  %v522_v5 = vadd.f32 %v520_v9, %v518_v13  ;;  %v702_v2 = vmul.f32 %v1290_v16, %v1277_v44  ;;  %v1386_v57 = vld [vmem:[%s1705_s0 + $0x12] ss:$8 sm:$0x3]  ;;  %v1834_v34 = vld [vmem:[#allocation2_spill] sm:$0xff]  ;;  %v1835_v19 = vld [vmem:[#allocation3_spill] sm:$0xff] }
  0x32   :  { %v248_v3 = vadd.f32 %v246_v46, %v156_v42  ;;  %v704_v11 = vmul.f32 %v1830_v58, %v1280_v0  ;;  %v1390_v32 = vrot.slane %v1358_v53, %v1831_v1  ;;  %v1394_v18 = vrot.slane %v1363_v24, %v1831_v1  ;;  %v1399_v16 = vld [vmem:[%s1706_s1 + $0x12] ss:$8 sm:$0x3]  ;;  %v1430_v39 = vld [vmem:[%s1705_s0 + $0x14] ss:$8 sm:$0x3] }
  0x33   :  { %v615_v12 = vadd.f32 %v613_v51, %v523_v37  ;;  %v614_v35 = vadd.f32 %v612_v50, %v610_v62  ;;  %v1403_v4 = vrot.slane %v1372_v59, %v1831_v1  ;;  %v1407_v51 = vrot.slane %v1377_v22, %v1831_v1  ;;  %v1443_v62 = vld [vmem:[%s1706_s1 + $0x14] ss:$8 sm:$0x3]  ;;  %v1448_v50 = vld [vmem:[%s1705_s0 + $0x15] ss:$8 sm:$0x3] }
  0x34   :  { %v340_v54 = vadd.f32 %v338_v38, %v248_v3  ;;  %v706_v33 = vadd.f32 %v704_v11, %v702_v2  ;;  %v80_v30 = vmul.f32 %v1390_v32, %v1834_v34  ;;  %v93_v46 = vmul.f32 %v1394_v18, %v1835_v19  ;;  %v1837_v38 = vld [vmem:[#allocation4_spill] sm:$0xff]  ;;  %v1840_v3 = vld [vmem:[#allocation9_spill] sm:$0xff] }
  0x35   :  { %1832 = vst [vmem:[#allocation12_spill] sm:$0xff] %v1403_v4  ;;  %1833 = vst [vmem:[#allocation16_spill] sm:$0xff] %v1407_v51  ;;  %v707_v55 = vadd.f32 %v705_v31, %v615_v12  ;;  %v1425_v8 = vrot.slane %v1386_v57, %v1831_v1  ;;  %v172_v13 = vmul.f32 %v1403_v4, %v1837_v38  ;;  %v1838_v31 = vld [vmem:[#allocation5_spill] sm:$0xff]  ;;  %v1843_v4 = vld [vmem:[#allocation10_spill] sm:$0xff] }
  0x36   :  { %v432_v42 = vadd.f32 %v430_v26, %v340_v54  ;;  %v185_v9 = vmul.f32 %v1407_v51, %v1838_v31  ;;  %v1438_v37 = vrot.slane %v1399_v16, %v1831_v1  ;;  %v95_v26 = vsub.f32 %v80_v30, %v93_v46  ;;  %v814_v30 = vld [vmem:[%s1706_s1 + $0x15] ss:$8 sm:$0x3] }
  0x37   :  { %1836 = vst [vmem:[#allocation15_spill] sm:$0xff] %v1425_v8  ;;  %753 = vst [vmem:[%s1710_s5] sm:$0xff] %v707_v55  ;;  %v264_v2 = vmul.f32 %v1425_v8, %v1840_v3  ;;  %v1457_v58 = vrot.slane %v1412_v23, %v1831_v1  ;;  %v1461_v11 = vrot.slane %v1417_v27, %v1831_v1 }
  0x38   :  { %1839 = vst [vmem:[#allocation17_spill] sm:$0xff] %v1438_v37  ;;  %v524_v12 = vadd.f32 %v522_v5, %v432_v42  ;;  %v187_v54 = vsub.f32 %v172_v13, %v185_v9  ;;  %v277_v31 = vmul.f32 %v1438_v37, %v1843_v4  ;;  %v1467_v55 = vrot.slane %v1430_v39, %v1831_v1  ;;  %v1487_v13 = vld [vmem:[%s1705_s0 + $0x16] ss:$8 sm:$0x3] }
  0x39   :  { %1841 = vst [vmem:[#allocation20_spill] sm:$0xff] %v1457_v58  ;;  %1842 = vst [vmem:[#allocation18_spill] sm:$0xff] %v1461_v11  ;;  %v356_v46 = vmul.f32 %v1457_v58, %v1812_v6  ;;  %v369_v8 = vmul.f32 %v1461_v11, %v1814_v63  ;;  %v1478_v5 = vrot.slane %v1443_v62, %v1831_v1  ;;  %v1492_v9 = vld [vmem:[%s1706_s1 + $0x16] ss:$8 sm:$0x3] }
  0x3a   :  { %1844 = vst [vmem:[#allocation19_spill] sm:$0xff] %v1467_v55  ;;  %v1482_v42 = vrot.slane %v1448_v50, %v1831_v1  ;;  %v616_v58 = vadd.f32 %v614_v35, %v524_v12  ;;  %v189_v63 = vadd.f32 %v187_v54, %v95_v26  ;;  %v279_v11 = vsub.f32 %v264_v2, %v277_v31  ;;  %v825_v4 = vld [vmem:[%s1705_s0 + $0x17] ss:$8 sm:$0x3] }
  0x3b   :  { %v448_v6 = vmul.f32 %v1467_v55, %v1816_v10  ;;  %v826_v37 = vld [vmem:[%s1706_s1 + $0x17] ss:$8 sm:$0x3]  ;;  %v371_v3 = vsub.f32 %v356_v46, %v369_v8  ;;  %v461_v51 = vmul.f32 %v1478_v5, %v1818_v47  ;;  %v1507_v31 = vrot.slane %v814_v30, %v1831_v1 }
  0x3c   :  { %1845 = vst [vmem:[#allocation21_spill] sm:$0xff] %v1482_v42  ;;  %v540_v35 = vmul.f32 %v1482_v42, %v1820_v36  ;;  %v708_v26 = vadd.f32 %v706_v33, %v616_v58  ;;  %v281_v2 = vadd.f32 %v279_v11, %v189_v63  ;;  %v1511_v12 = vrot.slane %v1487_v13, %v1831_v1 }
  0x3d   :  { %v1515_v54 = vrot.slane %v1492_v9, %v1831_v1  ;;  %v463_v8 = vsub.f32 %v448_v6, %v461_v51  ;;  %v553_v46 = vmul.f32 %v1507_v31, %v1822_v29  ;;  %v1520_v55 = vrot.slane %v825_v4, %v1831_v1  ;;  %v1848_v51 = vld [vmem:[#allocation11_spill] sm:$0xff] }
  0x3e   :  { %1846 = vst [vmem:[#allocation24_spill] sm:$0xff] %v1511_v12  ;;  %v1523_v42 = vrot.slane %v826_v37, %v1831_v1  ;;  %754 = vst [vmem:[%s1710_s5 + $0x8] sm:$0xff] %v708_v26  ;;  %v373_v63 = vadd.f32 %v371_v3, %v281_v2  ;;  %v632_v33 = vmul.f32 %v1511_v12, %v1115_v60 }
  0x3f   :  { %1847 = vst [vmem:[#allocation23_spill] sm:$0xff] %v1520_v55  ;;  %v645_v6 = vmul.f32 %v1515_v54, %v1118_v61  ;;  %v1534_v58 = vrot.slane %v1358_v53, %v1848_v51  ;;  %v555_v11 = vsub.f32 %v540_v35, %v553_v46  ;;  %v724_v1 = vmul.f32 %v1520_v55, %v1143_v43 }
  0x40   :  { %v737_v29 = vmul.f32 %v1523_v42, %v1146_v7  ;;  %v1542_v3 = vrot.slane %v1363_v24, %v1848_v51  ;;  %v465_v26 = vadd.f32 %v463_v8, %v373_v63  ;;  %v1548_v53 = vrot.slane %v1372_v59, %v1848_v51 }
  0x41   :  { %v647_v2 = vsub.f32 %v632_v33, %v645_v6  ;;  %v81_v12 = vmul.f32 %v1534_v58, %v901_v14  ;;  %v1554_v55 = vrot.slane %v1377_v22, %v1848_v51  ;;  %v1558_v24 = vrot.slane %v1386_v57, %v1848_v51 }
  0x42   :  { %v739_v35 = vsub.f32 %v724_v1, %v737_v29  ;;  %v94_v46 = vmul.f32 %v1542_v3, %v1825_v56  ;;  %v557_v8 = vadd.f32 %v555_v11, %v465_v26  ;;  %v173_v63 = vmul.f32 %v1548_v53, %v920_v20 }
  0x43   :  { %v1564_v59 = vrot.slane %v1399_v16, %v1848_v51  ;;  %v1568_v29 = vrot.slane %v1412_v23, %v1848_v51  ;;  %v186_v22 = vmul.f32 %v1554_v55, %v1828_v41  ;;  %v265_v57 = vmul.f32 %v1558_v24, %v946_v28 }
  0x44   :  { %v96_v33 = vsub.f32 %v81_v12, %v94_v46  ;;  %v1576_v6 = vrot.slane %v1417_v27, %v1848_v51  ;;  %v649_v11 = vadd.f32 %v647_v2, %v557_v8  ;;  %v1584_v23 = vrot.slane %v1430_v39, %v1848_v51 }
  0x45   :  { %1849 = vst [vmem:[#allocation25_spill] sm:$0xff] %v1568_v29  ;;  %v278_v16 = vmul.f32 %v1564_v59, %v1189_v15  ;;  %v357_v1 = vmul.f32 %v1568_v29, %v1202_v21  ;;  %v188_v12 = vsub.f32 %v173_v63, %v186_v22  ;;  %v1590_v46 = vrot.slane %v1443_v62, %v1848_v51 }
  0x46   :  { %v370_v26 = vmul.f32 %v1576_v6, %v1205_v17  ;;  %v1594_v27 = vrot.slane %v1448_v50, %v1848_v51  ;;  %v741_v2 = vadd.f32 %v739_v35, %v649_v11  ;;  %v449_v29 = vmul.f32 %v1584_v23, %v1218_v48 }
  0x47   :  { %v280_v8 = vsub.f32 %v265_v57, %v278_v16  ;;  %v1599_v39 = vrot.slane %v814_v30, %v1848_v51  ;;  %v190_v63 = vadd.f32 %v188_v12, %v96_v33  ;;  %v462_v17 = vmul.f32 %v1590_v46, %v1221_v25 }
  0x48   :  { %v372_v22 = vsub.f32 %v357_v1, %v370_v26  ;;  %v541_v62 = vmul.f32 %v1594_v27, %v1241_v40  ;;  %827 = vst [vmem:[%s1709_s4 + $0x10] sm:$0xff] %v741_v2  ;;  %v1612_v35 = vrot.slane %v1487_v13, %v1848_v51  ;;  %v1616_v30 = vrot.slane %v1492_v9, %v1848_v51  ;;  %v1856_v2 = vld [vmem:[#allocation12_spill] sm:$0xff] }
  0x49   :  { %v554_v50 = vmul.f32 %v1599_v39, %v1244_v45  ;;  %v1619_v33 = vrot.slane %v825_v4, %v1848_v51  ;;  %v282_v57 = vadd.f32 %v280_v8, %v190_v63  ;;  %v464_v11 = vsub.f32 %v449_v29, %v462_v17  ;;  %v1855_v29 = vld [vmem:[#allocation5_spill] sm:$0xff] }
  0x4a   :  { %1850 = vst [vmem:[#allocation7_spill] sm:$0xff] %v1612_v35  ;;  %1851 = vst [vmem:[#allocation26_spill] sm:$0xff] %v1616_v30  ;;  %v1622_v16 = vrot.slane %v826_v37, %v1848_v51  ;;  %v99_v1 = vmul.f32 %v1394_v18, %v1834_v34  ;;  %v633_v13 = vmul.f32 %v1612_v35, %v1259_v49  ;;  %v1854_v51 = vld [vmem:[#allocation16_spill] sm:$0xff]  ;;  %v1857_v63 = vld [vmem:[#allocation9_spill] sm:$0xff] }
  0x4b   :  { %1852 = vst [vmem:[#allocation28_spill] sm:$0xff] %v1619_v33  ;;  %v556_v12 = vsub.f32 %v541_v62, %v554_v50  ;;  %v646_v26 = vmul.f32 %v1616_v30, %v1262_v52  ;;  %v725_v9 = vmul.f32 %v1619_v33, %v1277_v44  ;;  %v374_v4 = vadd.f32 %v372_v22, %v282_v57  ;;  %v1858_v62 = vld [vmem:[#allocation17_spill] sm:$0xff]  ;;  %v1859_v35 = vld [vmem:[#allocation10_spill] sm:$0xff]  ;;  %v1860_v52 = vld [vmem:[#allocation15_spill] sm:$0xff] }
  0x4c   :  { %1853 = vst [vmem:[#allocation8_spill] sm:$0xff] %v1622_v16  ;;  %v738_v17 = vmul.f32 %v1622_v16, %v1280_v0  ;;  %v101_v37 = vmul.f32 %v1390_v32, %v1835_v19  ;;  %v191_v18 = vmul.f32 %v1854_v51, %v1837_v38  ;;  %v193_v8 = vmul.f32 %v1856_v2, %v1855_v29  ;;  %v1861_v0 = vld [vmem:[#allocation13_spill] sm:$0xff]  ;;  %v1862_v16 = vld [vmem:[#allocation18_spill] sm:$0xff]  ;;  %v1864_v38 = vld [vmem:[#allocation20_spill] sm:$0xff] }
  0x4d   :  { %v648_v34 = vsub.f32 %v633_v13, %v646_v26  ;;  %v283_v50 = vmul.f32 %v1858_v62, %v1857_v63  ;;  %v285_v33 = vmul.f32 %v1860_v52, %v1859_v35  ;;  %v466_v22 = vadd.f32 %v464_v11, %v374_v4  ;;  %v1863_v49 = vld [vmem:[#allocation14_spill] sm:$0xff]  ;;  %v1865_v29 = vld [vmem:[#allocation19_spill] sm:$0xff]  ;;  %v1867_v11 = vld [vmem:[#allocation21_spill] sm:$0xff] }
  0x4e   :  { %v740_v57 = vsub.f32 %v725_v9, %v738_v17  ;;  %v103_v44 = vadd.f32 %v101_v37, %v99_v1  ;;  %v375_v30 = vmul.f32 %v1862_v16, %v1861_v0  ;;  %v195_v32 = vadd.f32 %v193_v8, %v191_v18  ;;  %v1866_v35 = vld [vmem:[#allocation22_spill] sm:$0xff] }
  0x4f   :  { %v287_v19 = vadd.f32 %v285_v33, %v283_v50  ;;  %v377_v13 = vmul.f32 %v1864_v38, %v1863_v49  ;;  %v467_v26 = vmul.f32 %v1478_v5, %v1816_v10  ;;  %v558_v51 = vadd.f32 %v556_v12, %v466_v22  ;;  %v1868_v49 = vld [vmem:[#allocation24_spill] sm:$0xff]  ;;  %v1872_v63 = vld [vmem:[#allocation30_spill] sm:$0xff]  ;;  %v1874_v22 = vld [vmem:[#allocation31_spill] sm:$0xff] }
  0x50   :  { %v469_v2 = vmul.f32 %v1865_v29, %v1818_v47  ;;  %v559_v52 = vmul.f32 %v1507_v31, %v1820_v36  ;;  %v561_v1 = vmul.f32 %v1867_v11, %v1866_v35  ;;  %v197_v9 = vadd.f32 %v195_v32, %v103_v44  ;;  %v1869_v36 = vld [vmem:[#allocation23_spill] sm:$0xff] }
  0x51   :  { %v379_v0 = vadd.f32 %v377_v13, %v375_v30  ;;  %v651_v33 = vmul.f32 %v1515_v54, %v1115_v60  ;;  %v653_v16 = vmul.f32 %v1868_v49, %v1118_v61  ;;  %v650_v4 = vadd.f32 %v648_v34, %v558_v51  ;;  %v1873_v62 = vld [vmem:[#allocation26_spill] sm:$0xff]  ;;  %v1878_v13 = vld [vmem:[#allocation33_spill] sm:$0xff] }
  0x52   :  { %v471_v10 = vadd.f32 %v469_v2, %v467_v26  ;;  %v563_v5 = vadd.f32 %v561_v1, %v559_v52  ;;  %v743_v47 = vmul.f32 %v1523_v42, %v1143_v43  ;;  %v289_v12 = vadd.f32 %v287_v19, %v197_v9 }
  0x53   :  { %v655_v17 = vadd.f32 %v653_v16, %v651_v33  ;;  %v745_v31 = vmul.f32 %v1869_v36, %v1146_v7  ;;  %v100_v44 = vmul.f32 %v1542_v3, %v901_v14  ;;  %v742_v30 = vadd.f32 %v740_v57, %v650_v4  ;;  %v1875_v57 = vld [vmem:[#allocation7_spill] sm:$0xff]  ;;  %v1877_v19 = vld [vmem:[#allocation8_spill] sm:$0xff] }
  0x54   :  { %v102_v60 = vmul.f32 %v1534_v58, %v1825_v56  ;;  %v192_v61 = vmul.f32 %v1554_v55, %v920_v20  ;;  %v194_v54 = vmul.f32 %v1548_v53, %v1828_v41  ;;  %v381_v37 = vadd.f32 %v379_v0, %v289_v12  ;;  %v1870_v55 = vld [vmem:[#allocation29_spill] sm:$0xff] }
  0x55   :  { %v747_v43 = vadd.f32 %v745_v31, %v743_v47  ;;  %v284_v42 = vmul.f32 %v1564_v59, %v946_v28  ;;  %v286_v7 = vmul.f32 %v1558_v24, %v1189_v15  ;;  %828 = vst [vmem:[%s1709_s4 + $0x18] sm:$0xff] %v742_v30  ;;  %v376_v20 = vmul.f32 %v1576_v6, %v1202_v21  ;;  %v1871_v58 = vld [vmem:[#allocation25_spill] sm:$0xff] }
  0x56   :  { %v104_v14 = vadd.f32 %v102_v60, %v100_v44  ;;  %v196_v56 = vadd.f32 %v194_v54, %v192_v61  ;;  %v378_v41 = vmul.f32 %v1871_v58, %v1870_v55  ;;  %v473_v3 = vadd.f32 %v471_v10, %v381_v37 }
  0x57   :  { %v288_v53 = vadd.f32 %v286_v7, %v284_v42  ;;  %v468_v28 = vmul.f32 %v1590_v46, %v1218_v48  ;;  %v470_v15 = vmul.f32 %v1584_v23, %v1221_v25  ;;  %v560_v18 = vmul.f32 %v1599_v39, %v1241_v40  ;;  %v1876_v23 = vld [vmem:[#allocation32_spill] sm:$0xff] }
  0x58   :  { %v198_v24 = vadd.f32 %v196_v56, %v104_v14  ;;  %v380_v59 = vadd.f32 %v378_v41, %v376_v20  ;;  %v562_v34 = vmul.f32 %v1594_v27, %v1244_v45  ;;  %v565_v21 = vadd.f32 %v563_v5, %v473_v3  ;;  %v1879_v40 = vld [vmem:[#allocation28_spill] sm:$0xff] }
  0x59   :  { %v472_v8 = vadd.f32 %v470_v15, %v468_v28  ;;  %v652_v50 = vmul.f32 %v1873_v62, %v1872_v63  ;;  %v654_v48 = vmul.f32 %v1875_v57, %v1874_v22  ;;  %v744_v38 = vmul.f32 %v1877_v19, %v1876_v23 }
  0x5a   :  { %v290_v6 = vadd.f32 %v288_v53, %v198_v24  ;;  %v657_v46 = vadd.f32 %v655_v17, %v565_v21  ;;  %v564_v25 = vadd.f32 %v562_v34, %v560_v18  ;;  %v746_v39 = vmul.f32 %v1879_v40, %v1878_v13 }
  0x5b   :  { %v656_v27 = vadd.f32 %v654_v48, %v652_v50 }
  0x5c   :  { %v382_v32 = vadd.f32 %v380_v59, %v290_v6  ;;  %v749_v26 = vadd.f32 %v747_v43, %v657_v46  ;;  %v748_v29 = vadd.f32 %v746_v39, %v744_v38 }
  0x5e   :  { %v474_v45 = vadd.f32 %v472_v8, %v382_v32  ;;  %829 = vst [vmem:[%s1710_s5 + $0x10] sm:$0xff] %v749_v26 }
  0x60   :  { %v566_v51 = vadd.f32 %v564_v25, %v474_v45 }
  0x62   :  { %v658_v2 = vadd.f32 %v656_v27, %v566_v51 }
  0x64   :  { %v750_v52 = vadd.f32 %v748_v29, %v658_v2 }
  0x66   :  { %830 = vst [vmem:[%s1710_s5 + $0x18] sm:$0xff] %v750_v52 }

// kernel: fourier_basic_block_3d.7
= control target key start
LH: loop header
LB: loop body
LE: loop exit
PB: predicated region body
PF: predicated region fallthrough
CT: control target
= control target key end

     0   :  { %9 = vsyncpa [#allocation3], 0  ;;  %s1360_s0 = inlined_call_operand.vmem [shape: f32[2,8,512], index: 0, kind: input, shape index: {}]   ;;  %s1361_s1 = inlined_call_operand.vmem [shape: f32[2,8,512], index: 1, kind: input, shape index: {}, may-alias: {1,4}]   ;;  %s1362_s2 = inlined_call_operand.vmem [shape: f32[8,8], index: 2, kind: input, shape index: {}]   ;;  %s1363_s3 = inlined_call_operand.vmem [shape: f32[8], index: 3, kind: input, shape index: {}]   ;;  %s1364_s4 = inlined_call_operand.vmem [shape: f32[2,8,512], index: 4, kind: output, shape index: {}, may-alias: {1,4}]  }
   0x1   :  { %10 = vsyncpa [#allocation5], 0  ;;  %s1170_s15 = smov 0   ;;  %s1172_s16 = smov 0  }
   0x2   :  { %s1174_s17 = smov 0  }
   0x3 LB: > { %s860_s18 = sadd.s32 4294967295, %s1141_s17   ;;  %s28_s19 = sadd.s32 1, %s1137_s16  ;;  %s1141_s17 = sphi %s1174_s17, %s16_s17   ;;  %s1137_s16 = sphi %s1172_s16, %s1376_s16   ;;  %s1133_s15 = sphi %s1170_s15, %s1375_s15  }
   0x4   : > { %p30_p0 = scmp.ge.s32.totalorder %s28_s19, 2  ;;  %p862_p1 = scmp.ge.s32.totalorder %s1141_s17, 1 }
   0x5   : > { %p159_p2 = scmp.lt.s32.totalorder %s1141_s17, 3  ;;  %p1195_p4 = scmp.eq.s32.totalorder %s860_s18, 0 }
   0x6   : > { %s1378_s19 = smov (%p30_p0, %s28_s19), 0  ;;  %s172_s24 = sshll.u32 %s1362_s2, 4  ;;  %s173_s24 = int_to_ptr.vmem [resolvable:$true] %s172_s24 }
   0x7   : > { %p1191_p3 = pnand %p862_p1, %p159_p2  ;;  %s183_s27 = sshll.u32 %s1363_s3, 4  ;;  %s184_s27 = int_to_ptr.vmem [resolvable:$true] %s183_s27 }
   0x8   : > { %s1369_s21 = scalar_select %p1195_p4, 1, 0 }
   0x9   : > { %s1368_s20 = scalar_select %p1191_p3, 1, 0 }
   0xa   : > { %p1028_p5 = pneg %p1191_p3  ;;  %s1081_s29 = scalar_lea.vmem %s173_s24, 128 }
   0xb   : > { %p1082_p7 = scmp.ne.s32.totalorder %s173_s24, %s1081_s29  ;;  %p1089_p11 = scmp.lt.s32.totalorder %s173_s24, %s173_s24 }
   0xc   : > { %p1209_p6 = pnand %p1195_p4, %p1028_p5  ;;  %p1090_p12 = scmp.lt.s32.totalorder %s1081_s29, %s1081_s29 }
   0xe   : > { %p1083_p8 = pneg %p1209_p6  ;;  %p1091_p13 = por %p1090_p12, %p1089_p11 }
  0x10   : > { %p1084_p9 = pnand %p1083_p8, %p1082_p7 }
  0x12   : > { %p1085_p10 = pneg %p1084_p9 }
  0x14   : > { %p1092_p0 = pnand %p1091_p13, %p1085_p10 }
  0x16   : > { %1095 = shalt.err (!%p1092_p0)
}
  0x17   : > { %s1143_s30 = smov [#allocation2]   ;;  %s1096_s5 = scalar_lea.vmem %s184_s27, 16 }
  0x18   : > { %1031 = dma.vmem_to_smem (!%p1209_p6), %s173_s24, 128, %s1143_s30, [#allocation3]  }
  0x19   : > { %p1097_p1 = scmp.ne.s32.totalorder %s184_s27, %s1096_s5  ;;  %p1104_p4 = scmp.lt.s32.totalorder %s184_s27, %s184_s27 }
  0x1a   : > { %p1105_p3 = scmp.lt.s32.totalorder %s1096_s5, %s1096_s5 }
  0x1b   : > { %p1099_p2 = pnand %p1097_p1, %p1083_p8 }
  0x1c   : > { %p1106_p7 = por %p1105_p3, %p1104_p4 }
  0x1d   : > { %p1100_p5 = pneg %p1099_p2 }
  0x1f   : > { %p1107_p9 = pnand %p1106_p7, %p1100_p5 }
  0x21   : > { %1110 = shalt.err (!%p1107_p9)
}
  0x22   : > { %s1144_s6 = smov [#allocation4]   ;;  %p1371_p10 = scmp.ne.s32.totalorder %s1368_s20, 0 }
  0x23   : > { %1034 = dma.vmem_to_smem (!%p1209_p6), %s184_s27, 16, %s1144_s6, [#allocation5]  }
  0x24   : > { %222 = sbr.rel (%p1371_p10) target bundleno = 393 (0x189), region = 36  ;;  %p1372_p11 = scmp.ne.s32.totalorder (!%p1371_p10), %s1369_s21, 0 }
  0x2b   : > { %1124 = dma.done.wait (%p1372_p11), [#allocation3], 128  }
  0x2c   : > { %1126 = vsyncadd (%p1372_p11), [#allocation3], 4294967168 }
  0x2d   : > { %1128 = dma.done.wait (%p1372_p11), [#allocation5], 16  }
  0x2e   : > { %1130 = vsyncadd (%p1372_p11), [#allocation5], 4294967280 }
  0x2f   : > { %232 = sfence }
  0x30   : > { %p271_p3 = scmp.lt.s32.totalorder %s1133_s15, 1  ;;  %s301_s7 = sld [smem:[#allocation4]]  ;;  %v356_v36 = vlaneseq }
  0x31   : > { %s304_s8 = sld [smem:[#allocation2]]  ;;  %s875_s9 = sld [smem:[#allocation2 + $0x1]] }
  0x32   : > { %s1380_s15 = smov (!%p271_p3, %s1133_s15), 1  ;;  %s877_s10 = sld [smem:[#allocation2 + $0x2]]  ;;  %vm1260_vm0 = vcmp.lt.s32.totalorder %v356_v36, 512 }
  0x33   : > { %s879_s11 = sld [smem:[#allocation2 + $0x3]]  ;;  %s1231_s12 = sshll.u32 %s1380_s15, 5 }
  0x34   : > { %s881_s13 = sld [smem:[#allocation2 + $0x4]]  ;;  %s1237_s20 = scalar_lea.vmem %s1360_s0, %s1231_s12 }
  0x35   : > { %s1243_s23 = scalar_lea.vmem %s1361_s1, %s1231_s12  ;;  %v305_v2 = vld [vmem:[%s1237_s20] ss:$8 sm:$0xf]  ;;  %v876_v5 = vld [vmem:[%s1237_s20 + $0x1] ss:$8 sm:$0xf]  ;;  %s1258_s29 = scalar_lea.vmem %s1364_s4, %s1231_s12 }
  0x36   : > { %v300_v0 = vld [vmem:[%s1243_s23] ss:$8 sm:$0xf]  ;;  %v302_v1 = vstv %s301_s7  ;;  %v878_v7 = vld [vmem:[%s1237_s20 + $0x2] ss:$8 sm:$0xf] }
  0x37   : > { %v303_v3 = vadd.f32 %v302_v1, %v300_v0  ;;  %v306_v4 = vstv %s304_s8  ;;  %v312_v6 = vstv %s875_s9  ;;  %v880_v11 = vld [vmem:[%s1237_s20 + $0x3] ss:$8 sm:$0xf]  ;;  %s883_s15 = sld [smem:[#allocation2 + $0x5]]  ;;  %s885_s24 = sld [smem:[#allocation2 + $0x6]] }
  0x38   : > { %v307_v8 = vmul.f32 %v306_v4, %v305_v2  ;;  %v313_v9 = vmul.f32 %v876_v5, %v312_v6  ;;  %v318_v10 = vstv %s877_s10  ;;  %v882_v15 = vld [vmem:[%s1237_s20 + $0x4] ss:$8 sm:$0xf]  ;;  %s887_s25 = sld [smem:[#allocation2 + $0x7]]  ;;  %s891_s26 = sld [smem:[#allocation2 + $0x80]] }
  0x39   : > { %v324_v12 = vstv %s879_s11  ;;  %v319_v14 = vmul.f32 %v878_v7, %v318_v10  ;;  %v884_v19 = vld [vmem:[%s1237_s20 + $0x5] ss:$8 sm:$0xf]  ;;  %v886_v23 = vld [vmem:[%s1237_s20 + $0x6] ss:$8 sm:$0xf] }
  0x3a   : > { %v308_v13 = vadd.f32 %v307_v8, %v303_v3  ;;  %v330_v16 = vstv %s881_s13  ;;  %v325_v18 = vmul.f32 %v880_v11, %v324_v12  ;;  %v888_v27 = vld [vmem:[%s1237_s20 + $0x7] ss:$8 sm:$0xf]  ;;  %s890_s30 = sld [smem:[#allocation4 + $0x1]]  ;;  %s894_s6 = sld [smem:[#allocation2 + $0x82]] }
  0x3b   : > { %v331_v21 = vmul.f32 %v882_v15, %v330_v16  ;;  %s892_s5 = sld [smem:[#allocation2 + $0x81]]  ;;  %s896_s7 = sld [smem:[#allocation2 + $0x83]]  ;;  %v368_v42 = vld [vmem:[%s1237_s20] ss:$8 sm:$0xf] }
  0x3c   : > { %v314_v17 = vadd.f32 %v313_v9, %v308_v13  ;;  %s898_s8 = sld [smem:[#allocation2 + $0x84]]  ;;  %v893_v45 = vld [vmem:[%s1237_s20 + $0x1] ss:$8 sm:$0xf]  ;;  %s900_s9 = sld [smem:[#allocation2 + $0x85]] }
  0x3d   : > { %v336_v22 = vstv %s883_s15  ;;  %v342_v26 = vstv %s885_s24  ;;  %v895_v48 = vld [vmem:[%s1237_s20 + $0x2] ss:$8 sm:$0xf]  ;;  %s902_s10 = sld [smem:[#allocation2 + $0x86]]  ;;  %s904_s11 = sld [smem:[#allocation2 + $0x87]] }
  0x3e   : > { %v320_v20 = vadd.f32 %v319_v14, %v314_v17  ;;  %v337_v25 = vmul.f32 %v884_v19, %v336_v22  ;;  %v348_v28 = vstv %s887_s25  ;;  %v343_v30 = vmul.f32 %v886_v23, %v342_v26  ;;  %v897_v53 = vld [vmem:[%s1237_s20 + $0x3] ss:$8 sm:$0xf]  ;;  %v899_v57 = vld [vmem:[%s1237_s20 + $0x4] ss:$8 sm:$0xf] }
  0x3f   : > { %v349_v32 = vmul.f32 %v888_v27, %v348_v28  ;;  %v369_v43 = vstv %s891_s26  ;;  %v901_v61 = vld [vmem:[%s1237_s20 + $0x5] ss:$8 sm:$0xf]  ;;  %v903_v1 = vld [vmem:[%s1237_s20 + $0x6] ss:$8 sm:$0xf] }
  0x40   : > { %v326_v24 = vadd.f32 %v325_v18, %v320_v20  ;;  %v365_v44 = vstv %s890_s30  ;;  %v370_v47 = vmul.f32 %v369_v43, %v368_v42  ;;  %v379_v50 = vstv %s894_s6  ;;  %v905_v5 = vld [vmem:[%s1237_s20 + $0x7] ss:$8 sm:$0xf]  ;;  %s909_s12 = sld [smem:[#allocation2 + $0x100]]  ;;  %s908_s13 = sld [smem:[#allocation4 + $0x2]] }
  0x41   : > { %v374_v46 = vstv %s892_s5  ;;  %v384_v54 = vstv %s896_s7  ;;  %v380_v56 = vmul.f32 %v895_v48, %v379_v50  ;;  %s910_s14 = sld [smem:[#allocation2 + $0x101]]  ;;  %s912_s18 = sld [smem:[#allocation2 + $0x102]]  ;;  %v421_v18 = vld [vmem:[%s1237_s20] ss:$8 sm:$0xf] }
  0x42   : > { %v332_v29 = vadd.f32 %v331_v21, %v326_v24  ;;  %v375_v52 = vmul.f32 %v893_v45, %v374_v46  ;;  %v389_v58 = vstv %s898_s8  ;;  %v385_v60 = vmul.f32 %v897_v53, %v384_v54  ;;  %s914_s21 = sld [smem:[#allocation2 + $0x103]]  ;;  %s916_s22 = sld [smem:[#allocation2 + $0x104]]  ;;  %v911_v21 = vld [vmem:[%s1237_s20 + $0x1] ss:$8 sm:$0xf] }
  0x43   : > { %v394_v62 = vstv %s900_s9  ;;  %v390_v0 = vmul.f32 %v899_v57, %v389_v58  ;;  %v399_v2 = vstv %s902_s10  ;;  %v404_v6 = vstv %s904_s11  ;;  %s918_s15 = sld [smem:[#allocation2 + $0x105]]  ;;  %v913_v24 = vld [vmem:[%s1237_s20 + $0x2] ss:$8 sm:$0xf]  ;;  %s920_s24 = sld [smem:[#allocation2 + $0x106]] }
  0x44   : > { %v338_v31 = vadd.f32 %v337_v25, %v332_v29  ;;  %v395_v4 = vmul.f32 %v901_v61, %v394_v62  ;;  %v400_v8 = vmul.f32 %v903_v1, %v399_v2  ;;  %v405_v10 = vmul.f32 %v905_v5, %v404_v6  ;;  %v915_v29 = vld [vmem:[%s1237_s20 + $0x3] ss:$8 sm:$0xf]  ;;  %s922_s25 = sld [smem:[#allocation2 + $0x107]]  ;;  %s927_s26 = sld [smem:[#allocation2 + $0x180]] }
  0x45   : > { %v921_v42 = vld [vmem:[%s1237_s20 + $0x6] ss:$8 sm:$0xf]  ;;  %v923_v46 = vld [vmem:[%s1237_s20 + $0x7] ss:$8 sm:$0xf] }
  0x46   : > { %v344_v33 = vadd.f32 %v343_v30, %v338_v31  ;;  %v422_v19 = vstv %s909_s12  ;;  %v418_v20 = vstv %s908_s13  ;;  %s926_s27 = sld [smem:[#allocation4 + $0x3]]  ;;  %s928_s28 = sld [smem:[#allocation2 + $0x181]]  ;;  %v929_v62 = vld [vmem:[%s1237_s20 + $0x1] ss:$8 sm:$0xf] }
  0x47   : > { %v427_v22 = vstv %s910_s14  ;;  %v423_v23 = vmul.f32 %v422_v19, %v421_v18  ;;  %v432_v26 = vstv %s912_s18  ;;  %s930_s30 = sld [smem:[#allocation2 + $0x182]]  ;;  %s932_s5 = sld [smem:[#allocation2 + $0x183]]  ;;  %v931_v1 = vld [vmem:[%s1237_s20 + $0x2] ss:$8 sm:$0xf] }
  0x48   : > { %v350_v34 = vadd.f32 %v349_v32, %v344_v33  ;;  %v428_v28 = vmul.f32 %v911_v21, %v427_v22  ;;  %v437_v30 = vstv %s914_s21  ;;  %v433_v32 = vmul.f32 %v913_v24, %v432_v26  ;;  %v917_v33 = vld [vmem:[%s1237_s20 + $0x4] ss:$8 sm:$0xf]  ;;  %s934_s6 = sld [smem:[#allocation2 + $0x184]]  ;;  %s936_s7 = sld [smem:[#allocation2 + $0x185]] }
  0x49   : > { %v438_v36 = vmul.f32 %v915_v29, %v437_v30  ;;  %v452_v43 = vstv %s920_s24  ;;  %s938_s8 = sld [smem:[#allocation2 + $0x186]]  ;;  %v933_v6 = vld [vmem:[%s1237_s20 + $0x3] ss:$8 sm:$0xf]  ;;  %s940_s9 = sld [smem:[#allocation2 + $0x187]] }
  0x4a   : > { %v352_v35 = vmul.f32 0.70710677, %v350_v34  ;;  %v351_v37 = vmul.f32 0.5, %v350_v34  ;;  %v442_v34 = vstv %s916_s22  ;;  %v939_v18 = vld [vmem:[%s1237_s20 + $0x6] ss:$8 sm:$0xf] }
  0x4b   : > { %v941_v22 = vld [vmem:[%s1237_s20 + $0x7] ss:$8 sm:$0xf]  ;;  %s945_s10 = sld [smem:[#allocation2 + $0x200]]  ;;  %s944_s11 = sld [smem:[#allocation4 + $0x4]] }
  0x4c   : > { %1065 = verf.f32 %v352_v35  ;;  %v471_v61 = vstv %s926_s27  ;;  %s946_s12 = sld [smem:[#allocation2 + $0x201]]  ;;  %s948_s13 = sld [smem:[#allocation2 + $0x202]] }
  0x4d   : > { %s950_s14 = sld [smem:[#allocation2 + $0x203]]  ;;  %s952_s18 = sld [smem:[#allocation2 + $0x204]] }
  0x4e   : > { %s954_s21 = sld [smem:[#allocation2 + $0x205]]  ;;  %s956_s22 = sld [smem:[#allocation2 + $0x206]] }
  0x4f   : > { %v505_v19 = vstv %s938_s8  ;;  %s963_s24 = sld [smem:[#allocation2 + $0x280]]  ;;  %s966_s27 = sld [smem:[#allocation2 + $0x282]] }
  0x50   : > { %s981_s8 = sld [smem:[#allocation2 + $0x300]] }
  0x56   : > { %v1066_v38 = vpop.eup %1065 }
  0x57   : > { %v354_v39 = vadd.f32 1.0, %v1066_v38  ;;  %v447_v38 = vstv %s918_s15  ;;  %s958_s15 = sld [smem:[#allocation2 + $0x207]] }
  0x59   : > { %v355_v41 = vmul.f32 %v354_v39, %v351_v37  ;;  %v919_v37 = vld [vmem:[%s1237_s20 + $0x5] ss:$8 sm:$0xf] }
  0x5a   : > { %v448_v45 = vmul.f32 %v919_v37, %v447_v38  ;;  %v524_v37 = vstv %s944_s11  ;;  %v947_v38 = vld [vmem:[%s1237_s20 + $0x1] ss:$8 sm:$0xf]  ;;  %s984_s11 = sld [smem:[#allocation2 + $0x302]] }
  0x5b   : > { %360 = vst.msk [vmem:[%s1258_s29] ss:$8 sm:$0xf] %vm1260_vm0, %v355_v41  ;;  %v443_v41 = vmul.f32 %v917_v33, %v442_v34 }
  0x62   : > { %v889_v49 = vld [vmem:[%s1243_s23 + $0x1] ss:$8 sm:$0xf] }
  0x63   : > { %v366_v51 = vadd.f32 %v889_v49, %v365_v44  ;;  %v453_v49 = vmul.f32 %v921_v42, %v452_v43  ;;  %v949_v42 = vld [vmem:[%s1237_s20 + $0x2] ss:$8 sm:$0xf] }
  0x65   : > { %v371_v55 = vadd.f32 %v370_v47, %v366_v51  ;;  %v457_v47 = vstv %s922_s25  ;;  %s962_s25 = sld [smem:[#allocation4 + $0x5]] }
  0x66   : > { %v458_v51 = vmul.f32 %v923_v46, %v457_v47  ;;  %v951_v47 = vld [vmem:[%s1237_s20 + $0x3] ss:$8 sm:$0xf] }
  0x67   : > { %v376_v59 = vadd.f32 %v375_v52, %v371_v55 }
  0x69   : > { %v381_v63 = vadd.f32 %v380_v56, %v376_v59  ;;  %v474_v59 = vld [vmem:[%s1237_s20] ss:$8 sm:$0xf] }
  0x6b   : > { %v386_v3 = vadd.f32 %v385_v60, %v381_v63  ;;  %v475_v60 = vstv %s927_s26  ;;  %v480_v63 = vstv %s928_s28  ;;  %s964_s26 = sld [smem:[#allocation2 + $0x281]]  ;;  %s968_s28 = sld [smem:[#allocation2 + $0x283]] }
  0x6c   : > { %v481_v5 = vmul.f32 %v929_v62, %v480_v63  ;;  %v959_v63 = vld [vmem:[%s1237_s20 + $0x7] ss:$8 sm:$0xf] }
  0x6d   : > { %v391_v7 = vadd.f32 %v390_v0, %v386_v3  ;;  %v476_v0 = vmul.f32 %v475_v60, %v474_v59  ;;  %v485_v3 = vstv %s930_s30  ;;  %v957_v59 = vld [vmem:[%s1237_s20 + $0x6] ss:$8 sm:$0xf]  ;;  %v558_v60 = vstv %s956_s22  ;;  %s970_s30 = sld [smem:[#allocation2 + $0x284]]  ;;  %s999_s22 = sld [smem:[#allocation2 + $0x380]] }
  0x6f   : > { %v396_v9 = vadd.f32 %v395_v4, %v391_v7  ;;  %v490_v7 = vstv %s932_s5  ;;  %s972_s5 = sld [smem:[#allocation2 + $0x285]] }
  0x71   : > { %v401_v11 = vadd.f32 %v400_v8, %v396_v9  ;;  %v486_v9 = vmul.f32 %v931_v1, %v485_v3 }
  0x73   : > { %v406_v12 = vadd.f32 %v405_v10, %v401_v11  ;;  %v935_v10 = vld [vmem:[%s1237_s20 + $0x4] ss:$8 sm:$0xf]  ;;  %v495_v11 = vstv %s934_s6  ;;  %s974_s6 = sld [smem:[#allocation2 + $0x286]] }
  0x75   : > { %v408_v13 = vmul.f32 0.70710677, %v406_v12  ;;  %v407_v15 = vmul.f32 0.5, %v406_v12 }
  0x77   : > { %1067 = verf.f32 %v408_v13  ;;  %v491_v13 = vmul.f32 %v933_v6, %v490_v7 }
  0x81   : > { %v1068_v14 = vpop.eup %1067 }
  0x82   : > { %v410_v16 = vadd.f32 1.0, %v1068_v14  ;;  %v937_v14 = vld [vmem:[%s1237_s20 + $0x5] ss:$8 sm:$0xf] }
  0x84   : > { %v411_v17 = vmul.f32 %v410_v16, %v407_v15  ;;  %v500_v15 = vstv %s936_s7  ;;  %s976_s7 = sld [smem:[#allocation2 + $0x287]] }
  0x85   : > { %v501_v21 = vmul.f32 %v937_v14, %v500_v15  ;;  %v577_v14 = vstv %s962_s25  ;;  %v965_v15 = vld [vmem:[%s1237_s20 + $0x1] ss:$8 sm:$0xf]  ;;  %s1002_s25 = sld [smem:[#allocation2 + $0x382]] }
  0x86   : > { %906 = vst.msk [vmem:[%s1258_s29 + $0x1] ss:$8 sm:$0xf] %vm1260_vm0, %v411_v17  ;;  %v496_v17 = vmul.f32 %v935_v10, %v495_v11 }
  0x8d   : > { %v907_v25 = vld [vmem:[%s1243_s23 + $0x2] ss:$8 sm:$0xf] }
  0x8e   : > { %v419_v27 = vadd.f32 %v907_v25, %v418_v20  ;;  %v506_v25 = vmul.f32 %v939_v18, %v505_v19  ;;  %v967_v18 = vld [vmem:[%s1237_s20 + $0x2] ss:$8 sm:$0xf] }
  0x90   : > { %v424_v31 = vadd.f32 %v423_v23, %v419_v27  ;;  %v510_v23 = vstv %s940_s9  ;;  %s980_s9 = sld [smem:[#allocation4 + $0x6]] }
  0x91   : > { %v511_v27 = vmul.f32 %v941_v22, %v510_v23  ;;  %v969_v23 = vld [vmem:[%s1237_s20 + $0x3] ss:$8 sm:$0xf] }
  0x92   : > { %v429_v35 = vadd.f32 %v428_v28, %v424_v31 }
  0x94   : > { %v434_v39 = vadd.f32 %v433_v32, %v429_v35  ;;  %v527_v35 = vld [vmem:[%s1237_s20] ss:$8 sm:$0xf] }
  0x96   : > { %v439_v44 = vadd.f32 %v438_v36, %v434_v39  ;;  %v528_v36 = vstv %s945_s10  ;;  %v533_v39 = vstv %s946_s12  ;;  %s982_s10 = sld [smem:[#allocation2 + $0x301]]  ;;  %s986_s12 = sld [smem:[#allocation2 + $0x303]] }
  0x97   : > { %v534_v46 = vmul.f32 %v947_v38, %v533_v39  ;;  %v977_v39 = vld [vmem:[%s1237_s20 + $0x7] ss:$8 sm:$0xf] }
  0x98   : > { %v444_v48 = vadd.f32 %v443_v41, %v439_v44  ;;  %v529_v41 = vmul.f32 %v528_v36, %v527_v35  ;;  %v538_v44 = vstv %s948_s13  ;;  %v975_v35 = vld [vmem:[%s1237_s20 + $0x6] ss:$8 sm:$0xf]  ;;  %v611_v36 = vstv %s974_s6  ;;  %s988_s13 = sld [smem:[#allocation2 + $0x304]] }
  0x9a   : > { %v449_v50 = vadd.f32 %v448_v45, %v444_v48  ;;  %v543_v48 = vstv %s950_s14  ;;  %s990_s14 = sld [smem:[#allocation2 + $0x305]] }
  0x9c   : > { %v454_v52 = vadd.f32 %v453_v49, %v449_v50  ;;  %v539_v50 = vmul.f32 %v949_v42, %v538_v44 }
  0x9e   : > { %v459_v53 = vadd.f32 %v458_v51, %v454_v52  ;;  %v953_v51 = vld [vmem:[%s1237_s20 + $0x4] ss:$8 sm:$0xf]  ;;  %v548_v52 = vstv %s952_s18  ;;  %s992_s18 = sld [smem:[#allocation2 + $0x306]] }
  0xa0   : > { %v461_v54 = vmul.f32 0.70710677, %v459_v53  ;;  %v460_v56 = vmul.f32 0.5, %v459_v53 }
  0xa2   : > { %1069 = verf.f32 %v461_v54  ;;  %v544_v54 = vmul.f32 %v951_v47, %v543_v48 }
  0xac   : > { %v1070_v55 = vpop.eup %1069 }
  0xad   : > { %v463_v57 = vadd.f32 1.0, %v1070_v55  ;;  %v955_v55 = vld [vmem:[%s1237_s20 + $0x5] ss:$8 sm:$0xf] }
  0xaf   : > { %v464_v58 = vmul.f32 %v463_v57, %v460_v56  ;;  %v553_v56 = vstv %s954_s21  ;;  %s994_s21 = sld [smem:[#allocation2 + $0x307]] }
  0xb0   : > { %v554_v62 = vmul.f32 %v955_v55, %v553_v56  ;;  %v630_v55 = vstv %s980_s9  ;;  %v983_v56 = vld [vmem:[%s1237_s20 + $0x1] ss:$8 sm:$0xf] }
  0xb1   : > { %924 = vst.msk [vmem:[%s1258_s29 + $0x2] ss:$8 sm:$0xf] %vm1260_vm0, %v464_v58  ;;  %v549_v58 = vmul.f32 %v953_v51, %v548_v52 }
  0xb8   : > { %v925_v2 = vld [vmem:[%s1243_s23 + $0x3] ss:$8 sm:$0xf] }
  0xb9   : > { %v472_v4 = vadd.f32 %v925_v2, %v471_v61  ;;  %v559_v2 = vmul.f32 %v957_v59, %v558_v60  ;;  %v985_v59 = vld [vmem:[%s1237_s20 + $0x2] ss:$8 sm:$0xf] }
  0xbb   : > { %v477_v8 = vadd.f32 %v476_v0, %v472_v4  ;;  %v563_v0 = vstv %s958_s15  ;;  %s998_s15 = sld [smem:[#allocation4 + $0x7]] }
  0xbc   : > { %v564_v4 = vmul.f32 %v959_v63, %v563_v0  ;;  %v987_v0 = vld [vmem:[%s1237_s20 + $0x3] ss:$8 sm:$0xf] }
  0xbd   : > { %v482_v12 = vadd.f32 %v481_v5, %v477_v8 }
  0xbf   : > { %v487_v16 = vadd.f32 %v486_v9, %v482_v12  ;;  %v580_v12 = vld [vmem:[%s1237_s20] ss:$8 sm:$0xf] }
  0xc1   : > { %v492_v20 = vadd.f32 %v491_v13, %v487_v16  ;;  %v581_v13 = vstv %s963_s24  ;;  %v586_v16 = vstv %s964_s26  ;;  %s1000_s24 = sld [smem:[#allocation2 + $0x381]]  ;;  %s1004_s26 = sld [smem:[#allocation2 + $0x383]] }
  0xc2   : > { %v587_v22 = vmul.f32 %v965_v15, %v586_v16  ;;  %v995_v16 = vld [vmem:[%s1237_s20 + $0x7] ss:$8 sm:$0xf] }
  0xc3   : > { %v497_v24 = vadd.f32 %v496_v17, %v492_v20  ;;  %v582_v17 = vmul.f32 %v581_v13, %v580_v12  ;;  %v591_v20 = vstv %s966_s27  ;;  %v993_v12 = vld [vmem:[%s1237_s20 + $0x6] ss:$8 sm:$0xf]  ;;  %v664_v13 = vstv %s992_s18  ;;  %s1006_s27 = sld [smem:[#allocation2 + $0x384]] }
  0xc5   : > { %v502_v26 = vadd.f32 %v501_v21, %v497_v24  ;;  %v596_v24 = vstv %s968_s28  ;;  %s1008_s28 = sld [smem:[#allocation2 + $0x385]] }
  0xc7   : > { %v507_v28 = vadd.f32 %v506_v25, %v502_v26  ;;  %v592_v26 = vmul.f32 %v967_v18, %v591_v20 }
  0xc9   : > { %v512_v29 = vadd.f32 %v511_v27, %v507_v28  ;;  %v971_v27 = vld [vmem:[%s1237_s20 + $0x4] ss:$8 sm:$0xf]  ;;  %v601_v28 = vstv %s970_s30  ;;  %s1010_s30 = sld [smem:[#allocation2 + $0x386]] }
  0xcb   : > { %v514_v30 = vmul.f32 0.70710677, %v512_v29  ;;  %v513_v32 = vmul.f32 0.5, %v512_v29 }
  0xcd   : > { %1071 = verf.f32 %v514_v30  ;;  %v597_v30 = vmul.f32 %v969_v23, %v596_v24 }
  0xd7   : > { %v1072_v31 = vpop.eup %1071 }
  0xd8   : > { %v516_v33 = vadd.f32 1.0, %v1072_v31  ;;  %v973_v31 = vld [vmem:[%s1237_s20 + $0x5] ss:$8 sm:$0xf] }
  0xda   : > { %v517_v34 = vmul.f32 %v516_v33, %v513_v32  ;;  %v606_v32 = vstv %s972_s5  ;;  %s1012_s5 = sld [smem:[#allocation2 + $0x387]] }
  0xdb   : > { %v607_v38 = vmul.f32 %v973_v31, %v606_v32  ;;  %v683_v31 = vstv %s998_s15  ;;  %v1001_v32 = vld [vmem:[%s1237_s20 + $0x1] ss:$8 sm:$0xf] }
  0xdc   : > { %942 = vst.msk [vmem:[%s1258_s29 + $0x3] ss:$8 sm:$0xf] %vm1260_vm0, %v517_v34  ;;  %v602_v34 = vmul.f32 %v971_v27, %v601_v28 }
  0xe3   : > { %v943_v43 = vld [vmem:[%s1243_s23 + $0x4] ss:$8 sm:$0xf] }
  0xe4   : > { %v525_v45 = vadd.f32 %v943_v43, %v524_v37  ;;  %v612_v43 = vmul.f32 %v975_v35, %v611_v36  ;;  %v1003_v35 = vld [vmem:[%s1237_s20 + $0x2] ss:$8 sm:$0xf] }
  0xe6   : > { %v530_v49 = vadd.f32 %v529_v41, %v525_v45  ;;  %v616_v41 = vstv %s976_s7 }
  0xe7   : > { %v617_v45 = vmul.f32 %v977_v39, %v616_v41  ;;  %v1005_v41 = vld [vmem:[%s1237_s20 + $0x3] ss:$8 sm:$0xf] }
  0xe8   : > { %v535_v53 = vadd.f32 %v534_v46, %v530_v49 }
  0xea   : > { %v540_v57 = vadd.f32 %v539_v50, %v535_v53  ;;  %v633_v53 = vld [vmem:[%s1237_s20] ss:$8 sm:$0xf] }
  0xec   : > { %v545_v61 = vadd.f32 %v544_v54, %v540_v57  ;;  %v634_v54 = vstv %s981_s8  ;;  %v639_v57 = vstv %s982_s10 }
  0xed   : > { %v640_v63 = vmul.f32 %v983_v56, %v639_v57  ;;  %v1013_v57 = vld [vmem:[%s1237_s20 + $0x7] ss:$8 sm:$0xf] }
  0xee   : > { %v550_v1 = vadd.f32 %v549_v58, %v545_v61  ;;  %v635_v58 = vmul.f32 %v634_v54, %v633_v53  ;;  %v644_v61 = vstv %s984_s11  ;;  %v1011_v53 = vld [vmem:[%s1237_s20 + $0x6] ss:$8 sm:$0xf]  ;;  %v717_v54 = vstv %s1010_s30 }
  0xf0   : > { %v555_v3 = vadd.f32 %v554_v62, %v550_v1  ;;  %v649_v1 = vstv %s986_s12 }
  0xf2   : > { %v560_v5 = vadd.f32 %v559_v2, %v555_v3  ;;  %v645_v3 = vmul.f32 %v985_v59, %v644_v61 }
  0xf4   : > { %v565_v6 = vadd.f32 %v564_v4, %v560_v5  ;;  %v989_v4 = vld [vmem:[%s1237_s20 + $0x4] ss:$8 sm:$0xf]  ;;  %v654_v5 = vstv %s988_s13 }
  0xf6   : > { %v567_v7 = vmul.f32 0.70710677, %v565_v6  ;;  %v566_v9 = vmul.f32 0.5, %v565_v6 }
  0xf8   : > { %1073 = verf.f32 %v567_v7  ;;  %v650_v7 = vmul.f32 %v987_v0, %v649_v1 }
 0x102   : > { %v1074_v8 = vpop.eup %1073 }
 0x103   : > { %v569_v10 = vadd.f32 1.0, %v1074_v8  ;;  %v991_v8 = vld [vmem:[%s1237_s20 + $0x5] ss:$8 sm:$0xf] }
 0x105   : > { %v570_v11 = vmul.f32 %v569_v10, %v566_v9  ;;  %v659_v9 = vstv %s990_s14 }
 0x106   : > { %v660_v15 = vmul.f32 %v991_v8, %v659_v9 }
 0x107   : > { %960 = vst.msk [vmem:[%s1258_s29 + $0x4] ss:$8 sm:$0xf] %vm1260_vm0, %v570_v11  ;;  %v655_v11 = vmul.f32 %v989_v4, %v654_v5 }
 0x10e   : > { %v961_v19 = vld [vmem:[%s1243_s23 + $0x5] ss:$8 sm:$0xf] }
 0x10f   : > { %v578_v21 = vadd.f32 %v961_v19, %v577_v14  ;;  %v665_v19 = vmul.f32 %v993_v12, %v664_v13 }
 0x111   : > { %v583_v25 = vadd.f32 %v582_v17, %v578_v21  ;;  %v669_v17 = vstv %s994_s21 }
 0x112   : > { %v670_v21 = vmul.f32 %v995_v16, %v669_v17 }
 0x113   : > { %v588_v29 = vadd.f32 %v587_v22, %v583_v25 }
 0x115   : > { %v593_v33 = vadd.f32 %v592_v26, %v588_v29  ;;  %v686_v29 = vld [vmem:[%s1237_s20] ss:$8 sm:$0xf] }
 0x117   : > { %v598_v37 = vadd.f32 %v597_v30, %v593_v33  ;;  %v687_v30 = vstv %s999_s22  ;;  %v692_v33 = vstv %s1000_s24 }
 0x118   : > { %v693_v39 = vmul.f32 %v1001_v32, %v692_v33 }
 0x119   : > { %v603_v42 = vadd.f32 %v602_v34, %v598_v37  ;;  %v688_v34 = vmul.f32 %v687_v30, %v686_v29  ;;  %v697_v37 = vstv %s1002_s25 }
 0x11b   : > { %v608_v44 = vadd.f32 %v607_v38, %v603_v42  ;;  %v702_v42 = vstv %s1004_s26 }
 0x11d   : > { %v613_v46 = vadd.f32 %v612_v43, %v608_v44  ;;  %v698_v44 = vmul.f32 %v1003_v35, %v697_v37 }
 0x11f   : > { %v618_v47 = vadd.f32 %v617_v45, %v613_v46  ;;  %v1007_v45 = vld [vmem:[%s1237_s20 + $0x4] ss:$8 sm:$0xf]  ;;  %v707_v46 = vstv %s1006_s27 }
 0x121   : > { %v620_v48 = vmul.f32 0.70710677, %v618_v47  ;;  %v619_v50 = vmul.f32 0.5, %v618_v47 }
 0x123   : > { %1075 = verf.f32 %v620_v48  ;;  %v703_v48 = vmul.f32 %v1005_v41, %v702_v42 }
 0x12d   : > { %v1076_v49 = vpop.eup %1075 }
 0x12e   : > { %v622_v51 = vadd.f32 1.0, %v1076_v49  ;;  %v1009_v49 = vld [vmem:[%s1237_s20 + $0x5] ss:$8 sm:$0xf] }
 0x130   : > { %v623_v52 = vmul.f32 %v622_v51, %v619_v50  ;;  %v712_v50 = vstv %s1008_s28 }
 0x131   : > { %v713_v56 = vmul.f32 %v1009_v49, %v712_v50 }
 0x132   : > { %978 = vst.msk [vmem:[%s1258_s29 + $0x5] ss:$8 sm:$0xf] %vm1260_vm0, %v623_v52  ;;  %v708_v52 = vmul.f32 %v1007_v45, %v707_v46 }
 0x139   : > { %v979_v60 = vld [vmem:[%s1243_s23 + $0x6] ss:$8 sm:$0xf] }
 0x13a   : > { %v631_v62 = vadd.f32 %v979_v60, %v630_v55  ;;  %v718_v60 = vmul.f32 %v1011_v53, %v717_v54 }
 0x13c   : > { %v636_v2 = vadd.f32 %v635_v58, %v631_v62  ;;  %v722_v58 = vstv %s1012_s5 }
 0x13d   : > { %v723_v62 = vmul.f32 %v1013_v57, %v722_v58 }
 0x13e   : > { %v641_v6 = vadd.f32 %v640_v63, %v636_v2 }
 0x140   : > { %v646_v10 = vadd.f32 %v645_v3, %v641_v6 }
 0x142   : > { %v651_v14 = vadd.f32 %v650_v7, %v646_v10 }
 0x144   : > { %v656_v18 = vadd.f32 %v655_v11, %v651_v14 }
 0x146   : > { %v661_v20 = vadd.f32 %v660_v15, %v656_v18 }
 0x148   : > { %v666_v22 = vadd.f32 %v665_v19, %v661_v20 }
 0x14a   : > { %v671_v23 = vadd.f32 %v670_v21, %v666_v22 }
 0x14c   : > { %v673_v24 = vmul.f32 0.70710677, %v671_v23  ;;  %v672_v26 = vmul.f32 0.5, %v671_v23 }
 0x14e   : > { %1077 = verf.f32 %v673_v24 }
 0x158   : > { %v1078_v25 = vpop.eup %1077 }
 0x159   : > { %v675_v27 = vadd.f32 1.0, %v1078_v25 }
 0x15b   : > { %v676_v28 = vmul.f32 %v675_v27, %v672_v26 }
 0x15d   : > { %996 = vst.msk [vmem:[%s1258_s29 + $0x6] ss:$8 sm:$0xf] %vm1260_vm0, %v676_v28 }
 0x164   : > { %v997_v36 = vld [vmem:[%s1243_s23 + $0x7] ss:$8 sm:$0xf] }
 0x165   : > { %v684_v38 = vadd.f32 %v997_v36, %v683_v31 }
 0x167   : > { %v689_v43 = vadd.f32 %v688_v34, %v684_v38 }
 0x169   : > { %v694_v47 = vadd.f32 %v693_v39, %v689_v43 }
 0x16b   : > { %v699_v51 = vadd.f32 %v698_v44, %v694_v47 }
 0x16d   : > { %v704_v55 = vadd.f32 %v703_v48, %v699_v51 }
 0x16f   : > { %v709_v59 = vadd.f32 %v708_v52, %v704_v55 }
 0x171   : > { %v714_v61 = vadd.f32 %v713_v56, %v709_v59 }
 0x173   : > { %v719_v63 = vadd.f32 %v718_v60, %v714_v61 }
 0x175   : > { %v724_v0 = vadd.f32 %v723_v62, %v719_v63 }
 0x177   : > { %v726_v1 = vmul.f32 0.70710677, %v724_v0  ;;  %v725_v3 = vmul.f32 0.5, %v724_v0 }
 0x179   : > { %1079 = verf.f32 %v726_v1 }
 0x183   : > { %v1080_v2 = vpop.eup %1079 }
 0x184   : > { %v728_v4 = vadd.f32 1.0, %v1080_v2 }
 0x186   : > { %v729_v5 = vmul.f32 %v728_v4, %v725_v3 }
 0x188   : > { %1014 = vst.msk [vmem:[%s1258_s29 + $0x7] ss:$8 sm:$0xf] %vm1260_vm0, %v729_v5 }
 0x189 PF: > { %s16_s17 = sadd.s32 1, %s1141_s17   ;;  %s1375_s15 = smov %s1137_s16 }
 0x18a   : > { %p13_p4 = scmp.ge.s32.totalorder %s16_s17, 4   ;;  %s1376_s16 = smov %s1378_s19 }
 0x18c   :  { %15 = sbr.rel (!%p13_p4) target bundleno = 3 (0x3), region = 99 }
 0x193   :  { %763 = vsyncpa [#allocation3], 1 }
 0x194   :  { %765 = vsyncpa [#allocation3 + $0x1], 1 }
 0x195   :  { %766 = vsyncpa [#allocation5], 1 }

</bundles_post_ra>
